<compile_context>
chip_gen: v7x
topology: tpu7x:2x2x1
jax: 0.10.0
libtpu: 0.0.40
codegen_flags: <defaults>
</compile_context>

<pallas_src>
from functools import partial

import numpy as np
import jax
import jax.numpy as jnp
from jax import lax
from jax.experimental import pallas as pl
from jax.experimental.pallas import tpu as pltpu


# ----------------------------------------------------------------------------
# Shared in-kernel compute: y = x + proj(attn(x))  (channel-major, one tile)
# ----------------------------------------------------------------------------
def _attn_residual(x, wq, wf, num_heads):
    """x: (C, tN) model dtype; wq: (qk_dim, C); wf: (C, qk_dim) per-batch fold.
    Returns y = x + drop_path(attn(x)) with drop_path = Identity, as f32."""
    q = jnp.dot(wq, x, preferred_element_type=jnp.float32)        # (qk, tN) f32
    qk_dim = q.shape[0]
    dq = qk_dim // num_heads

    # Per-head softmax over the dq sublanes of each head (cheap VPU/XLU work;
    # no per-head matmuls and no f32 proj accumulator read-modify-write).
    parts = []
    for h in range(num_heads):
        qh = q[h * dq:(h + 1) * dq, :]                             # (dq, tN), sublane slice
        mh = jnp.max(qh, axis=0, keepdims=True)                    # (1, tN)
        ph = jnp.exp(qh - mh)
        inv = pl.reciprocal(jnp.sum(ph, axis=0, keepdims=True), approx=True)
        parts.append(ph * inv)
    qsm = parts[0] if num_heads == 1 else jnp.concatenate(parts, axis=0)  # (qk, tN)

    # Single K = qk_dim matmul with the per-batch folded projection weight.
    proj = jnp.dot(wf, qsm.astype(x.dtype), preferred_element_type=jnp.float32)
    return x.astype(jnp.float32) + proj                            # (C, tN) f32


# ----------------------------------------------------------------------------
# Pass A: per-batch context ctx = softmax_col(k)^T v, online over token tiles.
# ----------------------------------------------------------------------------
def _ctx_kernel(x_ref, wkv_ref, ctx_ref, m_sc, l_sc, ctx_sc, *, qk_dim):
    nt = pl.program_id(1)

    @pl.when(nt == 0)
    def _():
        m_sc[...] = jnp.full_like(m_sc, -jnp.inf)
        l_sc[...] = jnp.zeros_like(l_sc)
        ctx_sc[...] = jnp.zeros_like(ctx_sc)

    x = x_ref[0]                                                   # (C, tN) model dtype
    kv = jnp.dot(wkv_ref[...], x, preferred_element_type=jnp.float32)  # (qk+vd, tN) f32
    k = kv[:qk_dim, :]                                             # (qk, tN)
    v = kv[qk_dim:, :]                                             # (vd, tN)

    # Online column softmax of k over the (tiled) token axis, per qk row.
    m_prev = m_sc[...]                                             # (qk, 1)
    m_new = jnp.maximum(m_prev, jnp.max(k, axis=-1, keepdims=True))
    alpha = jnp.exp(m_prev - m_new)                                # (qk, 1)
    p = jnp.exp(k - m_new)                                         # (qk, tN)
    l_sc[...] = alpha * l_sc[...] + jnp.sum(p, axis=-1, keepdims=True)

    # ctx[d, e] += sum_n p[d, n] * v[e, n]   (contraction over tokens)
    pv = lax.dot_general(p.astype(x.dtype), v.astype(x.dtype),
                         (((1,), (1,)), ((), ())),
                         preferred_element_type=jnp.float32)       # (qk, vd)
    ctx_sc[...] = alpha * ctx_sc[...] + pv
    m_sc[...] = m_new

    @pl.when(nt == pl.num_programs(1) - 1)
    def _():
        ctx_ref[0] = (ctx_sc[...] * (1.0 / l_sc[...])).astype(ctx_ref.dtype)


# ----------------------------------------------------------------------------
# Pass B: BatchNorm partial statistics of y = x + attn(x)  (y never stored).
# ----------------------------------------------------------------------------
def _bn_stats_kernel(x_ref, wq_ref, wf_ref, stats_ref, s1_sc, s2_sc, *, num_heads):
    nt = pl.program_id(1)

    @pl.when(nt == 0)
    def _():
        s1_sc[...] = jnp.zeros_like(s1_sc)
        s2_sc[...] = jnp.zeros_like(s2_sc)

    y = _attn_residual(x_ref[0], wq_ref[...], wf_ref[0], num_heads)
    s1_sc[...] += jnp.sum(y, axis=-1, keepdims=True)               # (C, 1)
    s2_sc[...] += jnp.sum(y * y, axis=-1, keepdims=True)           # (C, 1)

    @pl.when(nt == pl.num_programs(1) - 1)
    def _():
        stats_ref[0] = jnp.concatenate([s1_sc[...], s2_sc[...]], axis=-1)  # (C, 2)


# ----------------------------------------------------------------------------
# Pass C: recompute y = x + attn(x) and apply BN (y*scale + shift), tiled.
# ----------------------------------------------------------------------------
def _bn_out_kernel(x_ref, wq_ref, wf_ref, scale_ref, shift_ref, o_ref, *, num_heads):
    y = _attn_residual(x_ref[0], wq_ref[...], wf_ref[0], num_heads)
    o_ref[0] = (y * scale_ref[...] + shift_ref[...]).astype(o_ref.dtype)


# ----------------------------------------------------------------------------
# Wrapper
# ----------------------------------------------------------------------------
def _pick_vmem_limit_bytes():
    phys = None
    try:
        info = pltpu.get_tpu_info()
        phys = getattr(info, "vmem_capacity_bytes", None)
    except Exception:
        phys = None
    if not phys:
        phys = 64 * 1024 * 1024            # conservative: v7x per-TC VMEM
    return int(min(phys * 3 // 4, 96 * 1024 * 1024))


def _tile_cap_tokens(C, dtype_bytes, vmem_limit_bytes):
    """Token cap so double-buffered (C, tile_n) streams + f32 compute
    temporaries fit comfortably inside the scoped VMEM limit."""
    per_token = C * (4 * dtype_bytes + 12 * 4)     # 2 streams x 2 bufs + ~12 f32 temps
    budget = max(vmem_limit_bytes - (6 << 20), 8 << 20)
    cap = budget // per_token
    return max(128, (cap // 128) * 128)


def _choose_tile_n(n, target, cap):
    """Largest multiple of 128 that divides n and is <= min(target, cap); else n."""
    t = min(target, cap, n)
    t -= t % 128
    while t >= 128:
        if n % t == 0:
            return t
        t -= 128
    # TODO(synk): pad N to a multiple of 128 and mask padded tokens in the
    # k-softmax / BN statistics instead of falling back to a full-N tile.
    return n


def linear_attn_block(x, params, num_heads, *, tile_n_target=4096, eps=1e-5):
    """x: (B, C, H, W, D).  Returns the LinearAtnnBlock forward (same shape)."""
    B, C, H, W, D = x.shape
    N = H * W * D
    dtype = x.dtype
    dtype_bytes = jnp.dtype(dtype).itemsize

    x_cm = x.reshape(B, C, N)              # channel-major tokens; free reshape

    wq = params["wq"].astype(dtype)        # (qk_dim, C), PyTorch (out, in) layout
    wk = params["wk"].astype(dtype)
    wv = params["wv"].astype(dtype)
    wp = params["wp"].astype(jnp.float32)

    qk_dim = wq.shape[0]
    v_dim = wv.shape[0]
    dq = qk_dim // num_heads
    dv = v_dim // num_heads

    # Stack Wk / Wv so pass A does one matmul per tile (fills a 128-row MXU).
    wkv = jnp.concatenate([wk, wv], axis=0)            # (qk_dim + v_dim, C)

    vmem_limit = _pick_vmem_limit_bytes()
    cap = _tile_cap_tokens(C, dtype_bytes, vmem_limit)
    tile_n = _choose_tile_n(N, tile_n_target, cap)
    n_tiles = N // tile_n if N % tile_n == 0 else 1

    cp_reduce = pltpu.CompilerParams(
        dimension_semantics=("parallel", "arbitrary"),
        vmem_limit_bytes=vmem_limit)
    cp_parallel = pltpu.CompilerParams(
        dimension_semantics=("parallel", "parallel"),
        vmem_limit_bytes=vmem_limit)

    # ---- Pass A: per-batch context ------------------------------------------
    ctx = pl.pallas_call(
        partial(_ctx_kernel, qk_dim=qk_dim),
        out_shape=jax.ShapeDtypeStruct((B, qk_dim, v_dim), jnp.float32),
        grid_spec=pltpu.PrefetchScalarGridSpec(
            num_scalar_prefetch=0,
            grid=(B, n_tiles),
            in_specs=[
                pl.BlockSpec((1, C, tile_n), lambda b, t: (b, 0, t)),
                pl.BlockSpec((qk_dim + v_dim, C), lambda b, t: (0, 0)),
            ],
            out_specs=pl.BlockSpec((1, qk_dim, v_dim), lambda b, t: (b, 0, 0)),
            scratch_shapes=[
                pltpu.VMEM((qk_dim, 1), jnp.float32),      # running column max
                pltpu.VMEM((qk_dim, 1), jnp.float32),      # running sum-exp
                pltpu.VMEM((qk_dim, v_dim), jnp.float32),  # ctx accumulator
            ]),
        compiler_params=cp_reduce,
    )(x_cm, wkv)
    # TODO(synk): on v7x with small/odd B, add a parallel token-axis split for
    # pass A (per-split partial (m, l, ctx) merged host-side) so both TCs work.

    # ---- Fold per-head context into the 1x1x1 projection (tiny, pure JAX) ---
    ctx_r = ctx.reshape(B, num_heads, dq, num_heads, dv)
    eye = jnp.eye(num_heads, dtype=jnp.float32)
    ctx_diag = jnp.einsum('bxdye,xy->bxde', ctx_r, eye)            # (B, h, dq, dv)
    wp_r = wp.reshape(C, num_heads, dv)
    wfold = jnp.einsum('che,bhde->bhcd', wp_r, ctx_diag)           # (B, h, C, dq)
    wf_full = jnp.transpose(wfold, (0, 2, 1, 3)).reshape(B, C, qk_dim).astype(dtype)

    # ---- Pass B: BN partial stats only (no y materialization) ---------------
    stats = pl.pallas_call(
        partial(_bn_stats_kernel, num_heads=num_heads),
        out_shape=jax.ShapeDtypeStruct((B, C, 2), jnp.float32),
        grid_spec=pltpu.PrefetchScalarGridSpec(
            num_scalar_prefetch=0,
            grid=(B, n_tiles),
            in_specs=[
                pl.BlockSpec((1, C, tile_n), lambda b, t: (b, 0, t)),
                pl.BlockSpec((qk_dim, C), lambda b, t: (0, 0)),
                pl.BlockSpec((1, C, qk_dim), lambda b, t: (b, 0, 0)),
            ],
            out_specs=pl.BlockSpec((1, C, 2), lambda b, t: (b, 0, 0)),
            scratch_shapes=[
                pltpu.VMEM((C, 1), jnp.float32),           # sum(y)
                pltpu.VMEM((C, 1), jnp.float32),           # sum(y*y)
            ]),
        compiler_params=cp_reduce,
    )(x_cm, wq, wf_full)

    # ---- BatchNorm3d training-mode batch statistics (biased variance) -------
    s = jnp.sum(stats, axis=0)                                     # (C, 2)
    inv_cnt = 1.0 / float(B * N)
    mean = s[:, 0] * inv_cnt
    var = jnp.maximum(s[:, 1] * inv_cnt - mean * mean, 0.0)
    # TODO(synk): for very large N use per-tile centered (Welford-style) merges
    # to avoid E[y^2]-E[y]^2 cancellation.
    inv = lax.rsqrt(var + eps)
    gamma = params["gamma"].astype(jnp.float32)
    beta = params["beta"].astype(jnp.float32)
    scale = (gamma * inv).reshape(C, 1)
    shift = (beta - mean * gamma * inv).reshape(C, 1)

    # ---- Pass C: recompute attention output + residual, apply BN ------------
    out = pl.pallas_call(
        partial(_bn_out_kernel, num_heads=num_heads),
        out_shape=jax.ShapeDtypeStruct((B, C, N), dtype),
        grid_spec=pltpu.PrefetchScalarGridSpec(
            num_scalar_prefetch=0,
            grid=(B, n_tiles),
            in_specs=[
                pl.BlockSpec((1, C, tile_n), lambda b, t: (b, 0, t)),
                pl.BlockSpec((qk_dim, C), lambda b, t: (0, 0)),
                pl.BlockSpec((1, C, qk_dim), lambda b, t: (b, 0, 0)),
                pl.BlockSpec((C, 1), lambda b, t: (0, 0)),
                pl.BlockSpec((C, 1), lambda b, t: (0, 0)),
            ],
            out_specs=pl.BlockSpec((1, C, tile_n), lambda b, t: (b, 0, t))),
        compiler_params=cp_parallel,
    )(x_cm, wq, wf_full, scale, shift)

    return out.reshape(B, C, H, W, D)


# ----------------------------------------------------------------------------
# Pure-JAX reference (mirrors the PyTorch forward) for a correctness check.
# ----------------------------------------------------------------------------
def reference(x, params, num_heads):
    B, C, H, W, D = x.shape
    N = H * W * D
    xt = jnp.transpose(x.reshape(B, C, N), (0, 2, 1))               # (B, N, C)
    q = xt @ params["wq"].T
    k = xt @ params["wk"].T
    v = xt @ params["wv"].T

    def to_heads(t):
        return jnp.transpose(t.reshape(B, N, num_heads, -1), (0, 2, 1, 3))

    q = jax.nn.softmax(to_heads(q), axis=-1)
    k = jax.nn.softmax(to_heads(k), axis=-2)
    v = to_heads(v)
    ctx = jnp.einsum('bhnd,bhne->bhde', k, v)
    attn = jnp.einsum('bhnd,bhde->bhne', q, ctx)
    at = jnp.transpose(attn, (0, 2, 1, 3)).reshape(B, N, C)
    proj = at @ params["wp"].T
    y = xt + proj
    y2 = y.reshape(B * N, C)
    mean = y2.mean(0)
    var = ((y2 - mean) ** 2).mean(0)
    yn = (y2 - mean) / jnp.sqrt(var + 1e-5) * params["gamma"] + params["beta"]
    return jnp.transpose(yn.reshape(B, N, C), (0, 2, 1)).reshape(B, C, H, W, D)


if __name__ == "__main__":
    # Small shapes consistent with the module: dim divisible by num_heads,
    # feat_shape with input_size[1] == input_size[2].
    B, C, H, W, D = 2, 64, 8, 16, 16          # N = 2048 tokens per batch
    num_heads = 4

    key = jax.random.PRNGKey(0)
    kx, kq, kk, kv, kp, kg, kb = jax.random.split(key, 7)

    x = jax.random.normal(kx, (B, C, H, W, D), dtype=jnp.float32)

    params = {
        # nn.Linear(dim, qk_dim, bias=False) weights: (out, in)
        "wq": 0.05 * jax.random.normal(kq, (C, C), dtype=jnp.float32),
        "wk": 0.05 * jax.random.normal(kk, (C, C), dtype=jnp.float32),
        "wv": 0.05 * jax.random.normal(kv, (C, C), dtype=jnp.float32),
        # Conv3d(dim, dim, 1, bias=False) weight (C, C, 1, 1, 1) squeezed to (C, C)
        "wp": 0.05 * jax.random.normal(kp, (C, C), dtype=jnp.float32),
        # BatchNorm3d affine params
        "gamma": 1.0 + 0.1 * jax.random.normal(kg, (C,), dtype=jnp.float32),
        "beta": 0.1 * jax.random.normal(kb, (C,), dtype=jnp.float32),
    }

    out = jax.block_until_ready(linear_attn_block(x, params, num_heads))
    ref = jax.block_until_ready(reference(x, params, num_heads))

    assert out.shape == (B, C, H, W, D)
    err = float(np.max(np.abs(np.asarray(out) - np.asarray(ref))))
    assert np.allclose(np.asarray(out), np.asarray(ref), atol=1e-3, rtol=1e-3), err

    print("KERNEL_OK")
</pallas_src>

<mosaic_0001>
module attributes {stable_mosaic.version = 11 : i64} {
  func.func @_ctx_kernel(%arg0: i32, %arg1: i32, %arg2: memref<1x64x2048xf32, #tpu.memory_space<vmem>>, %arg3: memref<128x64xf32, #tpu.memory_space<vmem>>, %arg4: memref<1x64x64xf32, #tpu.memory_space<vmem>>, %arg5: memref<64x1xf32, #tpu.memory_space<vmem>>, %arg6: memref<64x1xf32, #tpu.memory_space<vmem>>, %arg7: memref<64x64xf32, #tpu.memory_space<vmem>>) attributes {dimension_semantics = [#tpu.dimension_semantics<parallel>, #tpu.dimension_semantics<arbitrary>], iteration_bounds = array<i64: 2, 1>, scalar_prefetch = 0 : i64, scratch_operands = 3 : i64, tpu.core_type = #tpu.core_type<tc>, window_params = [{transform_indices = @transform_0, window_bounds = array<i64: 1, 64, 2048>}, {pipeline_mode = #tpu.pipeline_mode<synchronous>, transform_indices = @transform_1, window_bounds = array<i64: 128, 64>}, {transform_indices = @transform_2, window_bounds = array<i64: 1, 64, 64>}]} {
    %c0_i32 = arith.constant 0 : i32
    %0 = arith.cmpi eq, %arg1, %c0_i32 : i32
    %1 = arith.extui %0 : i1 to i32
    %c0_i32_0 = arith.constant 0 : i32
    %2 = arith.cmpi ne, %1, %c0_i32_0 : i32
    scf.if %2 {
      %cst_22 = arith.constant 0xFF800000 : f32
      %34 = vector.broadcast %cst_22 : f32 to vector<64x1xf32>
      %c0_23 = arith.constant 0 : index
      %c0_24 = arith.constant 0 : index
      %35 = vector.load %arg5[%c0_23, %c0_24] : memref<64x1xf32, #tpu.memory_space<vmem>>, vector<64x1xf32>
      tpu.vector_store %arg5[%c0_23, %c0_24], %34 {strides = array<i32>} : memref<64x1xf32, #tpu.memory_space<vmem>>, vector<64x1xf32>,
      %cst_25 = arith.constant 0.000000e+00 : f32
      %36 = vector.broadcast %cst_25 : f32 to vector<64x1xf32>
      %c0_26 = arith.constant 0 : index
      %c0_27 = arith.constant 0 : index
      %37 = vector.load %arg6[%c0_26, %c0_27] : memref<64x1xf32, #tpu.memory_space<vmem>>, vector<64x1xf32>
      tpu.vector_store %arg6[%c0_26, %c0_27], %36 {strides = array<i32>} : memref<64x1xf32, #tpu.memory_space<vmem>>, vector<64x1xf32>,
      %cst_28 = arith.constant 0.000000e+00 : f32
      %38 = vector.broadcast %cst_28 : f32 to vector<64x64xf32>
      %c0_29 = arith.constant 0 : index
      %c0_30 = arith.constant 0 : index
      %39 = vector.load %arg7[%c0_29, %c0_30] : memref<64x64xf32, #tpu.memory_space<vmem>>, vector<64x64xf32>
      tpu.vector_store %arg7[%c0_29, %c0_30], %38 {strides = array<i32>} : memref<64x64xf32, #tpu.memory_space<vmem>>, vector<64x64xf32>,
    } else {
    }
    %c0 = arith.constant 0 : index
    %c0_1 = arith.constant 0 : index
    %c0_2 = arith.constant 0 : index
    %3 = vector.load %arg2[%c0, %c0_1, %c0_2] : memref<1x64x2048xf32, #tpu.memory_space<vmem>>, vector<1x64x2048xf32>
    %4 = vector.shape_cast %3 : vector<1x64x2048xf32> to vector<64x2048xf32>
    %c0_3 = arith.constant 0 : index
    %c0_4 = arith.constant 0 : index
    %5 = vector.load %arg3[%c0_3, %c0_4] : memref<128x64xf32, #tpu.memory_space<vmem>>, vector<128x64xf32>
    %cst = arith.constant dense<0.000000e+00> : vector<128x2048xf32>
    %6 = tpu.matmul %5, %4, %cst {dimension_numbers = #tpu.dot_dimension_numbers<[1], [0], [0], [1], [0, 0, 1, 1], [], []>} : vector<128x64xf32>, vector<64x2048xf32>, vector<128x2048xf32> -> vector<128x2048xf32>
    %7 = vector.extract_strided_slice %6 {offsets = [0, 0], sizes = [64, 2048], strides = [1, 1]} : vector<128x2048xf32> to vector<64x2048xf32>
    %8 = vector.extract_strided_slice %6 {offsets = [64, 0], sizes = [64, 2048], strides = [1, 1]} : vector<128x2048xf32> to vector<64x2048xf32>
    %c0_5 = arith.constant 0 : index
    %c0_6 = arith.constant 0 : index
    %9 = vector.load %arg5[%c0_5, %c0_6] : memref<64x1xf32, #tpu.memory_space<vmem>>, vector<64x1xf32>
    %cst_7 = arith.constant dense<0xFF800000> : vector<64xf32>
    %10 = vector.multi_reduction <maximumf>, %7, %cst_7 [1] : vector<64x2048xf32> to vector<64xf32>
    %11 = vector.shape_cast %10 : vector<64xf32> to vector<64x1xf32>
    %12 = arith.maximumf %9, %11 : vector<64x1xf32>
    %13 = arith.subf %9, %12 : vector<64x1xf32>
    %14 = math.exp %13 : vector<64x1xf32>
    %15 = vector.broadcast %12 : vector<64x1xf32> to vector<64x2048xf32>
    %16 = arith.subf %7, %15 : vector<64x2048xf32>
    %17 = math.exp %16 : vector<64x2048xf32>
    %c0_8 = arith.constant 0 : index
    %c0_9 = arith.constant 0 : index
    %18 = vector.load %arg6[%c0_8, %c0_9] : memref<64x1xf32, #tpu.memory_space<vmem>>, vector<64x1xf32>
    %19 = arith.mulf %14, %18 : vector<64x1xf32>
    %cst_10 = arith.constant dense<0.000000e+00> : vector<64xf32>
    %20 = vector.multi_reduction <add>, %17, %cst_10 [1] : vector<64x2048xf32> to vector<64xf32>
    %21 = vector.shape_cast %20 : vector<64xf32> to vector<64x1xf32>
    %22 = arith.addf %19, %21 : vector<64x1xf32>
    %c0_11 = arith.constant 0 : index
    %c0_12 = arith.constant 0 : index
    %23 = vector.load %arg6[%c0_11, %c0_12] : memref<64x1xf32, #tpu.memory_space<vmem>>, vector<64x1xf32>
    tpu.vector_store %arg6[%c0_11, %c0_12], %22 {strides = array<i32>} : memref<64x1xf32, #tpu.memory_space<vmem>>, vector<64x1xf32>,
    %cst_13 = arith.constant dense<0.000000e+00> : vector<64x64xf32>
    %24 = tpu.matmul %17, %8, %cst_13 {dimension_numbers = #tpu.dot_dimension_numbers<[1], [1], [0], [0], [0, 0, 1, 0], [], []>} : vector<64x2048xf32>, vector<64x2048xf32>, vector<64x64xf32> -> vector<64x64xf32>
    %c0_14 = arith.constant 0 : index
    %c0_15 = arith.constant 0 : index
    %25 = vector.load %arg7[%c0_14, %c0_15] : memref<64x64xf32, #tpu.memory_space<vmem>>, vector<64x64xf32>
    %26 = vector.broadcast %14 : vector<64x1xf32> to vector<64x64xf32>
    %27 = arith.mulf %26, %25 : vector<64x64xf32>
    %28 = arith.addf %27, %24 : vector<64x64xf32>
    %c0_16 = arith.constant 0 : index
    %c0_17 = arith.constant 0 : index
    %29 = vector.load %arg7[%c0_16, %c0_17] : memref<64x64xf32, #tpu.memory_space<vmem>>, vector<64x64xf32>
    tpu.vector_store %arg7[%c0_16, %c0_17], %28 {strides = array<i32>} : memref<64x64xf32, #tpu.memory_space<vmem>>, vector<64x64xf32>,
    %c0_18 = arith.constant 0 : index
    %c0_19 = arith.constant 0 : index
    %30 = vector.load %arg5[%c0_18, %c0_19] : memref<64x1xf32, #tpu.memory_space<vmem>>, vector<64x1xf32>
    tpu.vector_store %arg5[%c0_18, %c0_19], %12 {strides = array<i32>} : memref<64x1xf32, #tpu.memory_space<vmem>>, vector<64x1xf32>,
    %c0_i32_20 = arith.constant 0 : i32
    %31 = arith.cmpi eq, %arg1, %c0_i32_20 : i32
    %32 = arith.extui %31 : i1 to i32
    %c0_i32_21 = arith.constant 0 : i32
    %33 = arith.cmpi ne, %32, %c0_i32_21 : i32
    scf.if %33 {
      %c0_22 = arith.constant 0 : index
      %c0_23 = arith.constant 0 : index
      %34 = vector.load %arg7[%c0_22, %c0_23] : memref<64x64xf32, #tpu.memory_space<vmem>>, vector<64x64xf32>
      %c0_24 = arith.constant 0 : index
      %c0_25 = arith.constant 0 : index
      %35 = vector.load %arg6[%c0_24, %c0_25] : memref<64x1xf32, #tpu.memory_space<vmem>>, vector<64x1xf32>
      %cst_26 = arith.constant 1.000000e+00 : f32
      %36 = vector.broadcast %cst_26 : f32 to vector<64x1xf32>
      %37 = arith.divf %36, %35 : vector<64x1xf32>
      %38 = vector.broadcast %37 : vector<64x1xf32> to vector<64x64xf32>
      %39 = arith.mulf %34, %38 : vector<64x64xf32>
      %c0_27 = arith.constant 0 : index
      %c0_28 = arith.constant 0 : index
      %c0_29 = arith.constant 0 : index
      %40 = vector.load %arg4[%c0_27, %c0_28, %c0_29] : memref<1x64x64xf32, #tpu.memory_space<vmem>>, vector<1x64x64xf32>
      %41 = vector.shape_cast %40 : vector<1x64x64xf32> to vector<64x64xf32>
      %42 = vector.shape_cast %39 : vector<64x64xf32> to vector<1x64x64xf32>
      tpu.vector_store %arg4[%c0_27, %c0_28, %c0_29], %42 {strides = array<i32>} : memref<1x64x64xf32, #tpu.memory_space<vmem>>, vector<1x64x64xf32>,
    } else {
    }
    return
  }
  func.func @transform_0(%arg0: i32, %arg1: i32) -> (i32, i32, i32) {
    %c0_i32 = arith.constant 0 : i32
    %c0_i32_0 = arith.constant 0 : i32
    return %arg0, %c0_i32, %arg1 : i32, i32, i32
  }
  func.func @transform_1(%arg0: i32, %arg1: i32) -> (i32, i32) {
    %c0_i32 = arith.constant 0 : i32
    %c0_i32_0 = arith.constant 0 : i32
    %c0_i32_1 = arith.constant 0 : i32
    return %c0_i32, %c0_i32_0 : i32, i32
  }
  func.func @transform_2(%arg0: i32, %arg1: i32) -> (i32, i32, i32) {
    %c0_i32 = arith.constant 0 : i32
    %c0_i32_0 = arith.constant 0 : i32
    %c0_i32_1 = arith.constant 0 : i32
    return %arg0, %c0_i32, %c0_i32_0 : i32, i32, i32
  }
}

</mosaic_0001>

<bundles_post_ra>
// kernel: tpu_custom_call.1
= control target key start
LH: loop header
LB: loop body
LE: loop exit
PB: predicated region body
PF: predicated region fallthrough
CT: control target
= control target key end

     0   :  { %7 = vsyncpa [#allocation6], 0  ;;  %s7291_s0 = inlined_call_operand.hbm [shape: f32[2,64,2048], index: 0, kind: input, shape index: {}]   ;;  %s7292_s1 = inlined_call_operand.vmem [shape: f32[128,64], index: 1, kind: input, shape index: {}]   ;;  %s7293_s2 = inlined_call_operand.hbm [shape: f32[2,64,64], index: 2, kind: output, shape index: {}]  }
   0x1   :  { %9 = vsyncpa [#allocation6 + $0x1], 0 }
   0x2   :  { %10 = vsyncpa [#allocation7], 0 }
   0x3   :  { %12 = vsyncpa [#allocation7 + $0x1], 0  ;;  %s4466_s9 = smov 0   ;;  %s4468_s10 = smov 0  }
   0x4   :  { %s4470_s11 = smov 0   ;;  %s4472_s12 = smov 0  }
   0x5   :  { %s4474_s13 = smov 0   ;;  %s4476_s14 = smov 0  }
   0x6 LB: > { %s3568_s15 = sadd.s32 4294967295, %s4440_s14   ;;  %s3569_s16 = sadd.s32 4294967294, %s4440_s14   ;;  %s4440_s14 = sphi %s4476_s14, %s18_s14   ;;  %s4436_s13 = sphi %s4474_s13, %s8164_s13   ;;  %s4432_s12 = sphi %s4472_s12, %s8163_s12   ;;  %s4428_s11 = sphi %s4470_s11, %s8162_s11   ;;  %s4424_s10 = sphi %s4468_s10, %s8161_s10   ;;  %s4420_s9 = sphi %s4466_s9, %s8160_s9  }
   0x7   : > { %s30_s17 = sadd.s32 1, %s4436_s13  ;;  %s39_s18 = sadd.s32 1, %s4428_s11 }
   0x8   : > { %p32_p0 = scmp.ge.s32.totalorder %s30_s17, 2  ;;  %p46_p1 = scmp.ne.s32.totalorder %s4428_s11, %s4424_s10 }
   0x9   : > { %p47_p2 = scmp.eq.s32.totalorder %s4440_s14, 0  ;;  %p52_p3 = scmp.ne.s32.totalorder %s4424_s10, %s4420_s9 }
   0xa   : > { %s8166_s17 = smov (%p32_p0, %s30_s17), 0  ;;  %p53_p5 = scmp.eq.s32.totalorder %s3568_s15, 0 }
   0xb   : > { %p4507_p4 = por %p47_p2, %p46_p1  ;;  %s34_s20 = ssub.s32 %s4436_s13, %s8166_s17 }
   0xc   : > { %p97_p6 = scmp.eq.s32.totalorder %s3568_s15, 1  ;;  %p37_p7 = scmp.eq.s32.totalorder %s34_s20, 0 }
   0xd   : > { %p4513_p8 = por %p53_p5, %p52_p3  ;;  %p103_p10 = scmp.eq.s32.totalorder %s3569_s16, 1 }
   0xe   : > { %p4517_p9 = por %p97_p6, %p46_p1  ;;  %p3981_p13 = scmp.lt.s32.totalorder %s4440_s14, 2 }
   0xf   : > { %s4522_s23 = scalar_select %p37_p7, %s4428_s11, %s39_s18  }
  0x10   : > { %s7562_s22 = scalar_select %p4517_p9, 1, 0 }
  0x11   : > { %p4524_p11 = por %p103_p10, %p52_p3  ;;  %s126_s25 = sand.u32 1, %s4428_s11  }
  0x12   : > { %s3572_s26 = sshll.u32 %s126_s25, 10  ;;  %s3711_s27 = sshll.u32 %s4436_s13, 14 }
  0x13   : > { %s7563_s24 = scalar_select %p4524_p11, 1, 0 }
  0x14   : > { %s4535_s30 = scalar_lea.hbm %s7291_s0, %s3711_s27  ;;  %s130_s3 = scalar_lea.vmem [#allocation5], %s3572_s26 }
  0x15   : > { %s139_s4 = sshll.u32 %s130_s3, 4  ;;  %p4541_p0 = pnand %p3981_p13, %p4507_p4  ;;  %s4537_s4 = int_to_ptr.vmem [resolvable:$true] %s139_s4 }
  0x16   : > { %s4546_s6 = scalar_lea.sflag [#allocation6], %s126_s25  ;;  %s4328_s7 = scalar_lea.hbm %s4535_s30, 16384 }
  0x17   : > { %p4329_p2 = scmp.ne.s32.totalorder %s4535_s30, %s4328_s7  ;;  %p4330_p3 = pneg %p4541_p0 }
  0x18   : > { %s4333_s16 = scalar_lea.hbm %s7291_s0, 32768  ;;  %p4334_p4 = scmp.lt.u32.totalorder %s4535_s30, %s7291_s0 }
  0x19   : > { %p4331_p5 = pnand %p4330_p3, %p4329_p2  ;;  %p4335_p7 = scmp.lt.u32.totalorder %s4333_s16, %s4328_s7 }
  0x1a   : > { %p4337_p13 = scmp.lt.u32.totalorder %s4328_s7, %s4535_s30 }
  0x1b   : > { %p4332_p6 = pneg %p4331_p5  ;;  %p4336_p10 = por %p4335_p7, %p4334_p4 }
  0x1d   : > { %p4338_p12 = por %p4337_p13, %p4336_p10 }
  0x1f   : > { %p4339_p1 = pnand %p4338_p12, %p4332_p6 }
  0x21   : > { %4342 = shalt.err (!%p4339_p1)
}
  0x22   : > { %s4343_s20 = scalar_lea.vmem %s4537_s4, 16384  ;;  %s4442_s25 = smov [#allocation5]  }
  0x23   : > { %p4344_p2 = scmp.ne.s32.totalorder %s4537_s4, %s4343_s20  ;;  %s4348_s26 = sshll.u32 %s4442_s25, 4  ;;  %s4349_s26 = int_to_ptr.vmem [resolvable:$false] %s4348_s26 }
  0x24   : > { %s4350_s27 = scalar_lea.vmem %s4349_s26, 32768  ;;  %p4351_p9 = scmp.lt.s32.totalorder %s4537_s4, %s4349_s26 }
  0x25   : > { %p4346_p5 = pnand %p4344_p2, %p4330_p3  ;;  %p4352_p4 = scmp.lt.s32.totalorder %s4350_s27, %s4343_s20 }
  0x27   : > { %p4347_p11 = pneg %p4346_p5  ;;  %p4353_p7 = por %p4352_p4, %p4351_p9 }
  0x29   : > { %p4354_p10 = pnand %p4353_p7, %p4347_p11 }
  0x2b   : > { %4357 = shalt.err (!%p4354_p10)
}
  0x2c   : > { %s4443_s28 = smov 2048   ;;  %s4444_s29 = smov 128  }
  0x2d   : > { %3976 = dma.hbm_to_vmem [thread:$0]  (!%p4541_p0), %s4535_s30, 16384, %s4537_s4, %s4546_s6, %s4443_s28, %s4443_s28, %s4444_s29  }
  0x2e   : > { %p147_p12 = scmp.lt.s32.totalorder %s4440_s14, 3  ;;  %p7565_p1 = scmp.ge.s32.totalorder %s4440_s14, 1 }
  0x30   : > { %p148_p3 = pnand %p7565_p1, %p147_p12 }
  0x32   : > { %151 = sbr.rel (%p148_p3) target bundleno = 1244 (0x4dc), region = 28 }
  0x39   : > { %s4578_s3 = sand.u32 1, %s4424_s10  }
  0x3a   : > { %s3576_s7 = sshll.u32 %s4578_s3, 10  ;;  %s154_s8 = scalar_lea.sflag [#allocation6], %s4578_s3 }
  0x3b   : > { %s4582_s15 = scalar_lea.vmem [#allocation5], %s3576_s7 }
  0x3c   : > { %4411 = dma.done.wait (%p4513_p8), %s154_s8, 16384  }
  0x3d   : > { %4413 = vsyncadd (%p4513_p8), %s154_s8, 4294950912  ;;  %vm200_vm0 = vcmask 523264   ;;  %v7295_v0 = vmov 0.0   ;;  %v210_v1 = vld [vmem:[%s4582_s15 + $0x8] sm:$0xff]  ;;  %v212_v3 = vld [vmem:[%s4582_s15 + $0x18] sm:$0xff]  ;;  %vm183_vm1 = vcmask 7168  }
  0x3e   : > { %466 = vmatprep.mubr.f32.mxu0 %v7295_v0  ;;  %627 = vmatprep.mubr.f32.mxu1 %v7295_v0  ;;  %201 = vst.msk [vmem:[#allocation4] sm:$0xff] %vm200_vm0, %v7295_v0  ;;  %202 = vst.msk [vmem:[#allocation4 + $0x8] sm:$0xff] %vm200_vm0, %v7295_v0  ;;  %v226_v2 = vld [vmem:[%s4582_s15 + $0x88] sm:$0xff]  ;;  %v228_v5 = vld [vmem:[%s4582_s15 + $0x98] sm:$0xff]  ;;  %s3712_s30 = sshll.u32 %s4432_s12, 10  ;;  %s3471_s18 = scalar_lea.sflag [#allocation7], %s4578_s3 }
  0x3f   : > { %203 = vst.msk [vmem:[#allocation4 + $0x10] sm:$0xff] %vm200_vm0, %v7295_v0  ;;  %204 = vst.msk [vmem:[#allocation4 + $0x18] sm:$0xff] %vm200_vm0, %v7295_v0  ;;  %v3713_v4 = vpack.c.bf16 %v226_v2, %v210_v1  ;;  %v209_v6 = vld [vmem:[%s4582_s15] sm:$0xff]  ;;  %v3729_v8 = vpack.c.bf16 %v228_v5, %v212_v3  ;;  %v211_v10 = vld [vmem:[%s4582_s15 + $0x10] sm:$0xff]  ;;  %s7238_s16 = scalar_lea.hbm %s7293_s2, %s3712_s30  ;;  %p8157_p9 = scmp.ne.s32.totalorder %s7562_s22, 0 }
  0x40   : > { %205 = vst.msk [vmem:[#allocation4 + $0x20] sm:$0xff] %vm200_vm0, %v7295_v0  ;;  %206 = vst.msk [vmem:[#allocation4 + $0x28] sm:$0xff] %vm200_vm0, %v7295_v0  ;;  %v225_v7 = vld [vmem:[%s4582_s15 + $0x80] sm:$0xff]  ;;  %v227_v11 = vld [vmem:[%s4582_s15 + $0x90] sm:$0xff]  ;;  %s4448_s12 = smov [#allocation8]  }
  0x41   : > { %207 = vst.msk [vmem:[#allocation4 + $0x30] sm:$0xff] %vm200_vm0, %v7295_v0  ;;  %208 = vst.msk [vmem:[#allocation4 + $0x38] sm:$0xff] %vm200_vm0, %v7295_v0  ;;  %v3715_v9 = vpack.c.bf16 %v225_v7, %v209_v6  ;;  %v242_v12 = vld [vmem:[%s4582_s15 + $0x108] sm:$0xff]  ;;  %3714 = vmatprep.subr.bf16.mxu0 %v3713_v4  ;;  %v3731_v13 = vpack.c.bf16 %v227_v11, %v211_v10  ;;  %v244_v15 = vld [vmem:[%s4582_s15 + $0x118] sm:$0xff]  ;;  %3730 = vmatprep.subr.bf16.mxu1 %v3729_v8  ;;  %s4362_s20 = sshll.u32 %s4448_s12, 4  ;;  %s4363_s20 = int_to_ptr.vmem [resolvable:$false] %s4362_s20 }
  0x42   : > { %v258_v14 = vld [vmem:[%s4582_s15 + $0x188] sm:$0xff]  ;;  %v260_v16 = vld [vmem:[%s4582_s15 + $0x198] sm:$0xff]  ;;  %v241_v19 = vld [vmem:[%s4582_s15 + $0x100] sm:$0xff]  ;;  %s4364_s25 = scalar_lea.vmem %s4363_s20, 2048 }
  0x43   : > { %3716 = vmatpush1.bf16.msra.mxu0 %v3715_v9  ;;  %v3717_v17 = vpack.c.bf16 %v258_v14, %v242_v12  ;;  %v3733_v18 = vpack.c.bf16 %v260_v16, %v244_v15  ;;  %v257_v20 = vld [vmem:[%s4582_s15 + $0x180] sm:$0xff]  ;;  %v243_v21 = vld [vmem:[%s4582_s15 + $0x110] sm:$0xff]  ;;  %3732 = vmatpush1.bf16.msra.mxu1 %v3731_v13  ;;  %v274_v24 = vld [vmem:[%s4582_s15 + $0x208] sm:$0xff] }
  0x44   : > { %v3719_v22 = vpack.c.bf16 %v257_v20, %v241_v19  ;;  %v259_v23 = vld [vmem:[%s4582_s15 + $0x190] sm:$0xff]  ;;  %v290_v25 = vld [vmem:[%s4582_s15 + $0x288] sm:$0xff]  ;;  %v276_v28 = vld [vmem:[%s4582_s15 + $0x218] sm:$0xff] }
  0x45   : > { %3718 = vmatprep.subr.bf16.mxu0 %v3717_v17  ;;  %3734 = vmatprep.subr.bf16.mxu1 %v3733_v18  ;;  %v3735_v26 = vpack.c.bf16 %v259_v23, %v243_v21  ;;  %v3721_v27 = vpack.c.bf16 %v290_v25, %v274_v24  ;;  %v292_v29 = vld [vmem:[%s4582_s15 + $0x298] sm:$0xff]  ;;  %v273_v30 = vld [vmem:[%s4582_s15 + $0x200] sm:$0xff]  ;;  %v275_v33 = vld [vmem:[%s4582_s15 + $0x210] sm:$0xff] }
  0x46   : > { %v3737_v31 = vpack.c.bf16 %v292_v29, %v276_v28  ;;  %v289_v32 = vld [vmem:[%s4582_s15 + $0x280] sm:$0xff]  ;;  %v291_v34 = vld [vmem:[%s4582_s15 + $0x290] sm:$0xff]  ;;  %v306_v36 = vld [vmem:[%s4582_s15 + $0x308] sm:$0xff] }
  0x47   : > { %3720 = vmatpush1.bf16.msra.mxu0 %v3719_v22  ;;  %v3723_v35 = vpack.c.bf16 %v289_v32, %v273_v30  ;;  %v322_v37 = vld [vmem:[%s4582_s15 + $0x388] sm:$0xff]  ;;  %v308_v38 = vld [vmem:[%s4582_s15 + $0x318] sm:$0xff]  ;;  %3736 = vmatpush1.bf16.msra.mxu1 %v3735_v26  ;;  %v3739_v39 = vpack.c.bf16 %v291_v34, %v275_v33  ;;  %v305_v42 = vld [vmem:[%s4582_s15 + $0x300] sm:$0xff] }
  0x48   : > { %3722 = vmatprep.subr.bf16.mxu0 %v3721_v27  ;;  %v3725_v40 = vpack.c.bf16 %v322_v37, %v306_v36  ;;  %v324_v41 = vld [vmem:[%s4582_s15 + $0x398] sm:$0xff]  ;;  %v321_v43 = vld [vmem:[%s4582_s15 + $0x380] sm:$0xff]  ;;  %3738 = vmatprep.subr.bf16.mxu1 %v3737_v31  ;;  %v307_v45 = vld [vmem:[%s4582_s15 + $0x310] sm:$0xff] }
  0x49   : > { %v3741_v44 = vpack.c.bf16 %v324_v41, %v308_v38  ;;  %v323_v46 = vld [vmem:[%s4582_s15 + $0x390] sm:$0xff]  ;;  %v214_v47 = vld [vmem:[%s4582_s15 + $0x28] sm:$0xff]  ;;  %v3727_v49 = vpack.c.bf16 %v321_v43, %v305_v42  ;;  %v216_v50 = vld [vmem:[%s4582_s15 + $0x38] sm:$0xff] }
  0x4a   : > { %v230_v48 = vld [vmem:[%s4582_s15 + $0xa8] sm:$0xff]  ;;  %v3743_v51 = vpack.c.bf16 %v323_v46, %v307_v45  ;;  %v213_v53 = vld [vmem:[%s4582_s15 + $0x20] sm:$0xff]  ;;  %v232_v55 = vld [vmem:[%s4582_s15 + $0xb8] sm:$0xff] }
  0x4b   : > { %3724 = vmatpush1.bf16.msra.mxu0 %v3723_v35  ;;  %3740 = vmatpush1.bf16.msra.mxu1 %v3739_v39  ;;  %v3745_v52 = vpack.c.bf16 %v230_v48, %v214_v47  ;;  %v229_v54 = vld [vmem:[%s4582_s15 + $0xa0] sm:$0xff]  ;;  %v3761_v56 = vpack.c.bf16 %v232_v55, %v216_v50  ;;  %v215_v57 = vld [vmem:[%s4582_s15 + $0x30] sm:$0xff]  ;;  %v246_v59 = vld [vmem:[%s4582_s15 + $0x128] sm:$0xff] }
  0x4c   : > { %3726 = vmatprep.subr.bf16.mxu0 %v3725_v40  ;;  %3742 = vmatprep.subr.bf16.mxu1 %v3741_v44  ;;  %v231_v58 = vld [vmem:[%s4582_s15 + $0xb0] sm:$0xff]  ;;  %v262_v60 = vld [vmem:[%s4582_s15 + $0x1a8] sm:$0xff]  ;;  %v4651_v61 = vld [vmem:[%s7292_s1] sm:$0xff]  ;;  %v3747_v62 = vpack.c.bf16 %v229_v54, %v213_v53 }
  0x4d   : > { %v248_v63 = vld [vmem:[%s4582_s15 + $0x138] sm:$0xff]  ;;  %v3763_v2 = vpack.c.bf16 %v231_v58, %v215_v57  ;;  %v3749_v3 = vpack.c.bf16 %v262_v60, %v246_v59  ;;  %v245_v4 = vld [vmem:[%s4582_s15 + $0x120] sm:$0xff]  ;;  %v247_v6 = vld [vmem:[%s4582_s15 + $0x130] sm:$0xff] }
  0x4e   : > { %v264_v1 = vld [vmem:[%s4582_s15 + $0x1b8] sm:$0xff]  ;;  %v261_v5 = vld [vmem:[%s4582_s15 + $0x1a0] sm:$0xff]  ;;  %v263_v8 = vld [vmem:[%s4582_s15 + $0x1b0] sm:$0xff] }
  0x4f   : > { %3728 = vmatpush1.bf16.msra.mxu0 %v3727_v49  ;;  %3744 = vmatpush1.bf16.msra.mxu1 %v3743_v51  ;;  %v3765_v7 = vpack.c.bf16 %v264_v1, %v248_v63  ;;  %v278_v9 = vld [vmem:[%s4582_s15 + $0x228] sm:$0xff]  ;;  %v280_v12 = vld [vmem:[%s4582_s15 + $0x238] sm:$0xff]  ;;  %v3751_v13 = vpack.c.bf16 %v261_v5, %v245_v4  ;;  %v3767_v15 = vpack.c.bf16 %v263_v8, %v247_v6  ;;  %v277_v17 = vld [vmem:[%s4582_s15 + $0x220] sm:$0xff] }
  0x50   : > { %3746 = vmatprep.subr.bf16.mxu0 %v3745_v52  ;;  %3762 = vmatprep.subr.bf16.mxu1 %v3761_v56  ;;  %v294_v10 = vld [vmem:[%s4582_s15 + $0x2a8] sm:$0xff]  ;;  %v296_v14 = vld [vmem:[%s4582_s15 + $0x2b8] sm:$0xff]  ;;  %v293_v18 = vld [vmem:[%s4582_s15 + $0x2a0] sm:$0xff] }
  0x51   : > { %v4668_v11 = vld [vmem:[%s7292_s1 + $0x8] sm:$0xff]  ;;  %v3753_v16 = vpack.c.bf16 %v294_v10, %v278_v9  ;;  %v279_v19 = vld [vmem:[%s4582_s15 + $0x230] sm:$0xff]  ;;  %v3769_v20 = vpack.c.bf16 %v296_v14, %v280_v12  ;;  %v312_v25 = vld [vmem:[%s4582_s15 + $0x338] sm:$0xff]  ;;  %v3755_v26 = vpack.c.bf16 %v293_v18, %v277_v17 }
  0x52   : > { %3578 = vmatmul.mubr.msk.f32.vlgmr.msra.gmra.mrb[0].mxu0 %vm200_vm0, %v4651_v61  ;;  %3594 = vmatmul.mubr.msk.f32.vlgmr.msra.gmra.mrb[0].mxu1 %vm200_vm0, %v4651_v61  ;;  %v295_v21 = vld [vmem:[%s4582_s15 + $0x2b0] sm:$0xff]  ;;  %v310_v22 = vld [vmem:[%s4582_s15 + $0x328] sm:$0xff]  ;;  %v328_v27 = vld [vmem:[%s4582_s15 + $0x3b8] sm:$0xff] }
  0x53   : > { %3748 = vmatpush1.bf16.msra.mxu0 %v3747_v62  ;;  %472 = vmatprep.mubr.f32.mxu0 %v7295_v0  ;;  %v326_v23 = vld [vmem:[%s4582_s15 + $0x3a8] sm:$0xff]  ;;  %v4688_v24 = vld [vmem:[%s7292_s1 + $0x10] sm:$0xff]  ;;  %v3771_v28 = vpack.c.bf16 %v295_v21, %v279_v19  ;;  %v309_v30 = vld [vmem:[%s4582_s15 + $0x320] sm:$0xff]  ;;  %v3773_v33 = vpack.c.bf16 %v328_v27, %v312_v25 }
  0x54   : > { %633 = vmatprep.mubr.f32.mxu1 %v7295_v0  ;;  %3764 = vmatpush1.bf16.msra.mxu1 %v3763_v2  ;;  %v3757_v29 = vpack.c.bf16 %v326_v23, %v310_v22  ;;  %v325_v31 = vld [vmem:[%s4582_s15 + $0x3a0] sm:$0xff]  ;;  %v311_v32 = vld [vmem:[%s4582_s15 + $0x330] sm:$0xff]  ;;  %v218_v35 = vld [vmem:[%s4582_s15 + $0x48] sm:$0xff] }
  0x55   : > { %3750 = vmatprep.subr.bf16.mxu0 %v3749_v3  ;;  %3766 = vmatprep.subr.bf16.mxu1 %v3765_v7  ;;  %v327_v34 = vld [vmem:[%s4582_s15 + $0x3b0] sm:$0xff]  ;;  %v234_v36 = vld [vmem:[%s4582_s15 + $0xc8] sm:$0xff]  ;;  %v4707_v37 = vld [vmem:[%s7292_s1 + $0x18] sm:$0xff]  ;;  %v3759_v40 = vpack.c.bf16 %v325_v31, %v309_v30 }
  0x56   : > { %3579 = vmatmul.mubr.msk.f32.gmra.mrb[2].mxu0 %vm200_vm0, %v4668_v11  ;;  %3595 = vmatmul.mubr.msk.f32.gmra.mrb[2].mxu1 %vm200_vm0, %v4668_v11  ;;  %v220_v38 = vld [vmem:[%s4582_s15 + $0x58] sm:$0xff]  ;;  %v3775_v41 = vpack.c.bf16 %v327_v34, %v311_v32  ;;  %v3777_v42 = vpack.c.bf16 %v234_v36, %v218_v35  ;;  %v4720_v44 = vld [vmem:[%s7292_s1 + $0x20] sm:$0xff]  ;;  %v4731_v45 = vld [vmem:[%s7292_s1 + $0x28] sm:$0xff] }
  0x57   : > { %478 = vmatprep.mubr.f32.mxu0 %v7295_v0  ;;  %639 = vmatprep.mubr.f32.mxu1 %v7295_v0  ;;  %v236_v39 = vld [vmem:[%s4582_s15 + $0xd8] sm:$0xff]  ;;  %v4742_v46 = vld [vmem:[%s7292_s1 + $0x30] sm:$0xff]  ;;  %v4764_v48 = vld [vmem:[%s7292_s1 + $0x40] sm:$0xff] }
  0x58   : > { %3752 = vmatpush1.bf16.msra.mxu0 %v3751_v13  ;;  %3768 = vmatpush1.bf16.msra.mxu1 %v3767_v15  ;;  %v3793_v43 = vpack.c.bf16 %v236_v39, %v220_v38  ;;  %v4753_v47 = vld [vmem:[%s7292_s1 + $0x38] sm:$0xff]  ;;  %v4775_v49 = vld [vmem:[%s7292_s1 + $0x48] sm:$0xff]  ;;  %v4786_v50 = vld [vmem:[%s7292_s1 + $0x50] sm:$0xff] }
  0x59   : > { %3754 = vmatprep.subr.bf16.mxu0 %v3753_v16  ;;  %3770 = vmatprep.subr.bf16.mxu1 %v3769_v20  ;;  %v4797_v51 = vld [vmem:[%s7292_s1 + $0x58] sm:$0xff]  ;;  %v4808_v52 = vld [vmem:[%s7292_s1 + $0x60] sm:$0xff]  ;;  %v4819_v53 = vld [vmem:[%s7292_s1 + $0x68] sm:$0xff] }
  0x5a   : > { %3580 = vmatmul.mubr.msk.f32.gmra.mrb[4].mxu0 %vm200_vm0, %v4688_v24  ;;  %3596 = vmatmul.mubr.msk.f32.gmra.mrb[4].mxu1 %vm200_vm0, %v4688_v24  ;;  %v4830_v54 = vld [vmem:[%s7292_s1 + $0x70] sm:$0xff]  ;;  %v4841_v55 = vld [vmem:[%s7292_s1 + $0x78] sm:$0xff]  ;;  %v217_v56 = vld [vmem:[%s4582_s15 + $0x40] sm:$0xff] }
  0x5b   : > { %484 = vmatprep.mubr.f32.mxu0 %v7295_v0  ;;  %645 = vmatprep.mubr.f32.mxu1 %v7295_v0  ;;  %v233_v57 = vld [vmem:[%s4582_s15 + $0xc0] sm:$0xff]  ;;  %v219_v58 = vld [vmem:[%s4582_s15 + $0x50] sm:$0xff]  ;;  %v250_v60 = vld [vmem:[%s4582_s15 + $0x148] sm:$0xff] }
  0x5c   : > { %3756 = vmatpush1.bf16.msra.mxu0 %v3755_v26  ;;  %3772 = vmatpush1.bf16.msra.mxu1 %v3771_v28  ;;  %v235_v59 = vld [vmem:[%s4582_s15 + $0xd0] sm:$0xff]  ;;  %v266_v62 = vld [vmem:[%s4582_s15 + $0x1c8] sm:$0xff]  ;;  %v3779_v63 = vpack.c.bf16 %v233_v57, %v217_v56  ;;  %v252_v1 = vld [vmem:[%s4582_s15 + $0x158] sm:$0xff] }
  0x5d   : > { %3758 = vmatprep.subr.bf16.mxu0 %v3757_v29  ;;  %3774 = vmatprep.subr.bf16.mxu1 %v3773_v33  ;;  %v268_v2 = vld [vmem:[%s4582_s15 + $0x1d8] sm:$0xff]  ;;  %v3795_v3 = vpack.c.bf16 %v235_v59, %v219_v58  ;;  %v3781_v4 = vpack.c.bf16 %v266_v62, %v250_v60  ;;  %v249_v5 = vld [vmem:[%s4582_s15 + $0x140] sm:$0xff]  ;;  %v251_v7 = vld [vmem:[%s4582_s15 + $0x150] sm:$0xff] }
  0x5e   : > { %3581 = vmatmul.mubr.msk.f32.gmra.mrb[6].mxu0 %vm200_vm0, %v4707_v37  ;;  %3597 = vmatmul.mubr.msk.f32.gmra.mrb[6].mxu1 %vm200_vm0, %v4707_v37  ;;  %v265_v6 = vld [vmem:[%s4582_s15 + $0x1c0] sm:$0xff]  ;;  %v3797_v8 = vpack.c.bf16 %v268_v2, %v252_v1  ;;  %v267_v9 = vld [vmem:[%s4582_s15 + $0x1d0] sm:$0xff]  ;;  %v282_v10 = vld [vmem:[%s4582_s15 + $0x248] sm:$0xff] }
  0x5f   : > { %490 = vmatprep.mubr.f32.mxu0 %v7295_v0  ;;  %651 = vmatprep.mubr.f32.mxu1 %v7295_v0  ;;  %v298_v12 = vld [vmem:[%s4582_s15 + $0x2c8] sm:$0xff]  ;;  %v284_v13 = vld [vmem:[%s4582_s15 + $0x258] sm:$0xff]  ;;  %v3783_v15 = vpack.c.bf16 %v265_v6, %v249_v5  ;;  %v3799_v16 = vpack.c.bf16 %v267_v9, %v251_v7  ;;  %v281_v18 = vld [vmem:[%s4582_s15 + $0x240] sm:$0xff] }
  0x60   : > { %3760 = vmatpush1.bf16.msra.mxu0 %v3759_v40  ;;  %3776 = vmatpush1.bf16.msra.mxu1 %v3775_v41  ;;  %v300_v14 = vld [vmem:[%s4582_s15 + $0x2d8] sm:$0xff]  ;;  %v3785_v17 = vpack.c.bf16 %v298_v12, %v282_v10  ;;  %v297_v19 = vld [vmem:[%s4582_s15 + $0x2c0] sm:$0xff]  ;;  %v283_v20 = vld [vmem:[%s4582_s15 + $0x250] sm:$0xff] }
  0x61   : > { %3778 = vmatprep.subr.bf16.mxu0 %v3777_v42  ;;  %3794 = vmatprep.subr.bf16.mxu1 %v3793_v43  ;;  %v3801_v21 = vpack.c.bf16 %v300_v14, %v284_v13  ;;  %v299_v22 = vld [vmem:[%s4582_s15 + $0x2d0] sm:$0xff]  ;;  %v314_v23 = vld [vmem:[%s4582_s15 + $0x348] sm:$0xff]  ;;  %v316_v26 = vld [vmem:[%s4582_s15 + $0x358] sm:$0xff]  ;;  %v3787_v28 = vpack.c.bf16 %v297_v19, %v281_v18 }
  0x62   : > { %3582 = vmatmul.mubr.msk.f32.gmra.mrb[8].mxu0 %vm200_vm0, %v4720_v44  ;;  %3598 = vmatmul.mubr.msk.f32.gmra.mrb[8].mxu1 %vm200_vm0, %v4720_v44  ;;  %v330_v25 = vld [vmem:[%s4582_s15 + $0x3c8] sm:$0xff]  ;;  %v332_v27 = vld [vmem:[%s4582_s15 + $0x3d8] sm:$0xff]  ;;  %v3803_v29 = vpack.c.bf16 %v299_v22, %v283_v20  ;;  %v313_v31 = vld [vmem:[%s4582_s15 + $0x340] sm:$0xff] }
  0x63   : > { %496 = vmatprep.mubr.f32.mxu0 %v7295_v0  ;;  %657 = vmatprep.mubr.f32.mxu1 %v7295_v0  ;;  %v3789_v30 = vpack.c.bf16 %v330_v25, %v314_v23  ;;  %v329_v32 = vld [vmem:[%s4582_s15 + $0x3c0] sm:$0xff]  ;;  %v315_v33 = vld [vmem:[%s4582_s15 + $0x350] sm:$0xff]  ;;  %v3805_v34 = vpack.c.bf16 %v332_v27, %v316_v26  ;;  %v222_v36 = vld [vmem:[%s4582_s15 + $0x68] sm:$0xff] }
  0x64   : > { %v331_v35 = vld [vmem:[%s4582_s15 + $0x3d0] sm:$0xff]  ;;  %v238_v38 = vld [vmem:[%s4582_s15 + $0xe8] sm:$0xff]  ;;  %v224_v39 = vld [vmem:[%s4582_s15 + $0x78] sm:$0xff]  ;;  %v3791_v41 = vpack.c.bf16 %v329_v32, %v313_v31 }
  0x65   : > { %v240_v40 = vld [vmem:[%s4582_s15 + $0xf8] sm:$0xff]  ;;  %v3807_v42 = vpack.c.bf16 %v331_v35, %v315_v33  ;;  %v3809_v43 = vpack.c.bf16 %v238_v38, %v222_v36  ;;  %v221_v57 = vld [vmem:[%s4582_s15 + $0x60] sm:$0xff]  ;;  %v223_v59 = vld [vmem:[%s4582_s15 + $0x70] sm:$0xff] }
  0x66   : > { %3583 = vmatmul.mubr.msk.f32.gmra.mrb[10].mxu0 %vm200_vm0, %v4731_v45  ;;  %3599 = vmatmul.mubr.msk.f32.gmra.mrb[10].mxu1 %vm200_vm0, %v4731_v45  ;;  %v3825_v56 = vpack.c.bf16 %v240_v40, %v224_v39  ;;  %v237_v58 = vld [vmem:[%s4582_s15 + $0xe0] sm:$0xff]  ;;  %v239_v60 = vld [vmem:[%s4582_s15 + $0xf0] sm:$0xff]  ;;  %v254_v62 = vld [vmem:[%s4582_s15 + $0x168] sm:$0xff] }
  0x67   : > { %502 = vmatprep.mubr.f32.mxu0 %v7295_v0  ;;  %663 = vmatprep.mubr.f32.mxu1 %v7295_v0  ;;  %v3811_v1 = vpack.c.bf16 %v237_v58, %v221_v57  ;;  %v256_v2 = vld [vmem:[%s4582_s15 + $0x178] sm:$0xff]  ;;  %v253_v6 = vld [vmem:[%s4582_s15 + $0x160] sm:$0xff]  ;;  %v271_v10 = vld [vmem:[%s4582_s15 + $0x1f0] sm:$0xff] }
  0x68   : > { %v269_v7 = vld [vmem:[%s4582_s15 + $0x1e0] sm:$0xff]  ;;  %v286_v12 = vld [vmem:[%s4582_s15 + $0x268] sm:$0xff]  ;;  %v288_v14 = vld [vmem:[%s4582_s15 + $0x278] sm:$0xff] }
  0x69   : > { %v302_v13 = vld [vmem:[%s4582_s15 + $0x2e8] sm:$0xff]  ;;  %v285_v19 = vld [vmem:[%s4582_s15 + $0x260] sm:$0xff]  ;;  %v303_v23 = vld [vmem:[%s4582_s15 + $0x2f0] sm:$0xff] }
  0x6a   : > { %3584 = vmatmul.mubr.msk.f32.gmra.mrb[12].mxu0 %vm200_vm0, %v4742_v46  ;;  %3600 = vmatmul.mubr.msk.f32.gmra.mrb[12].mxu1 %vm200_vm0, %v4742_v46  ;;  %v3817_v18 = vpack.c.bf16 %v302_v13, %v286_v12  ;;  %v301_v20 = vld [vmem:[%s4582_s15 + $0x2e0] sm:$0xff]  ;;  %v318_v25 = vld [vmem:[%s4582_s15 + $0x368] sm:$0xff]  ;;  %v320_v27 = vld [vmem:[%s4582_s15 + $0x378] sm:$0xff] }
  0x6b   : > { %508 = vmatprep.mubr.f32.mxu0 %v7295_v0  ;;  %669 = vmatprep.mubr.f32.mxu1 %v7295_v0  ;;  %v334_v26 = vld [vmem:[%s4582_s15 + $0x3e8] sm:$0xff]  ;;  %v317_v32 = vld [vmem:[%s4582_s15 + $0x360] sm:$0xff]  ;;  %v319_v35 = vld [vmem:[%s4582_s15 + $0x370] sm:$0xff] }
  0x6c   : > { %v3821_v31 = vpack.c.bf16 %v334_v26, %v318_v25  ;;  %v333_v33 = vld [vmem:[%s4582_s15 + $0x3e0] sm:$0xff]  ;;  %v335_v36 = vld [vmem:[%s4582_s15 + $0x3f0] sm:$0xff] }
  0x6d   : > { %v3823_v38 = vpack.c.bf16 %v333_v33, %v317_v32  ;;  %v3839_v39 = vpack.c.bf16 %v335_v36, %v319_v35 }
  0x6e   : > { %3585 = vmatmul.mubr.msk.f32.gmra.mrb[14].mxu0 %vm200_vm0, %v4753_v47  ;;  %3601 = vmatmul.mubr.msk.f32.gmra.mrb[14].mxu1 %vm200_vm0, %v4753_v47 }
  0x6f   : > { %514 = vmatprep.mubr.f32.mxu0 %v7295_v0  ;;  %675 = vmatprep.mubr.f32.mxu1 %v7295_v0 }
  0x72   : > { %3586 = vmatmul.mubr.msk.f32.gmra.mrb[16].mxu0 %vm200_vm0, %v4764_v48  ;;  %3602 = vmatmul.mubr.msk.f32.gmra.mrb[16].mxu1 %vm200_vm0, %v4764_v48 }
  0x73   : > { %520 = vmatprep.mubr.f32.mxu0 %v7295_v0  ;;  %681 = vmatprep.mubr.f32.mxu1 %v7295_v0 }
  0x76   : > { %3587 = vmatmul.mubr.msk.f32.gmra.mrb[18].mxu0 %vm200_vm0, %v4775_v49  ;;  %3603 = vmatmul.mubr.msk.f32.gmra.mrb[18].mxu1 %vm200_vm0, %v4775_v49 }
  0x77   : > { %526 = vmatprep.mubr.f32.mxu0 %v7295_v0  ;;  %687 = vmatprep.mubr.f32.mxu1 %v7295_v0 }
  0x7a   : > { %3588 = vmatmul.mubr.msk.f32.gmra.mrb[20].mxu0 %vm200_vm0, %v4786_v50  ;;  %3604 = vmatmul.mubr.msk.f32.gmra.mrb[20].mxu1 %vm200_vm0, %v4786_v50 }
  0x7b   : > { %532 = vmatprep.mubr.f32.mxu0 %v7295_v0  ;;  %693 = vmatprep.mubr.f32.mxu1 %v7295_v0 }
  0x7e   : > { %3589 = vmatmul.mubr.msk.f32.gmra.mrb[22].mxu0 %vm200_vm0, %v4797_v51  ;;  %3605 = vmatmul.mubr.msk.f32.gmra.mrb[22].mxu1 %vm200_vm0, %v4797_v51 }
  0x7f   : > { %538 = vmatprep.mubr.f32.mxu0 %v7295_v0  ;;  %699 = vmatprep.mubr.f32.mxu1 %v7295_v0 }
  0x82   : > { %3590 = vmatmul.mubr.msk.f32.gmra.mrb[24].mxu0 %vm200_vm0, %v4808_v52  ;;  %3606 = vmatmul.mubr.msk.f32.gmra.mrb[24].mxu1 %vm200_vm0, %v4808_v52 }
  0x83   : > { %544 = vmatprep.mubr.f32.mxu0 %v7295_v0  ;;  %705 = vmatprep.mubr.f32.mxu1 %v7295_v0 }
  0x86   : > { %3591 = vmatmul.mubr.msk.f32.gmra.mrb[26].mxu0 %vm200_vm0, %v4819_v53  ;;  %3607 = vmatmul.mubr.msk.f32.gmra.mrb[26].mxu1 %vm200_vm0, %v4819_v53 }
  0x87   : > { %550 = vmatprep.mubr.f32.mxu0 %v7295_v0  ;;  %711 = vmatprep.mubr.f32.mxu1 %v7295_v0 }
  0x8a   : > { %3592 = vmatmul.mubr.msk.f32.gmra.mrb[28].mxu0 %vm200_vm0, %v4830_v54  ;;  %3608 = vmatmul.mubr.msk.f32.gmra.mrb[28].mxu1 %vm200_vm0, %v4830_v54 }
  0x8b   : > { %556 = vmatprep.mubr.f32.mxu0 %v7295_v0  ;;  %717 = vmatprep.mubr.f32.mxu1 %v7295_v0 }
  0x8e   : > { %3593 = vmatmul.mubr.msk.f32.gmra.mrb[30].mxu0 %vm200_vm0, %v4841_v55  ;;  %3609 = vmatmul.mubr.msk.f32.gmra.mrb[30].mxu1 %vm200_vm0, %v4841_v55 }
  0x8f   : > { %788 = vmatprep.mubr.f32.mxu0 %v7295_v0  ;;  %949 = vmatprep.mubr.f32.mxu1 %v7295_v0 }
  0x92   : > { %3610 = vmatmul.mubr.msk.f32.vlgmr.msra.gmra.mrb[32].mxu0 %vm200_vm0, %v4651_v61  ;;  %3626 = vmatmul.mubr.msk.f32.vlgmr.msra.gmra.mrb[32].mxu1 %vm200_vm0, %v4651_v61 }
  0x93   : > { %3780 = vmatpush1.bf16.msra.mxu0 %v3779_v63  ;;  %794 = vmatprep.mubr.f32.mxu0 %v7295_v0  ;;  %v270_v63 = vld [vmem:[%s4582_s15 + $0x1e8] sm:$0xff] }
  0x94   : > { %955 = vmatprep.mubr.f32.mxu1 %v7295_v0  ;;  %3796 = vmatpush1.bf16.msra.mxu1 %v3795_v3  ;;  %v272_v3 = vld [vmem:[%s4582_s15 + $0x1f8] sm:$0xff]  ;;  %v3813_v5 = vpack.c.bf16 %v270_v63, %v254_v62 }
  0x95   : > { %3782 = vmatprep.subr.bf16.mxu0 %v3781_v4  ;;  %3798 = vmatprep.subr.bf16.mxu1 %v3797_v8  ;;  %v3827_v4 = vpack.c.bf16 %v239_v60, %v223_v59  ;;  %v255_v8 = vld [vmem:[%s4582_s15 + $0x170] sm:$0xff]  ;;  %v3829_v9 = vpack.c.bf16 %v272_v3, %v256_v2 }
  0x96   : > { %3611 = vmatmul.mubr.msk.f32.gmra.mrb[34].mxu0 %vm200_vm0, %v4668_v11  ;;  %3627 = vmatmul.mubr.msk.f32.gmra.mrb[34].mxu1 %vm200_vm0, %v4668_v11 }
  0x97   : > { %800 = vmatprep.mubr.f32.mxu0 %v7295_v0  ;;  %961 = vmatprep.mubr.f32.mxu1 %v7295_v0 }
  0x98   : > { %3784 = vmatpush1.bf16.msra.mxu0 %v3783_v15  ;;  %3800 = vmatpush1.bf16.msra.mxu1 %v3799_v16  ;;  %v304_v15 = vld [vmem:[%s4582_s15 + $0x2f8] sm:$0xff]  ;;  %v3815_v16 = vpack.c.bf16 %v269_v7, %v253_v6 }
  0x99   : > { %3786 = vmatprep.subr.bf16.mxu0 %v3785_v17  ;;  %3802 = vmatprep.subr.bf16.mxu1 %v3801_v21  ;;  %v3831_v17 = vpack.c.bf16 %v271_v10, %v255_v8  ;;  %v287_v21 = vld [vmem:[%s4582_s15 + $0x270] sm:$0xff]  ;;  %v3833_v22 = vpack.c.bf16 %v304_v15, %v288_v14 }
  0x9a   : > { %3612 = vmatmul.mubr.msk.f32.gmra.mrb[36].mxu0 %vm200_vm0, %v4688_v24  ;;  %3628 = vmatmul.mubr.msk.f32.gmra.mrb[36].mxu1 %vm200_vm0, %v4688_v24 }
  0x9b   : > { %806 = vmatprep.mubr.f32.mxu0 %v7295_v0  ;;  %967 = vmatprep.mubr.f32.mxu1 %v7295_v0 }
  0x9c   : > { %3788 = vmatpush1.bf16.msra.mxu0 %v3787_v28  ;;  %3804 = vmatpush1.bf16.msra.mxu1 %v3803_v29  ;;  %v336_v28 = vld [vmem:[%s4582_s15 + $0x3f8] sm:$0xff]  ;;  %v3819_v29 = vpack.c.bf16 %v301_v20, %v285_v19  ;;  %s3577_s15 = sshll.u32 %s4578_s3, 6 }
  0x9d   : > { %3790 = vmatprep.subr.bf16.mxu0 %v3789_v30  ;;  %3806 = vmatprep.subr.bf16.mxu1 %v3805_v34  ;;  %v3835_v30 = vpack.c.bf16 %v303_v23, %v287_v21  ;;  %v3837_v34 = vpack.c.bf16 %v336_v28, %v320_v27  ;;  %s7207_s21 = scalar_lea.vmem [#allocation8], %s3577_s15 }
  0x9e   : > { %3613 = vmatmul.mubr.msk.f32.gmra.mrb[38].mxu0 %vm200_vm0, %v4707_v37  ;;  %3629 = vmatmul.mubr.msk.f32.gmra.mrb[38].mxu1 %vm200_vm0, %v4707_v37  ;;  %s3484_s4 = sshll.u32 %s7207_s21, 4  ;;  %s7240_s4 = int_to_ptr.vmem [resolvable:$true] %s3484_s4 }
  0x9f   : > { %812 = vmatprep.mubr.f32.mxu0 %v7295_v0  ;;  %973 = vmatprep.mubr.f32.mxu1 %v7295_v0  ;;  %s4358_s19 = scalar_lea.vmem %s7240_s4, 1024  ;;  %p4365_p6 = scmp.lt.s32.totalorder %s7240_s4, %s4363_s20 }
  0xa0   : > { %3792 = vmatpush1.bf16.msra.mxu0 %v3791_v41  ;;  %3808 = vmatpush1.bf16.msra.mxu1 %v3807_v42  ;;  %p4359_p8 = scmp.ne.s32.totalorder %s7240_s4, %s4358_s19  ;;  %p4366_p13 = scmp.lt.s32.totalorder %s4364_s25, %s4358_s19 }
  0xa1   : > { %3810 = vmatprep.subr.bf16.mxu0 %v3809_v43  ;;  %3826 = vmatprep.subr.bf16.mxu1 %v3825_v56 }
  0xa2   : > { %3614 = vmatmul.mubr.msk.f32.gmra.mrb[40].mxu0 %vm200_vm0, %v4720_v44  ;;  %3630 = vmatmul.mubr.msk.f32.gmra.mrb[40].mxu1 %vm200_vm0, %v4720_v44  ;;  %p4360_p11 = pnand %p4359_p8, %p8157_p9  ;;  %p4367_p2 = por %p4366_p13, %p4365_p6 }
  0xa3   : > { %818 = vmatprep.mubr.f32.mxu0 %v7295_v0  ;;  %979 = vmatprep.mubr.f32.mxu1 %v7295_v0 }
  0xa4   : > { %p4361_p0 = pneg %p4360_p11 }
  0xa6   : > { %3615 = vmatmul.mubr.msk.f32.gmra.mrb[42].mxu0 %vm200_vm0, %v4731_v45  ;;  %3631 = vmatmul.mubr.msk.f32.gmra.mrb[42].mxu1 %vm200_vm0, %v4731_v45  ;;  %p4368_p5 = pnand %p4367_p2, %p4361_p0 }
  0xa7   : > { %824 = vmatprep.mubr.f32.mxu0 %v7295_v0  ;;  %985 = vmatprep.mubr.f32.mxu1 %v7295_v0 }
  0xaa   : > { %3616 = vmatmul.mubr.msk.f32.gmra.mrb[44].mxu0 %vm200_vm0, %v4742_v46  ;;  %3632 = vmatmul.mubr.msk.f32.gmra.mrb[44].mxu1 %vm200_vm0, %v4742_v46 }
  0xab   : > { %830 = vmatprep.mubr.f32.mxu0 %v7295_v0  ;;  %991 = vmatprep.mubr.f32.mxu1 %v7295_v0 }
  0xae   : > { %3617 = vmatmul.mubr.msk.f32.gmra.mrb[46].mxu0 %vm200_vm0, %v4753_v47  ;;  %3633 = vmatmul.mubr.msk.f32.gmra.mrb[46].mxu1 %vm200_vm0, %v4753_v47 }
  0xaf   : > { %836 = vmatprep.mubr.f32.mxu0 %v7295_v0  ;;  %997 = vmatprep.mubr.f32.mxu1 %v7295_v0 }
  0xb2   : > { %3618 = vmatmul.mubr.msk.f32.gmra.mrb[48].mxu0 %vm200_vm0, %v4764_v48  ;;  %3634 = vmatmul.mubr.msk.f32.gmra.mrb[48].mxu1 %vm200_vm0, %v4764_v48 }
  0xb3   : > { %842 = vmatprep.mubr.f32.mxu0 %v7295_v0  ;;  %1003 = vmatprep.mubr.f32.mxu1 %v7295_v0 }
  0xb6   : > { %3619 = vmatmul.mubr.msk.f32.gmra.mrb[50].mxu0 %vm200_vm0, %v4775_v49  ;;  %3635 = vmatmul.mubr.msk.f32.gmra.mrb[50].mxu1 %vm200_vm0, %v4775_v49 }
  0xb7   : > { %848 = vmatprep.mubr.f32.mxu0 %v7295_v0  ;;  %1009 = vmatprep.mubr.f32.mxu1 %v7295_v0 }
  0xba   : > { %3620 = vmatmul.mubr.msk.f32.gmra.mrb[52].mxu0 %vm200_vm0, %v4786_v50  ;;  %3636 = vmatmul.mubr.msk.f32.gmra.mrb[52].mxu1 %vm200_vm0, %v4786_v50 }
  0xbb   : > { %854 = vmatprep.mubr.f32.mxu0 %v7295_v0  ;;  %1015 = vmatprep.mubr.f32.mxu1 %v7295_v0 }
  0xbe   : > { %3621 = vmatmul.mubr.msk.f32.gmra.mrb[54].mxu0 %vm200_vm0, %v4797_v51  ;;  %3637 = vmatmul.mubr.msk.f32.gmra.mrb[54].mxu1 %vm200_vm0, %v4797_v51 }
  0xbf   : > { %860 = vmatprep.mubr.f32.mxu0 %v7295_v0  ;;  %1021 = vmatprep.mubr.f32.mxu1 %v7295_v0 }
  0xc2   : > { %3622 = vmatmul.mubr.msk.f32.gmra.mrb[56].mxu0 %vm200_vm0, %v4808_v52  ;;  %3638 = vmatmul.mubr.msk.f32.gmra.mrb[56].mxu1 %vm200_vm0, %v4808_v52 }
  0xc3   : > { %866 = vmatprep.mubr.f32.mxu0 %v7295_v0  ;;  %1027 = vmatprep.mubr.f32.mxu1 %v7295_v0 }
  0xc6   : > { %3623 = vmatmul.mubr.msk.f32.gmra.mrb[58].mxu0 %vm200_vm0, %v4819_v53  ;;  %3639 = vmatmul.mubr.msk.f32.gmra.mrb[58].mxu1 %vm200_vm0, %v4819_v53 }
  0xc7   : > { %872 = vmatprep.mubr.f32.mxu0 %v7295_v0  ;;  %1033 = vmatprep.mubr.f32.mxu1 %v7295_v0 }
  0xca   : > { %3624 = vmatmul.mubr.msk.f32.gmra.mrb[60].mxu0 %vm200_vm0, %v4830_v54  ;;  %3640 = vmatmul.mubr.msk.f32.gmra.mrb[60].mxu1 %vm200_vm0, %v4830_v54 }
  0xcb   : > { %878 = vmatprep.mubr.f32.mxu0 %v7295_v0  ;;  %1039 = vmatprep.mubr.f32.mxu1 %v7295_v0 }
  0xce   : > { %3625 = vmatmul.mubr.msk.f32.gmra.mrb[62].mxu0 %vm200_vm0, %v4841_v55  ;;  %3641 = vmatmul.mubr.msk.f32.gmra.mrb[62].mxu1 %vm200_vm0, %v4841_v55 }
  0xcf   : > { %1110 = vmatprep.mubr.f32.mxu0 %v7295_v0  ;;  %1271 = vmatprep.mubr.f32.mxu1 %v7295_v0 }
  0xd2   : > { %3642 = vmatmul.mubr.msk.f32.vlgmr.msra.gmra.mrb[64].mxu0 %vm200_vm0, %v4651_v61  ;;  %3658 = vmatmul.mubr.msk.f32.vlgmr.msra.gmra.mrb[64].mxu1 %vm200_vm0, %v4651_v61 }
  0xd3   : > { %3812 = vmatpush1.bf16.msra.mxu0 %v3811_v1  ;;  %1116 = vmatprep.mubr.f32.mxu0 %v7295_v0 }
  0xd4   : > { %1277 = vmatprep.mubr.f32.mxu1 %v7295_v0  ;;  %3828 = vmatpush1.bf16.msra.mxu1 %v3827_v4 }
  0xd5   : > { %3814 = vmatprep.subr.bf16.mxu0 %v3813_v5  ;;  %3830 = vmatprep.subr.bf16.mxu1 %v3829_v9 }
  0xd6   : > { %3643 = vmatmul.mubr.msk.f32.gmra.mrb[66].mxu0 %vm200_vm0, %v4668_v11  ;;  %3659 = vmatmul.mubr.msk.f32.gmra.mrb[66].mxu1 %vm200_vm0, %v4668_v11 }
  0xd7   : > { %1122 = vmatprep.mubr.f32.mxu0 %v7295_v0  ;;  %1283 = vmatprep.mubr.f32.mxu1 %v7295_v0 }
  0xd8   : > { %3816 = vmatpush1.bf16.msra.mxu0 %v3815_v16  ;;  %3832 = vmatpush1.bf16.msra.mxu1 %v3831_v17 }
  0xd9   : > { %3818 = vmatprep.subr.bf16.mxu0 %v3817_v18  ;;  %3834 = vmatprep.subr.bf16.mxu1 %v3833_v22 }
  0xda   : > { %3644 = vmatmul.mubr.msk.f32.gmra.mrb[68].mxu0 %vm200_vm0, %v4688_v24  ;;  %3660 = vmatmul.mubr.msk.f32.gmra.mrb[68].mxu1 %vm200_vm0, %v4688_v24 }
  0xdb   : > { %1128 = vmatprep.mubr.f32.mxu0 %v7295_v0  ;;  %1289 = vmatprep.mubr.f32.mxu1 %v7295_v0 }
  0xdc   : > { %3820 = vmatpush1.bf16.msra.mxu0 %v3819_v29  ;;  %3836 = vmatpush1.bf16.msra.mxu1 %v3835_v30 }
  0xdd   : > { %3822 = vmatprep.subr.bf16.mxu0 %v3821_v31  ;;  %3838 = vmatprep.subr.bf16.mxu1 %v3837_v34 }
  0xde   : > { %3645 = vmatmul.mubr.msk.f32.gmra.mrb[70].mxu0 %vm200_vm0, %v4707_v37  ;;  %3661 = vmatmul.mubr.msk.f32.gmra.mrb[70].mxu1 %vm200_vm0, %v4707_v37 }
  0xdf   : > { %1134 = vmatprep.mubr.f32.mxu0 %v7295_v0  ;;  %1295 = vmatprep.mubr.f32.mxu1 %v7295_v0 }
  0xe0   : > { %3824 = vmatpush1.bf16.msra.mxu0 %v3823_v38  ;;  %3840 = vmatpush1.bf16.msra.mxu1 %v3839_v39 }
  0xe2   : > { %3646 = vmatmul.mubr.msk.f32.gmra.mrb[72].mxu0 %vm200_vm0, %v4720_v44  ;;  %3662 = vmatmul.mubr.msk.f32.gmra.mrb[72].mxu1 %vm200_vm0, %v4720_v44 }
  0xe3   : > { %1140 = vmatprep.mubr.f32.mxu0 %v7295_v0  ;;  %1301 = vmatprep.mubr.f32.mxu1 %v7295_v0 }
  0xe6   : > { %3647 = vmatmul.mubr.msk.f32.gmra.mrb[74].mxu0 %vm200_vm0, %v4731_v45  ;;  %3663 = vmatmul.mubr.msk.f32.gmra.mrb[74].mxu1 %vm200_vm0, %v4731_v45 }
  0xe7   : > { %1146 = vmatprep.mubr.f32.mxu0 %v7295_v0  ;;  %1307 = vmatprep.mubr.f32.mxu1 %v7295_v0 }
  0xea   : > { %3648 = vmatmul.mubr.msk.f32.gmra.mrb[76].mxu0 %vm200_vm0, %v4742_v46  ;;  %3664 = vmatmul.mubr.msk.f32.gmra.mrb[76].mxu1 %vm200_vm0, %v4742_v46 }
  0xeb   : > { %1152 = vmatprep.mubr.f32.mxu0 %v7295_v0  ;;  %1313 = vmatprep.mubr.f32.mxu1 %v7295_v0 }
  0xee   : > { %3649 = vmatmul.mubr.msk.f32.gmra.mrb[78].mxu0 %vm200_vm0, %v4753_v47  ;;  %3665 = vmatmul.mubr.msk.f32.gmra.mrb[78].mxu1 %vm200_vm0, %v4753_v47 }
  0xef   : > { %1158 = vmatprep.mubr.f32.mxu0 %v7295_v0  ;;  %1319 = vmatprep.mubr.f32.mxu1 %v7295_v0 }
  0xf2   : > { %3650 = vmatmul.mubr.msk.f32.gmra.mrb[80].mxu0 %vm200_vm0, %v4764_v48  ;;  %3666 = vmatmul.mubr.msk.f32.gmra.mrb[80].mxu1 %vm200_vm0, %v4764_v48 }
  0xf3   : > { %1164 = vmatprep.mubr.f32.mxu0 %v7295_v0  ;;  %1325 = vmatprep.mubr.f32.mxu1 %v7295_v0 }
  0xf6   : > { %3651 = vmatmul.mubr.msk.f32.gmra.mrb[82].mxu0 %vm200_vm0, %v4775_v49  ;;  %3667 = vmatmul.mubr.msk.f32.gmra.mrb[82].mxu1 %vm200_vm0, %v4775_v49 }
  0xf7   : > { %1170 = vmatprep.mubr.f32.mxu0 %v7295_v0  ;;  %1331 = vmatprep.mubr.f32.mxu1 %v7295_v0 }
  0xfa   : > { %3652 = vmatmul.mubr.msk.f32.gmra.mrb[84].mxu0 %vm200_vm0, %v4786_v50  ;;  %3668 = vmatmul.mubr.msk.f32.gmra.mrb[84].mxu1 %vm200_vm0, %v4786_v50 }
  0xfb   : > { %1176 = vmatprep.mubr.f32.mxu0 %v7295_v0  ;;  %1337 = vmatprep.mubr.f32.mxu1 %v7295_v0 }
  0xfe   : > { %3653 = vmatmul.mubr.msk.f32.gmra.mrb[86].mxu0 %vm200_vm0, %v4797_v51  ;;  %3669 = vmatmul.mubr.msk.f32.gmra.mrb[86].mxu1 %vm200_vm0, %v4797_v51 }
  0xff   : > { %1182 = vmatprep.mubr.f32.mxu0 %v7295_v0  ;;  %1343 = vmatprep.mubr.f32.mxu1 %v7295_v0 }
 0x102   : > { %3654 = vmatmul.mubr.msk.f32.gmra.mrb[88].mxu0 %vm200_vm0, %v4808_v52  ;;  %3670 = vmatmul.mubr.msk.f32.gmra.mrb[88].mxu1 %vm200_vm0, %v4808_v52 }
 0x103   : > { %1188 = vmatprep.mubr.f32.mxu0 %v7295_v0  ;;  %1349 = vmatprep.mubr.f32.mxu1 %v7295_v0 }
 0x106   : > { %3655 = vmatmul.mubr.msk.f32.gmra.mrb[90].mxu0 %vm200_vm0, %v4819_v53  ;;  %3671 = vmatmul.mubr.msk.f32.gmra.mrb[90].mxu1 %vm200_vm0, %v4819_v53 }
 0x107   : > { %1194 = vmatprep.mubr.f32.mxu0 %v7295_v0  ;;  %1355 = vmatprep.mubr.f32.mxu1 %v7295_v0 }
 0x10a   : > { %3656 = vmatmul.mubr.msk.f32.gmra.mrb[92].mxu0 %vm200_vm0, %v4830_v54  ;;  %3672 = vmatmul.mubr.msk.f32.gmra.mrb[92].mxu1 %vm200_vm0, %v4830_v54 }
 0x10b   : > { %1200 = vmatprep.mubr.f32.mxu0 %v7295_v0  ;;  %1361 = vmatprep.mubr.f32.mxu1 %v7295_v0 }
 0x10e   : > { %3657 = vmatmul.mubr.msk.f32.gmra.mrb[94].mxu0 %vm200_vm0, %v4841_v55  ;;  %3673 = vmatmul.mubr.msk.f32.gmra.mrb[94].mxu1 %vm200_vm0, %v4841_v55 }
 0x10f   : > { %1432 = vmatprep.mubr.f32.mxu0 %v7295_v0  ;;  %1593 = vmatprep.mubr.f32.mxu1 %v7295_v0 }
 0x112   : > { %3674 = vmatmul.mubr.msk.f32.vlgmr.msra.gmra.mrb[96].mxu0 %vm200_vm0, %v4651_v61  ;;  %3690 = vmatmul.mubr.msk.f32.vlgmr.msra.gmra.mrb[96].mxu1 %vm200_vm0, %v4651_v61 }
 0x113   : > { %1438 = vmatprep.mubr.f32.mxu0 %v7295_v0  ;;  %1599 = vmatprep.mubr.f32.mxu1 %v7295_v0 }
 0x116   : > { %3675 = vmatmul.mubr.msk.f32.gmra.mrb[98].mxu0 %vm200_vm0, %v4668_v11  ;;  %3691 = vmatmul.mubr.msk.f32.gmra.mrb[98].mxu1 %vm200_vm0, %v4668_v11 }
 0x117   : > { %1444 = vmatprep.mubr.f32.mxu0 %v7295_v0  ;;  %1605 = vmatprep.mubr.f32.mxu1 %v7295_v0 }
 0x11a   : > { %3676 = vmatmul.mubr.msk.f32.gmra.mrb[100].mxu0 %vm200_vm0, %v4688_v24  ;;  %3692 = vmatmul.mubr.msk.f32.gmra.mrb[100].mxu1 %vm200_vm0, %v4688_v24 }
 0x11b   : > { %1450 = vmatprep.mubr.f32.mxu0 %v7295_v0  ;;  %1611 = vmatprep.mubr.f32.mxu1 %v7295_v0 }
 0x11e   : > { %3677 = vmatmul.mubr.msk.f32.gmra.mrb[102].mxu0 %vm200_vm0, %v4707_v37  ;;  %3693 = vmatmul.mubr.msk.f32.gmra.mrb[102].mxu1 %vm200_vm0, %v4707_v37 }
 0x11f   : > { %1456 = vmatprep.mubr.f32.mxu0 %v7295_v0  ;;  %1617 = vmatprep.mubr.f32.mxu1 %v7295_v0 }
 0x122   : > { %3678 = vmatmul.mubr.msk.f32.gmra.mrb[104].mxu0 %vm200_vm0, %v4720_v44  ;;  %3694 = vmatmul.mubr.msk.f32.gmra.mrb[104].mxu1 %vm200_vm0, %v4720_v44 }
 0x123   : > { %1462 = vmatprep.mubr.f32.mxu0 %v7295_v0  ;;  %1623 = vmatprep.mubr.f32.mxu1 %v7295_v0 }
 0x125   : > { %v5132_v61 = vpop.f32.mrb[0].mxu0  ;;  %v5138_v24 = vpop.f32.mrb[0].mxu1 }
 0x126   : > { %v5134_v11 = vpop.f32.mrb[1].mxu0  ;;  %3679 = vmatmul.mubr.msk.f32.gmra.mrb[106].mxu0 %vm200_vm0, %v4731_v45  ;;  %v5143_v40 = vpop.f32.mrb[1].mxu1  ;;  %3695 = vmatmul.mubr.msk.f32.gmra.mrb[106].mxu1 %vm200_vm0, %v4731_v45 }
 0x127   : > { %v1698_v37 = vmax.f32 %v5132_v61, %v5134_v11  ;;  %1468 = vmatprep.mubr.f32.mxu0 %v7295_v0  ;;  %1629 = vmatprep.mubr.f32.mxu1 %v7295_v0 }
 0x129   : > { %v5149_v44 = vmax.f32 %v1698_v37, %v5138_v24  ;;  %v5151_v41 = vpop.f32.mrb[2].mxu0  ;;  %v5157_v43 = vpop.f32.mrb[2].mxu1 }
 0x12a   : > { %v5153_v42 = vpop.f32.mrb[3].mxu0  ;;  %3680 = vmatmul.mubr.msk.f32.gmra.mrb[108].mxu0 %vm200_vm0, %v4742_v46  ;;  %v5164_v57 = vpop.f32.mrb[3].mxu1  ;;  %3696 = vmatmul.mubr.msk.f32.gmra.mrb[108].mxu1 %vm200_vm0, %v4742_v46 }
 0x12b   : > { %v1715_v56 = vmax.f32 %v5151_v41, %v5153_v42  ;;  %v1700_v45 = vmax.f32 %v5149_v44, %v5143_v40  ;;  %1474 = vmatprep.mubr.f32.mxu0 %v7295_v0  ;;  %1635 = vmatprep.mubr.f32.mxu1 %v7295_v0 }
 0x12d   : > { %v5170_v58 = vmax.f32 %v1715_v56, %v5157_v43  ;;  %v5172_v59 = vpop.f32.mrb[4].mxu0  ;;  %v5178_v62 = vpop.f32.mrb[4].mxu1 }
 0x12e   : > { %v5174_v60 = vpop.f32.mrb[5].mxu0  ;;  %3681 = vmatmul.mubr.msk.f32.gmra.mrb[110].mxu0 %vm200_vm0, %v4753_v47  ;;  %v5184_v1 = vpop.f32.mrb[5].mxu1  ;;  %3697 = vmatmul.mubr.msk.f32.gmra.mrb[110].mxu1 %vm200_vm0, %v4753_v47 }
 0x12f   : > { %v1732_v63 = vmax.f32 %v5172_v59, %v5174_v60  ;;  %v1717_v46 = vmax.f32 %v5170_v58, %v5164_v57  ;;  %1480 = vmatprep.mubr.f32.mxu0 %v7295_v0  ;;  %1641 = vmatprep.mubr.f32.mxu1 %v7295_v0 }
 0x131   : > { %v5191_v2 = vmax.f32 %v1732_v63, %v5178_v62  ;;  %v5193_v3 = vpop.f32.mrb[6].mxu0  ;;  %v5197_v5 = vpop.f32.mrb[6].mxu1 }
 0x132   : > { %v5195_v4 = vpop.f32.mrb[7].mxu0  ;;  %3682 = vmatmul.mubr.msk.f32.gmra.mrb[112].mxu0 %vm200_vm0, %v4764_v48  ;;  %v5205_v7 = vpop.f32.mrb[7].mxu1  ;;  %3698 = vmatmul.mubr.msk.f32.gmra.mrb[112].mxu1 %vm200_vm0, %v4764_v48 }
 0x133   : > { %v1749_v6 = vmax.f32 %v5193_v3, %v5195_v4  ;;  %1486 = vmatprep.mubr.f32.mxu0 %v7295_v0  ;;  %1647 = vmatprep.mubr.f32.mxu1 %v7295_v0  ;;  %v7581_v58 = vmax.f32 %v5191_v2, %v5184_v1 }
 0x135   : > { %v5212_v8 = vmax.f32 %v1749_v6, %v5197_v5  ;;  %v5214_v9 = vpop.f32.mrb[8].mxu0  ;;  %v5218_v12 = vpop.f32.mrb[8].mxu1 }
 0x136   : > { %v5216_v10 = vpop.f32.mrb[9].mxu0  ;;  %3683 = vmatmul.mubr.msk.f32.gmra.mrb[114].mxu0 %vm200_vm0, %v4775_v49  ;;  %v5226_v14 = vpop.f32.mrb[9].mxu1  ;;  %3699 = vmatmul.mubr.msk.f32.gmra.mrb[114].mxu1 %vm200_vm0, %v4775_v49 }
 0x137   : > { %v1766_v13 = vmax.f32 %v5214_v9, %v5216_v10  ;;  %1492 = vmatprep.mubr.f32.mxu0 %v7295_v0  ;;  %1653 = vmatprep.mubr.f32.mxu1 %v7295_v0  ;;  %v7586_v2 = vmax.f32 %v5212_v8, %v5205_v7 }
 0x139   : > { %v5233_v15 = vmax.f32 %v1766_v13, %v5218_v12  ;;  %v5235_v16 = vpop.f32.mrb[10].mxu0  ;;  %v5239_v18 = vpop.f32.mrb[10].mxu1 }
 0x13a   : > { %v5237_v17 = vpop.f32.mrb[11].mxu0  ;;  %3684 = vmatmul.mubr.msk.f32.gmra.mrb[116].mxu0 %vm200_vm0, %v4786_v50  ;;  %v5247_v20 = vpop.f32.mrb[11].mxu1  ;;  %3700 = vmatmul.mubr.msk.f32.gmra.mrb[116].mxu1 %vm200_vm0, %v4786_v50 }
 0x13b   : > { %v1783_v19 = vmax.f32 %v5235_v16, %v5237_v17  ;;  %1498 = vmatprep.mubr.f32.mxu0 %v7295_v0  ;;  %1659 = vmatprep.mubr.f32.mxu1 %v7295_v0  ;;  %v7591_v8 = vmax.f32 %v5233_v15, %v5226_v14 }
 0x13d   : > { %v5254_v21 = vmax.f32 %v1783_v19, %v5239_v18  ;;  %v5256_v22 = vpop.f32.mrb[12].mxu0  ;;  %v5260_v25 = vpop.f32.mrb[12].mxu1 }
 0x13e   : > { %7566 = vst [vmem:[#allocation11_spill] sm:$0xff] %v5256_v22  ;;  %v5258_v23 = vpop.f32.mrb[13].mxu0  ;;  %7568 = vst [vmem:[#allocation13_spill] sm:$0xff] %v5260_v25  ;;  %3685 = vmatmul.mubr.msk.f32.gmra.mrb[118].mxu0 %vm200_vm0, %v4797_v51  ;;  %v5268_v27 = vpop.f32.mrb[13].mxu1  ;;  %3701 = vmatmul.mubr.msk.f32.gmra.mrb[118].mxu1 %vm200_vm0, %v4797_v51 }
 0x13f   : > { %7567 = vst [vmem:[#allocation12_spill] sm:$0xff] %v5258_v23  ;;  %v1800_v26 = vmax.f32 %v5256_v22, %v5258_v23  ;;  %7569 = vst [vmem:[#allocation14_spill] sm:$0xff] %v5268_v27  ;;  %1504 = vmatprep.mubr.f32.mxu0 %v7295_v0  ;;  %1665 = vmatprep.mubr.f32.mxu1 %v7295_v0  ;;  %v7596_v15 = vmax.f32 %v5254_v21, %v5247_v20 }
 0x141   : > { %v5275_v28 = vmax.f32 %v1800_v26, %v5260_v25  ;;  %v5277_v29 = vpop.f32.mrb[14].mxu0  ;;  %v5281_v31 = vpop.f32.mrb[14].mxu1 }
 0x142   : > { %7570 = vst [vmem:[#allocation15_spill] sm:$0xff] %v5277_v29  ;;  %v5279_v30 = vpop.f32.mrb[15].mxu0  ;;  %7572 = vst [vmem:[#allocation17_spill] sm:$0xff] %v5281_v31  ;;  %3686 = vmatmul.mubr.msk.f32.gmra.mrb[120].mxu0 %vm200_vm0, %v4808_v52  ;;  %v5289_v33 = vpop.f32.mrb[15].mxu1  ;;  %3702 = vmatmul.mubr.msk.f32.gmra.mrb[120].mxu1 %vm200_vm0, %v4808_v52 }
 0x143   : > { %7571 = vst [vmem:[#allocation16_spill] sm:$0xff] %v5279_v30  ;;  %v1817_v32 = vmax.f32 %v5277_v29, %v5279_v30  ;;  %7573 = vst [vmem:[#allocation18_spill] sm:$0xff] %v5289_v33  ;;  %1510 = vmatprep.mubr.f32.mxu0 %v7295_v0  ;;  %1671 = vmatprep.mubr.f32.mxu1 %v7295_v0  ;;  %v7601_v21 = vmax.f32 %v5275_v28, %v5268_v27 }
 0x145   : > { %v5296_v34 = vmax.f32 %v1817_v32, %v5281_v31  ;;  %v516_v35 = vpop.f32.mrb[16].mxu0  ;;  %v677_v38 = vpop.f32.mrb[16].mxu1 }
 0x146   : > { %v518_v36 = vpop.f32.mrb[17].mxu0  ;;  %3687 = vmatmul.mubr.msk.f32.gmra.mrb[122].mxu0 %vm200_vm0, %v4819_v53  ;;  %v679_v37 = vpop.f32.mrb[17].mxu1  ;;  %3703 = vmatmul.mubr.msk.f32.gmra.mrb[122].mxu1 %vm200_vm0, %v4819_v53 }
 0x147   : > { %1516 = vmatprep.mubr.f32.mxu0 %v7295_v0  ;;  %1677 = vmatprep.mubr.f32.mxu1 %v7295_v0  ;;  %v7606_v28 = vmax.f32 %v5296_v34, %v5289_v33 }
 0x149   : > { %v522_v52 = vpop.f32.mrb[18].mxu0  ;;  %v683_v63 = vpop.f32.mrb[18].mxu1 }
 0x14a   : > { %v3843_v56 = vpack.c.bf16 %v522_v52, %v516_v35  ;;  %v524_v6 = vpop.f32.mrb[19].mxu0  ;;  %3688 = vmatmul.mubr.msk.f32.gmra.mrb[124].mxu0 %vm200_vm0, %v4830_v54  ;;  %v3859_v13 = vpack.c.bf16 %v683_v63, %v677_v38  ;;  %v685_v26 = vpop.f32.mrb[19].mxu1  ;;  %3704 = vmatmul.mubr.msk.f32.gmra.mrb[124].mxu1 %vm200_vm0, %v4830_v54 }
 0x14b   : > { %v3841_v19 = vpack.c.bf16 %v524_v6, %v518_v36  ;;  %1522 = vmatprep.mubr.f32.mxu0 %v7295_v0  ;;  %v3857_v53 = vpack.c.bf16 %v685_v26, %v679_v37  ;;  %1683 = vmatprep.mubr.f32.mxu1 %v7295_v0 }
 0x14d   : > { %v528_v32 = vpop.f32.mrb[20].mxu0  ;;  %3842 = vmatprep.subr.bf16.mxu0 %v3841_v19  ;;  %3858 = vmatprep.subr.bf16.mxu1 %v3857_v53  ;;  %v689_v52 = vpop.f32.mrb[20].mxu1 }
 0x14e   : > { %v530_v35 = vpop.f32.mrb[21].mxu0  ;;  %3844 = vmatpush1.bf16.xpose.msra.mxu0 %v3843_v56  ;;  %3860 = vmatpush1.bf16.xpose.msra.mxu1 %v3859_v13  ;;  %v691_v39 = vpop.f32.mrb[21].mxu1 }
 0x14f   : > { %3689 = vmatmul.mubr.msk.f32.gmra.mrb[126].mxu0 %vm200_vm0, %v4841_v55  ;;  %3705 = vmatmul.mubr.msk.f32.gmra.mrb[126].mxu1 %vm200_vm0, %v4841_v55 }
 0x151   : > { %v534_v54 = vpop.f32.mrb[22].mxu0  ;;  %v695_v38 = vpop.f32.mrb[22].mxu1 }
 0x152   : > { %v3847_v36 = vpack.c.bf16 %v534_v54, %v528_v32  ;;  %v536_v37 = vpop.f32.mrb[23].mxu0  ;;  %v3863_v63 = vpack.c.bf16 %v695_v38, %v689_v52  ;;  %v697_v26 = vpop.f32.mrb[23].mxu1 }
 0x153   : > { %v3845_v6 = vpack.c.bf16 %v536_v37, %v530_v35  ;;  %v3861_v19 = vpack.c.bf16 %v697_v26, %v691_v39 }
 0x155   : > { %v540_v53 = vpop.f32.mrb[24].mxu0  ;;  %3846 = vmatprep.subr.bf16.mxu0 %v3845_v6  ;;  %3862 = vmatprep.subr.bf16.mxu1 %v3861_v19  ;;  %v701_v13 = vpop.f32.mrb[24].mxu1 }
 0x156   : > { %v542_v56 = vpop.f32.mrb[25].mxu0  ;;  %3848 = vmatpush1.bf16.xpose.msra.mxu0 %v3847_v36  ;;  %3864 = vmatpush1.bf16.xpose.msra.mxu1 %v3863_v63  ;;  %v703_v0 = vpop.f32.mrb[25].mxu1 }
 0x159   : > { %v546_v51 = vpop.f32.mrb[26].mxu0  ;;  %v707_v49 = vpop.f32.mrb[26].mxu1 }
 0x15a   : > { %v3851_v50 = vpack.c.bf16 %v546_v51, %v540_v53  ;;  %v548_v55 = vpop.f32.mrb[27].mxu0  ;;  %v3867_v48 = vpack.c.bf16 %v707_v49, %v701_v13  ;;  %v709_v54 = vpop.f32.mrb[27].mxu1 }
 0x15b   : > { %v3849_v32 = vpack.c.bf16 %v548_v55, %v542_v56  ;;  %v3865_v47 = vpack.c.bf16 %v709_v54, %v703_v0 }
 0x15d   : > { %v552_v52 = vpop.f32.mrb[28].mxu0  ;;  %3850 = vmatprep.subr.bf16.mxu0 %v3849_v32  ;;  %3866 = vmatprep.subr.bf16.mxu1 %v3865_v47  ;;  %v713_v35 = vpop.f32.mrb[28].mxu1 }
 0x15e   : > { %v554_v39 = vpop.f32.mrb[29].mxu0  ;;  %3852 = vmatpush1.bf16.xpose.msra.mxu0 %v3851_v50  ;;  %3868 = vmatpush1.bf16.xpose.msra.mxu1 %v3867_v48  ;;  %v715_v38 = vpop.f32.mrb[29].mxu1 }
 0x161   : > { %v558_v36 = vpop.f32.mrb[30].mxu0  ;;  %v719_v63 = vpop.f32.mrb[30].mxu1 }
 0x162   : > { %v3855_v37 = vpack.c.bf16 %v558_v36, %v552_v52  ;;  %v560_v6 = vpop.f32.mrb[31].mxu0  ;;  %v3871_v26 = vpack.c.bf16 %v719_v63, %v713_v35  ;;  %v721_v19 = vpop.f32.mrb[31].mxu1 }
 0x163   : > { %v3853_v51 = vpack.c.bf16 %v560_v6, %v554_v39  ;;  %v3869_v53 = vpack.c.bf16 %v721_v19, %v715_v38 }
 0x165   : > { %v5316_v49 = vpop.f32.mrb[32].mxu0  ;;  %3854 = vmatprep.subr.bf16.mxu0 %v3853_v51  ;;  %3870 = vmatprep.subr.bf16.mxu1 %v3869_v53  ;;  %v5324_v48 = vpop.f32.mrb[32].mxu1 }
 0x166   : > { %7574 = vst [vmem:[#allocation19_spill] sm:$0xff] %v5316_v49  ;;  %v1701_v0 = vmax.f32 %v1700_v45, %v5316_v49  ;;  %v5322_v47 = vpop.f32.mrb[33].mxu0  ;;  %3856 = vmatpush1.bf16.xpose.msra.mxu0 %v3855_v37  ;;  %7575 = vst [vmem:[#allocation20_spill] sm:$0xff] %v5324_v48  ;;  %3872 = vmatpush1.bf16.xpose.msra.mxu1 %v3871_v26  ;;  %v5326_v50 = vpop.f32.mrb[33].mxu1 }
 0x168   : > { %v1702_v56 = vmax.f32 %v1701_v0, %v5322_v47 }
 0x169   : > { %v5329_v13 = vpop.f32.mrb[34].mxu0  ;;  %v5340_v32 = vpop.f32.mrb[34].mxu1 }
 0x16a   : > { %7576 = vst [vmem:[#allocation21_spill] sm:$0xff] %v5329_v13  ;;  %v1718_v55 = vmax.f32 %v1717_v46, %v5329_v13  ;;  %v5336_v44 = vmax.f32 %v1702_v56, %v5324_v48  ;;  %v5338_v45 = vpop.f32.mrb[35].mxu0  ;;  %7578 = vst [vmem:[#allocation23_spill] sm:$0xff] %v5340_v32  ;;  %v5342_v54 = vpop.f32.mrb[35].mxu1  ;;  %v4446_v13 = vmov -inf  }
 0x16b   : > { %7577 = vst [vmem:[#allocation22_spill] sm:$0xff] %v5338_v45  ;;  %7579 = vst [vmem:[#allocation24_spill] sm:$0xff] %v5342_v54 }
 0x16c   : > { %v1719_v52 = vmax.f32 %v1718_v55, %v5338_v45  ;;  %184 = vst.msk [vmem:[#allocation2] sm:$0xff] %vm183_vm1, %v4446_v13  ;;  %185 = vst.msk [vmem:[#allocation2 + $0x8] sm:$0xff] %vm183_vm1, %v4446_v13 }
 0x16d   : > { %v5347_v35 = vpop.f32.mrb[36].mxu0  ;;  %v5358_v37 = vpop.f32.mrb[36].mxu1  ;;  %186 = vst.msk [vmem:[#allocation2 + $0x10] sm:$0xff] %vm183_vm1, %v4446_v13  ;;  %187 = vst.msk [vmem:[#allocation2 + $0x18] sm:$0xff] %vm183_vm1, %v4446_v13 }
 0x16e   : > { %7580 = vst [vmem:[#allocation25_spill] sm:$0xff] %v5347_v35  ;;  %v1735_v46 = vmax.f32 %v7581_v58, %v5347_v35  ;;  %v5354_v38 = vmax.f32 %v1719_v52, %v5340_v32  ;;  %v5356_v36 = vpop.f32.mrb[37].mxu0  ;;  %7583 = vst [vmem:[#allocation27_spill] sm:$0xff] %v5358_v37  ;;  %v5360_v63 = vpop.f32.mrb[37].mxu1 }
 0x16f   : > { %7582 = vst [vmem:[#allocation26_spill] sm:$0xff] %v5356_v36  ;;  %7584 = vst [vmem:[#allocation28_spill] sm:$0xff] %v5360_v63 }
 0x170   : > { %v1736_v6 = vmax.f32 %v1735_v46, %v5356_v36  ;;  %188 = vst.msk [vmem:[#allocation2 + $0x20] sm:$0xff] %vm183_vm1, %v4446_v13  ;;  %189 = vst.msk [vmem:[#allocation2 + $0x28] sm:$0xff] %vm183_vm1, %v4446_v13 }
 0x171   : > { %v5365_v51 = vpop.f32.mrb[38].mxu0  ;;  %v5376_v56 = vpop.f32.mrb[38].mxu1  ;;  %190 = vst.msk [vmem:[#allocation2 + $0x30] sm:$0xff] %vm183_vm1, %v4446_v13  ;;  %191 = vst.msk [vmem:[#allocation2 + $0x38] sm:$0xff] %vm183_vm1, %v4446_v13 }
 0x172   : > { %7585 = vst [vmem:[#allocation29_spill] sm:$0xff] %v5365_v51  ;;  %v1752_v19 = vmax.f32 %v7586_v2, %v5365_v51  ;;  %v5372_v53 = vmax.f32 %v1736_v6, %v5358_v37  ;;  %v5374_v0 = vpop.f32.mrb[39].mxu0  ;;  %7588 = vst [vmem:[#allocation31_spill] sm:$0xff] %v5376_v56  ;;  %v5378_v55 = vpop.f32.mrb[39].mxu1 }
 0x173   : > { %7587 = vst [vmem:[#allocation30_spill] sm:$0xff] %v5374_v0  ;;  %7589 = vst [vmem:[#allocation32_spill] sm:$0xff] %v5378_v55 }
 0x174   : > { %v1753_v52 = vmax.f32 %v1752_v19, %v5374_v0 }
 0x175   : > { %v5383_v46 = vpop.f32.mrb[40].mxu0  ;;  %v5394_v39 = vpop.f32.mrb[40].mxu1 }
 0x176   : > { %7590 = vst [vmem:[#allocation33_spill] sm:$0xff] %v5383_v46  ;;  %v1769_v2 = vmax.f32 %v7591_v8, %v5383_v46  ;;  %v5390_v6 = vmax.f32 %v1753_v52, %v5376_v56  ;;  %v5392_v26 = vpop.f32.mrb[41].mxu0  ;;  %7593 = vst [vmem:[#allocation35_spill] sm:$0xff] %v5394_v39  ;;  %v5396_v51 = vpop.f32.mrb[41].mxu1 }
 0x177   : > { %7592 = vst [vmem:[#allocation34_spill] sm:$0xff] %v5392_v26  ;;  %7594 = vst [vmem:[#allocation36_spill] sm:$0xff] %v5396_v51 }
 0x178   : > { %v1770_v19 = vmax.f32 %v1769_v2, %v5392_v26 }
 0x179   : > { %v5401_v0 = vpop.f32.mrb[42].mxu0  ;;  %v5412_v46 = vpop.f32.mrb[42].mxu1 }
 0x17a   : > { %7595 = vst [vmem:[#allocation37_spill] sm:$0xff] %v5401_v0  ;;  %v1786_v8 = vmax.f32 %v7596_v15, %v5401_v0  ;;  %v5408_v52 = vmax.f32 %v1770_v19, %v5394_v39  ;;  %v5410_v56 = vpop.f32.mrb[43].mxu0  ;;  %7598 = vst [vmem:[#allocation39_spill] sm:$0xff] %v5412_v46  ;;  %v5414_v37 = vpop.f32.mrb[43].mxu1 }
 0x17b   : > { %7597 = vst [vmem:[#allocation38_spill] sm:$0xff] %v5410_v56  ;;  %7599 = vst [vmem:[#allocation40_spill] sm:$0xff] %v5414_v37 }
 0x17c   : > { %v1787_v2 = vmax.f32 %v1786_v8, %v5410_v56 }
 0x17d   : > { %v5419_v26 = vpop.f32.mrb[44].mxu0  ;;  %v5430_v39 = vpop.f32.mrb[44].mxu1 }
 0x17e   : > { %7600 = vst [vmem:[#allocation41_spill] sm:$0xff] %v5419_v26  ;;  %v1803_v15 = vmax.f32 %v7601_v21, %v5419_v26  ;;  %v5426_v19 = vmax.f32 %v1787_v2, %v5412_v46  ;;  %v5428_v0 = vpop.f32.mrb[45].mxu0  ;;  %7603 = vst [vmem:[#allocation43_spill] sm:$0xff] %v5430_v39  ;;  %v5432_v36 = vpop.f32.mrb[45].mxu1 }
 0x17f   : > { %7602 = vst [vmem:[#allocation42_spill] sm:$0xff] %v5428_v0  ;;  %7604 = vst [vmem:[#allocation44_spill] sm:$0xff] %v5432_v36 }
 0x180   : > { %v1804_v8 = vmax.f32 %v1803_v15, %v5428_v0 }
 0x181   : > { %v5437_v56 = vpop.f32.mrb[46].mxu0  ;;  %v5448_v46 = vpop.f32.mrb[46].mxu1 }
 0x182   : > { %7605 = vst [vmem:[#allocation45_spill] sm:$0xff] %v5437_v56  ;;  %v1820_v21 = vmax.f32 %v7606_v28, %v5437_v56  ;;  %v5444_v2 = vmax.f32 %v1804_v8, %v5430_v39  ;;  %v5446_v26 = vpop.f32.mrb[47].mxu0  ;;  %7608 = vst [vmem:[#allocation47_spill] sm:$0xff] %v5448_v46  ;;  %v5450_v35 = vpop.f32.mrb[47].mxu1 }
 0x183   : > { %7607 = vst [vmem:[#allocation46_spill] sm:$0xff] %v5446_v26  ;;  %7609 = vst [vmem:[#allocation48_spill] sm:$0xff] %v5450_v35 }
 0x184   : > { %v1821_v15 = vmax.f32 %v1820_v21, %v5446_v26 }
 0x185   : > { %v5455_v0 = vpop.f32.mrb[48].mxu0  ;;  %v5460_v28 = vpop.f32.mrb[48].mxu1 }
 0x186   : > { %v5458_v32 = vmax.f32 %v1821_v15, %v5448_v46  ;;  %v840_v34 = vpop.f32.mrb[49].mxu0  ;;  %v1001_v8 = vpop.f32.mrb[49].mxu1  ;;  %v7610_v15 = vmov 0.0  }
 0x187   : > { %192 = vst.msk [vmem:[#allocation3] sm:$0xff] %vm183_vm1, %v7610_v15  ;;  %193 = vst.msk [vmem:[#allocation3 + $0x8] sm:$0xff] %vm183_vm1, %v7610_v15 }
 0x188   : > { %194 = vst.msk [vmem:[#allocation3 + $0x10] sm:$0xff] %vm183_vm1, %v7610_v15  ;;  %195 = vst.msk [vmem:[#allocation3 + $0x18] sm:$0xff] %vm183_vm1, %v7610_v15 }
 0x189   : > { %v5464_v39 = vpop.f32.mrb[50].mxu0  ;;  %v5468_v26 = vpop.f32.mrb[50].mxu1  ;;  %196 = vst.msk [vmem:[#allocation3 + $0x20] sm:$0xff] %vm183_vm1, %v7610_v15  ;;  %197 = vst.msk [vmem:[#allocation3 + $0x28] sm:$0xff] %vm183_vm1, %v7610_v15 }
 0x18a   : > { %v846_v58 = vpop.f32.mrb[51].mxu0  ;;  %v1007_v45 = vpop.f32.mrb[51].mxu1  ;;  %198 = vst.msk [vmem:[#allocation3 + $0x30] sm:$0xff] %vm183_vm1, %v7610_v15  ;;  %199 = vst.msk [vmem:[#allocation3 + $0x38] sm:$0xff] %vm183_vm1, %v7610_v15  ;;  %v7632_v15 = vmax.f32 %v5336_v44, %v5326_v50 }
 0x18b   : > { %v3873_v46 = vpack.c.bf16 %v846_v58, %v840_v34  ;;  %v3889_v13 = vpack.c.bf16 %v1007_v45, %v1001_v8 }
 0x18d   : > { %v5496_v58 = vpop.f32.mrb[52].mxu0  ;;  %3874 = vmatprep.subr.bf16.mxu0 %v3873_v46  ;;  %3890 = vmatprep.subr.bf16.mxu1 %v3889_v13  ;;  %v5500_v21 = vpop.f32.mrb[52].mxu1 }
 0x18e   : > { %7611 = vst [vmem:[#allocation49_spill] sm:$0xff] %v5496_v58  ;;  %v5498_v34 = vpop.f32.mrb[53].mxu0  ;;  %7612 = vst [vmem:[#allocation50_spill] sm:$0xff] %v5500_v21  ;;  %v5502_v56 = vpop.f32.mrb[53].mxu1 }
 0x191   : > { %v5504_v31 = vpop.f32.mrb[54].mxu0  ;;  %v5508_v33 = vpop.f32.mrb[54].mxu1 }
 0x192   : > { %7613 = vst [vmem:[#allocation51_spill] sm:$0xff] %v5504_v31  ;;  %7614 = vst [vmem:[#allocation52_spill] sm:$0xff] %v5508_v33  ;;  %v5510_v30 = vpop.f32.mrb[55].mxu0  ;;  %v5516_v8 = vpop.f32.mrb[55].mxu1 }
 0x195   : > { %v5520_v13 = vpop.f32.mrb[56].mxu0  ;;  %v5524_v29 = vpop.f32.mrb[56].mxu1 }
 0x196   : > { %7615 = vst [vmem:[#allocation53_spill] sm:$0xff] %v5520_v13  ;;  %v5522_v48 = vpop.f32.mrb[57].mxu0  ;;  %7617 = vst [vmem:[#allocation55_spill] sm:$0xff] %v5524_v29  ;;  %v5526_v58 = vpop.f32.mrb[57].mxu1 }
 0x197   : > { %7616 = vst [vmem:[#allocation54_spill] sm:$0xff] %v5522_v48  ;;  %7618 = vst [vmem:[#allocation56_spill] sm:$0xff] %v5526_v58 }
 0x199   : > { %v5528_v31 = vpop.f32.mrb[58].mxu0  ;;  %v5532_v21 = vpop.f32.mrb[58].mxu1 }
 0x19a   : > { %7619 = vst [vmem:[#allocation57_spill] sm:$0xff] %v5528_v31  ;;  %7620 = vst [vmem:[#allocation58_spill] sm:$0xff] %v5532_v21  ;;  %v5534_v46 = vpop.f32.mrb[59].mxu0  ;;  %v5540_v25 = vpop.f32.mrb[59].mxu1 }
 0x19b   : > { %7621 = vst [vmem:[#allocation59_spill] sm:$0xff] %v5534_v46  ;;  %7622 = vst [vmem:[#allocation60_spill] sm:$0xff] %v5540_v25  ;;  %v7636_v25 = vmax.f32 %v5354_v38, %v5342_v54 }
 0x19d   : > { %v5544_v27 = vpop.f32.mrb[60].mxu0  ;;  %v5548_v45 = vpop.f32.mrb[60].mxu1 }
 0x19e   : > { %7623 = vst [vmem:[#allocation61_spill] sm:$0xff] %v5544_v27  ;;  %v5546_v23 = vpop.f32.mrb[61].mxu0  ;;  %7625 = vst [vmem:[#allocation63_spill] sm:$0xff] %v5548_v45  ;;  %v5550_v13 = vpop.f32.mrb[61].mxu1 }
 0x19f   : > { %7624 = vst [vmem:[#allocation62_spill] sm:$0xff] %v5546_v23  ;;  %7626 = vst [vmem:[#allocation64_spill] sm:$0xff] %v5550_v13 }
 0x1a1   : > { %v5552_v31 = vpop.f32.mrb[62].mxu0  ;;  %v5556_v29 = vpop.f32.mrb[62].mxu1 }
 0x1a2   : > { %7627 = vst [vmem:[#allocation65_spill] sm:$0xff] %v5552_v31  ;;  %7628 = vst [vmem:[#allocation66_spill] sm:$0xff] %v5556_v29  ;;  %v5558_v33 = vpop.f32.mrb[63].mxu0  ;;  %v5564_v58 = vpop.f32.mrb[63].mxu1 }
 0x1a3   : > { %7629 = vst [vmem:[#allocation67_spill] sm:$0xff] %v5558_v33  ;;  %7630 = vst [vmem:[#allocation68_spill] sm:$0xff] %v5564_v58 }
 0x1a5   : > { %v5568_v48 = vpop.f32.mrb[64].mxu0  ;;  %v5576_v46 = vpop.f32.mrb[64].mxu1 }
 0x1a6   : > { %7631 = vst [vmem:[#allocation69_spill] sm:$0xff] %v5568_v48  ;;  %v1705_v27 = vmax.f32 %v7632_v15, %v5568_v48  ;;  %v5574_v31 = vpop.f32.mrb[65].mxu0  ;;  %7634 = vst [vmem:[#allocation71_spill] sm:$0xff] %v5576_v46  ;;  %v5578_v22 = vpop.f32.mrb[65].mxu1 }
 0x1a7   : > { %7633 = vst [vmem:[#allocation70_spill] sm:$0xff] %v5574_v31 }
 0x1a8   : > { %v1706_v21 = vmax.f32 %v1705_v27, %v5574_v31 }
 0x1a9   : > { %v5581_v45 = vpop.f32.mrb[66].mxu0  ;;  %v5592_v15 = vpop.f32.mrb[66].mxu1 }
 0x1aa   : > { %7635 = vst [vmem:[#allocation72_spill] sm:$0xff] %v5581_v45  ;;  %v1722_v29 = vmax.f32 %v7636_v25, %v5581_v45  ;;  %v5588_v13 = vmax.f32 %v1706_v21, %v5576_v46  ;;  %v5590_v44 = vpop.f32.mrb[67].mxu0  ;;  %7638 = vst [vmem:[#allocation74_spill] sm:$0xff] %v5592_v15  ;;  %v5594_v58 = vpop.f32.mrb[67].mxu1  ;;  %v7641_v25 = vmax.f32 %v5372_v53, %v5360_v63 }
 0x1ab   : > { %7637 = vst [vmem:[#allocation73_spill] sm:$0xff] %v5590_v44  ;;  %7639 = vst [vmem:[#allocation75_spill] sm:$0xff] %v5594_v58  ;;  %v7646_v53 = vmax.f32 %v5390_v6, %v5378_v55  ;;  %v7651_v6 = vmax.f32 %v5408_v52, %v5396_v51  ;;  %v7656_v52 = vmax.f32 %v5426_v19, %v5414_v37 }
 0x1ac   : > { %v1723_v23 = vmax.f32 %v1722_v29, %v5590_v44  ;;  %v7661_v19 = vmax.f32 %v5444_v2, %v5432_v36  ;;  %v7666_v2 = vmax.f32 %v5458_v32, %v5450_v35 }
 0x1ad   : > { %v5599_v33 = vpop.f32.mrb[68].mxu0  ;;  %v5610_v54 = vpop.f32.mrb[68].mxu1 }
 0x1ae   : > { %7640 = vst [vmem:[#allocation76_spill] sm:$0xff] %v5599_v33  ;;  %v1739_v38 = vmax.f32 %v7641_v25, %v5599_v33  ;;  %v5606_v21 = vmax.f32 %v1723_v23, %v5592_v15  ;;  %v5608_v45 = vpop.f32.mrb[69].mxu0  ;;  %7643 = vst [vmem:[#allocation78_spill] sm:$0xff] %v5610_v54  ;;  %v5612_v46 = vpop.f32.mrb[69].mxu1 }
 0x1af   : > { %7642 = vst [vmem:[#allocation77_spill] sm:$0xff] %v5608_v45  ;;  %7644 = vst [vmem:[#allocation79_spill] sm:$0xff] %v5612_v46 }
 0x1b0   : > { %v1740_v29 = vmax.f32 %v1739_v38, %v5608_v45 }
 0x1b1   : > { %v5617_v44 = vpop.f32.mrb[70].mxu0  ;;  %v5628_v63 = vpop.f32.mrb[70].mxu1 }
 0x1b2   : > { %7645 = vst [vmem:[#allocation80_spill] sm:$0xff] %v5617_v44  ;;  %v1756_v25 = vmax.f32 %v7646_v53, %v5617_v44  ;;  %v5624_v23 = vmax.f32 %v1740_v29, %v5610_v54  ;;  %v5626_v33 = vpop.f32.mrb[71].mxu0  ;;  %7648 = vst [vmem:[#allocation82_spill] sm:$0xff] %v5628_v63  ;;  %v5630_v15 = vpop.f32.mrb[71].mxu1 }
 0x1b3   : > { %7647 = vst [vmem:[#allocation81_spill] sm:$0xff] %v5626_v33  ;;  %7649 = vst [vmem:[#allocation83_spill] sm:$0xff] %v5630_v15 }
 0x1b4   : > { %v1757_v38 = vmax.f32 %v1756_v25, %v5626_v33 }
 0x1b5   : > { %v5635_v45 = vpop.f32.mrb[72].mxu0  ;;  %v5646_v54 = vpop.f32.mrb[72].mxu1 }
 0x1b6   : > { %7650 = vst [vmem:[#allocation84_spill] sm:$0xff] %v5635_v45  ;;  %v1773_v53 = vmax.f32 %v7651_v6, %v5635_v45  ;;  %v5642_v29 = vmax.f32 %v1757_v38, %v5628_v63  ;;  %v5644_v55 = vpop.f32.mrb[73].mxu0  ;;  %7653 = vst [vmem:[#allocation86_spill] sm:$0xff] %v5646_v54  ;;  %v5648_v44 = vpop.f32.mrb[73].mxu1 }
 0x1b7   : > { %7652 = vst [vmem:[#allocation85_spill] sm:$0xff] %v5644_v55  ;;  %7654 = vst [vmem:[#allocation87_spill] sm:$0xff] %v5648_v44 }
 0x1b8   : > { %v1774_v25 = vmax.f32 %v1773_v53, %v5644_v55 }
 0x1b9   : > { %v5653_v33 = vpop.f32.mrb[74].mxu0  ;;  %v5664_v51 = vpop.f32.mrb[74].mxu1 }
 0x1ba   : > { %7655 = vst [vmem:[#allocation88_spill] sm:$0xff] %v5653_v33  ;;  %v1790_v6 = vmax.f32 %v7656_v52, %v5653_v33  ;;  %v5660_v38 = vmax.f32 %v1774_v25, %v5646_v54  ;;  %v5662_v45 = vpop.f32.mrb[75].mxu0  ;;  %7658 = vst [vmem:[#allocation90_spill] sm:$0xff] %v5664_v51  ;;  %v5666_v63 = vpop.f32.mrb[75].mxu1 }
 0x1bb   : > { %7657 = vst [vmem:[#allocation89_spill] sm:$0xff] %v5662_v45  ;;  %7659 = vst [vmem:[#allocation91_spill] sm:$0xff] %v5666_v63 }
 0x1bc   : > { %v1791_v53 = vmax.f32 %v1790_v6, %v5662_v45 }
 0x1bd   : > { %v5671_v55 = vpop.f32.mrb[76].mxu0  ;;  %v5682_v37 = vpop.f32.mrb[76].mxu1 }
 0x1be   : > { %7660 = vst [vmem:[#allocation92_spill] sm:$0xff] %v5671_v55  ;;  %v1807_v52 = vmax.f32 %v7661_v19, %v5671_v55  ;;  %v5678_v25 = vmax.f32 %v1791_v53, %v5664_v51  ;;  %v5680_v33 = vpop.f32.mrb[77].mxu0  ;;  %7663 = vst [vmem:[#allocation94_spill] sm:$0xff] %v5682_v37  ;;  %v5684_v54 = vpop.f32.mrb[77].mxu1 }
 0x1bf   : > { %7662 = vst [vmem:[#allocation93_spill] sm:$0xff] %v5680_v33  ;;  %7664 = vst [vmem:[#allocation95_spill] sm:$0xff] %v5684_v54 }
 0x1c0   : > { %v1808_v6 = vmax.f32 %v1807_v52, %v5680_v33 }
 0x1c1   : > { %v5689_v45 = vpop.f32.mrb[78].mxu0  ;;  %v5700_v36 = vpop.f32.mrb[78].mxu1 }
 0x1c2   : > { %7665 = vst [vmem:[#allocation96_spill] sm:$0xff] %v5689_v45  ;;  %v1824_v19 = vmax.f32 %v7666_v2, %v5689_v45  ;;  %v5696_v53 = vmax.f32 %v1808_v6, %v5682_v37  ;;  %v5698_v55 = vpop.f32.mrb[79].mxu0  ;;  %7668 = vst [vmem:[#allocation98_spill] sm:$0xff] %v5700_v36  ;;  %v5702_v51 = vpop.f32.mrb[79].mxu1 }
 0x1c3   : > { %7667 = vst [vmem:[#allocation97_spill] sm:$0xff] %v5698_v55  ;;  %7669 = vst [vmem:[#allocation99_spill] sm:$0xff] %v5702_v51 }
 0x1c4   : > { %v1825_v52 = vmax.f32 %v1824_v19, %v5698_v55 }
 0x1c5   : > { %v5707_v33 = vpop.f32.mrb[80].mxu0  ;;  %v5714_v6 = vpop.f32.mrb[80].mxu1 }
 0x1c6   : > { %7670 = vst [vmem:[#allocation100_spill] sm:$0xff] %v5707_v33  ;;  %v5710_v31 = vmax.f32 %v1825_v52, %v5700_v36  ;;  %v5712_v32 = vpop.f32.mrb[81].mxu0  ;;  %7672 = vst [vmem:[#allocation102_spill] sm:$0xff] %v5714_v6  ;;  %v5716_v2 = vpop.f32.mrb[81].mxu1 }
 0x1c7   : > { %7671 = vst [vmem:[#allocation101_spill] sm:$0xff] %v5712_v32  ;;  %7673 = vst [vmem:[#allocation103_spill] sm:$0xff] %v5716_v2 }
 0x1c9   : > { %v5720_v35 = vpop.f32.mrb[82].mxu0  ;;  %v5724_v27 = vpop.f32.mrb[82].mxu1 }
 0x1ca   : > { %7674 = vst [vmem:[#allocation104_spill] sm:$0xff] %v5720_v35  ;;  %7675 = vst [vmem:[#allocation105_spill] sm:$0xff] %v5724_v27  ;;  %v5726_v55 = vpop.f32.mrb[83].mxu0  ;;  %v5732_v37 = vpop.f32.mrb[83].mxu1 }
 0x1cb   : > { %7676 = vst [vmem:[#allocation106_spill] sm:$0xff] %v5726_v55  ;;  %7677 = vst [vmem:[#allocation107_spill] sm:$0xff] %v5732_v37  ;;  %v7702_v37 = vmax.f32 %v5588_v13, %v5578_v22 }
 0x1cd   : > { %v5736_v48 = vpop.f32.mrb[84].mxu0  ;;  %v5740_v19 = vpop.f32.mrb[84].mxu1 }
 0x1ce   : > { %7678 = vst [vmem:[#allocation108_spill] sm:$0xff] %v5736_v48  ;;  %v5738_v49 = vpop.f32.mrb[85].mxu0  ;;  %7680 = vst [vmem:[#allocation110_spill] sm:$0xff] %v5740_v19  ;;  %v5742_v33 = vpop.f32.mrb[85].mxu1 }
 0x1cf   : > { %7679 = vst [vmem:[#allocation109_spill] sm:$0xff] %v5738_v49  ;;  %7681 = vst [vmem:[#allocation111_spill] sm:$0xff] %v5742_v33 }
 0x1d1   : > { %v5744_v35 = vpop.f32.mrb[86].mxu0  ;;  %v5748_v6 = vpop.f32.mrb[86].mxu1 }
 0x1d2   : > { %7682 = vst [vmem:[#allocation112_spill] sm:$0xff] %v5744_v35  ;;  %7683 = vst [vmem:[#allocation113_spill] sm:$0xff] %v5748_v6  ;;  %v5750_v36 = vpop.f32.mrb[87].mxu0  ;;  %v5756_v2 = vpop.f32.mrb[87].mxu1 }
 0x1d3   : > { %7684 = vst [vmem:[#allocation114_spill] sm:$0xff] %v5750_v36  ;;  %7685 = vst [vmem:[#allocation115_spill] sm:$0xff] %v5756_v2 }
 0x1d5   : > { %v5760_v32 = vpop.f32.mrb[88].mxu0  ;;  %v5764_v52 = vpop.f32.mrb[88].mxu1 }
 0x1d6   : > { %7686 = vst [vmem:[#allocation116_spill] sm:$0xff] %v5760_v32  ;;  %v5762_v55 = vpop.f32.mrb[89].mxu0  ;;  %7688 = vst [vmem:[#allocation118_spill] sm:$0xff] %v5764_v52  ;;  %v5766_v48 = vpop.f32.mrb[89].mxu1 }
 0x1d7   : > { %7687 = vst [vmem:[#allocation117_spill] sm:$0xff] %v5762_v55  ;;  %7689 = vst [vmem:[#allocation119_spill] sm:$0xff] %v5766_v48 }
 0x1d9   : > { %v5768_v35 = vpop.f32.mrb[90].mxu0  ;;  %v5772_v19 = vpop.f32.mrb[90].mxu1 }
 0x1da   : > { %7690 = vst [vmem:[#allocation120_spill] sm:$0xff] %v5768_v35  ;;  %7691 = vst [vmem:[#allocation121_spill] sm:$0xff] %v5772_v19  ;;  %v5774_v27 = vpop.f32.mrb[91].mxu0  ;;  %v5780_v33 = vpop.f32.mrb[91].mxu1 }
 0x1db   : > { %7692 = vst [vmem:[#allocation122_spill] sm:$0xff] %v5774_v27  ;;  %7693 = vst [vmem:[#allocation123_spill] sm:$0xff] %v5780_v33  ;;  %v7705_v33 = vmax.f32 %v5606_v21, %v5594_v58 }
 0x1dd   : > { %v5784_v49 = vpop.f32.mrb[92].mxu0  ;;  %v5788_v45 = vpop.f32.mrb[92].mxu1 }
 0x1de   : > { %7694 = vst [vmem:[#allocation124_spill] sm:$0xff] %v5784_v49  ;;  %v5786_v36 = vpop.f32.mrb[93].mxu0  ;;  %7696 = vst [vmem:[#allocation126_spill] sm:$0xff] %v5788_v45  ;;  %v5790_v32 = vpop.f32.mrb[93].mxu1 }
 0x1df   : > { %7695 = vst [vmem:[#allocation125_spill] sm:$0xff] %v5786_v36  ;;  %7697 = vst [vmem:[#allocation127_spill] sm:$0xff] %v5790_v32 }
 0x1e1   : > { %v5792_v35 = vpop.f32.mrb[94].mxu0  ;;  %v5796_v52 = vpop.f32.mrb[94].mxu1 }
 0x1e2   : > { %7698 = vst [vmem:[#allocation128_spill] sm:$0xff] %v5792_v35  ;;  %7699 = vst [vmem:[#allocation129_spill] sm:$0xff] %v5796_v52  ;;  %v5798_v6 = vpop.f32.mrb[95].mxu0  ;;  %v5804_v48 = vpop.f32.mrb[95].mxu1 }
 0x1e3   : > { %7700 = vst [vmem:[#allocation130_spill] sm:$0xff] %v5798_v6  ;;  %7701 = vst [vmem:[#allocation131_spill] sm:$0xff] %v5804_v48 }
 0x1e5   : > { %v5808_v55 = vpop.f32.mrb[96].mxu0  ;;  %v5816_v27 = vpop.f32.mrb[96].mxu1 }
 0x1e6   : > { %v1709_v49 = vmax.f32 %v7702_v37, %v5808_v55  ;;  %v5814_v35 = vpop.f32.mrb[97].mxu0  ;;  %v5818_v2 = vpop.f32.mrb[97].mxu1 }
 0x1e7   : > { %7703 = vst [vmem:[#allocation132_spill] sm:$0xff] %v5814_v35 }
 0x1e8   : > { %v1710_v19 = vmax.f32 %v1709_v49, %v5814_v35  ;;  %v7709_v35 = vmax.f32 %v5624_v23, %v5612_v46  ;;  %v7711_v23 = vmax.f32 %v5642_v29, %v5630_v15  ;;  %v7714_v29 = vmax.f32 %v5660_v38, %v5648_v44 }
 0x1e9   : > { %v5821_v45 = vpop.f32.mrb[98].mxu0  ;;  %v5830_v37 = vpop.f32.mrb[98].mxu1  ;;  %v7718_v38 = vmax.f32 %v5678_v25, %v5666_v63  ;;  %v7722_v25 = vmax.f32 %v5696_v53, %v5684_v54  ;;  %v4447_v63 = vmov 0   ;;  %v7727_v53 = vmax.f32 %v5710_v31, %v5702_v51  ;;  %v5928_v31 = vld [vmem:[#allocation2] sm:$0xff] }
 0x1ea   : > { %7704 = vst [vmem:[#allocation133_spill] sm:$0xff] %v5821_v45  ;;  %v1726_v52 = vmax.f32 %v7705_v33, %v5821_v45  ;;  %v1711_v32 = vmax.f32 %v1710_v19, %v5816_v27  ;;  %v5828_v48 = vpop.f32.mrb[99].mxu0  ;;  %7707 = vst [vmem:[#allocation135_spill] sm:$0xff] %v5830_v37  ;;  %v5832_v13 = vpop.f32.mrb[99].mxu1  ;;  %4039 = vset.pattern.permute.xlu1 %v4447_v63  ;;  %4038 = vset.pattern.permute.xlu0 %v4447_v63 }
 0x1eb   : > { %7706 = vst [vmem:[#allocation134_spill] sm:$0xff] %v5828_v48  ;;  %7708 = vst [vmem:[#allocation136_spill] sm:$0xff] %v5832_v13 }
 0x1ec   : > { %v1727_v36 = vmax.f32 %v1726_v52, %v5828_v48  ;;  %v1712_v6 = vmax.f32 %v1711_v32, %v5818_v2  ;;  %7731 = vst [vmem:[#allocation153_spill] sm:$0xff] %v5928_v31 }
 0x1ed   : > { %v5836_v49 = vpop.f32.mrb[100].mxu0  ;;  %v5845_v45 = vpop.f32.mrb[100].mxu1 }
 0x1ee   : > { %v1743_v21 = vmax.f32 %v7709_v35, %v5836_v49  ;;  %v1728_v33 = vmax.f32 %v1727_v36, %v5830_v37  ;;  %1713 = vmax.xlane.f32.xlu0 %v1712_v6  ;;  %v5843_v19 = vpop.f32.mrb[101].mxu0  ;;  %v5847_v58 = vpop.f32.mrb[101].mxu1 }
 0x1f0   : > { %v1744_v52 = vmax.f32 %v1743_v21, %v5843_v19  ;;  %v1729_v32 = vmax.f32 %v1728_v33, %v5832_v13 }
 0x1f1   : > { %v5851_v48 = vpop.f32.mrb[102].mxu0  ;;  %v5860_v46 = vpop.f32.mrb[102].mxu1 }
 0x1f2   : > { %7710 = vst [vmem:[#allocation137_spill] sm:$0xff] %v5851_v48  ;;  %v1760_v35 = vmax.f32 %v7711_v23, %v5851_v48  ;;  %v1745_v36 = vmax.f32 %v1744_v52, %v5845_v45  ;;  %1730 = vmax.xlane.f32.xlu0 %v1729_v32  ;;  %v5858_v6 = vpop.f32.mrb[103].mxu0  ;;  %v5862_v37 = vpop.f32.mrb[103].mxu1 }
 0x1f3   : > { %7712 = vst [vmem:[#allocation138_spill] sm:$0xff] %v5858_v6 }
 0x1f4   : > { %v1761_v21 = vmax.f32 %v1760_v35, %v5858_v6  ;;  %v1746_v33 = vmax.f32 %v1745_v36, %v5847_v58 }
 0x1f5   : > { %v5866_v13 = vpop.f32.mrb[104].mxu0  ;;  %v5875_v48 = vpop.f32.mrb[104].mxu1 }
 0x1f6   : > { %7713 = vst [vmem:[#allocation139_spill] sm:$0xff] %v5866_v13  ;;  %v1777_v23 = vmax.f32 %v7714_v29, %v5866_v13  ;;  %v1762_v52 = vmax.f32 %v1761_v21, %v5860_v46  ;;  %1747 = vmax.xlane.f32.xlu1 %v1746_v33  ;;  %v5873_v32 = vpop.f32.mrb[105].mxu0  ;;  %7716 = vst [vmem:[#allocation141_spill] sm:$0xff] %v5875_v48  ;;  %v5877_v15 = vpop.f32.mrb[105].mxu1 }
 0x1f7   : > { %7715 = vst [vmem:[#allocation140_spill] sm:$0xff] %v5873_v32 }
 0x1f8   : > { %v1778_v35 = vmax.f32 %v1777_v23, %v5873_v32  ;;  %v1763_v36 = vmax.f32 %v1762_v52, %v5862_v37 }
 0x1f9   : > { %v5881_v6 = vpop.f32.mrb[106].mxu0  ;;  %v5890_v13 = vpop.f32.mrb[106].mxu1 }
 0x1fa   : > { %7717 = vst [vmem:[#allocation142_spill] sm:$0xff] %v5881_v6  ;;  %v1794_v29 = vmax.f32 %v7718_v38, %v5881_v6  ;;  %v1779_v21 = vmax.f32 %v1778_v35, %v5875_v48  ;;  %1764 = vmax.xlane.f32.xlu1 %v1763_v36  ;;  %v5888_v33 = vpop.f32.mrb[107].mxu0  ;;  %v5892_v44 = vpop.f32.mrb[107].mxu1 }
 0x1fb   : > { %7719 = vst [vmem:[#allocation143_spill] sm:$0xff] %v5888_v33  ;;  %7720 = vst [vmem:[#allocation144_spill] sm:$0xff] %v5892_v44 }
 0x1fc   : > { %v1795_v23 = vmax.f32 %v1794_v29, %v5888_v33  ;;  %v1780_v52 = vmax.f32 %v1779_v21, %v5877_v15 }
 0x1fd   : > { %v5896_v32 = vpop.f32.mrb[108].mxu0  ;;  %v5905_v6 = vpop.f32.mrb[108].mxu1 }
 0x1fe   : > { %7721 = vst [vmem:[#allocation145_spill] sm:$0xff] %v5896_v32  ;;  %v1811_v38 = vmax.f32 %v7722_v25, %v5896_v32  ;;  %v1796_v35 = vmax.f32 %v1795_v23, %v5890_v13  ;;  %1781 = vmax.xlane.f32.xlu0 %v1780_v52  ;;  %v5903_v36 = vpop.f32.mrb[109].mxu0  ;;  %7724 = vst [vmem:[#allocation147_spill] sm:$0xff] %v5905_v6  ;;  %v5907_v48 = vpop.f32.mrb[109].mxu1 }
 0x1ff   : > { %7723 = vst [vmem:[#allocation146_spill] sm:$0xff] %v5903_v36  ;;  %7725 = vst [vmem:[#allocation148_spill] sm:$0xff] %v5907_v48 }
 0x200   : > { %v1812_v29 = vmax.f32 %v1811_v38, %v5903_v36  ;;  %v1797_v21 = vmax.f32 %v1796_v35, %v5892_v44 }
 0x201   : > { %v5911_v33 = vpop.f32.mrb[110].mxu0  ;;  %v5920_v32 = vpop.f32.mrb[110].mxu1 }
 0x202   : > { %7726 = vst [vmem:[#allocation149_spill] sm:$0xff] %v5911_v33  ;;  %v1828_v23 = vmax.f32 %v7727_v53, %v5911_v33  ;;  %v1813_v52 = vmax.f32 %v1812_v29, %v5905_v6  ;;  %1798 = vmax.xlane.f32.xlu1 %v1797_v21  ;;  %v5918_v25 = vpop.f32.mrb[111].mxu0  ;;  %7729 = vst [vmem:[#allocation151_spill] sm:$0xff] %v5920_v32  ;;  %v5922_v54 = vpop.f32.mrb[111].mxu1  ;;  %v5933_v53 = vld [vmem:[#allocation2 + $0x8] sm:$0xff] }
 0x203   : > { %7728 = vst [vmem:[#allocation150_spill] sm:$0xff] %v5918_v25  ;;  %7730 = vst [vmem:[#allocation152_spill] sm:$0xff] %v5922_v54 }
 0x204   : > { %v1829_v63 = vmax.f32 %v1828_v23, %v5918_v25  ;;  %v1814_v38 = vmax.f32 %v1813_v52, %v5907_v48  ;;  %7733 = vst [vmem:[#allocation155_spill] sm:$0xff] %v5933_v53 }
 0x206   : > { %v1830_v35 = vmax.f32 %v1829_v63, %v5920_v32  ;;  %1815 = vmax.xlane.f32.xlu0 %v1814_v38 }
 0x208   : > { %v1831_v36 = vmax.f32 %v1830_v35, %v5922_v54  ;;  %v7769_v54 = vld [vmem:[#allocation50_spill] sm:$0xff] }
 0x20a   : > { %1832 = vmax.xlane.f32.xlu1 %v1831_v36  ;;  %v5943_v36 = vld [vmem:[#allocation2 + $0x10] sm:$0xff] }
 0x20b   : > { %7735 = vst [vmem:[#allocation157_spill] sm:$0xff] %v5943_v36 }
 0x27b   : > { %v1714_v29 = vpop.xlane.xlu0 %1713 }
 0x27c   : > { %v5931_v21 = vmax.f32 %v5928_v31, %v1714_v29  ;;  %v5953_v29 = vld [vmem:[#allocation2 + $0x18] sm:$0xff] }
 0x27d   : > { %7737 = vst [vmem:[#allocation159_spill] sm:$0xff] %v5953_v29 }
 0x27e   : > { %7732 = vst [vmem:[#allocation154_spill] sm:$0xff] %v5931_v21  ;;  %3371 = vst.msk [vmem:[#allocation2] sm:$0xff] %vm183_vm1, %v5931_v21  ;;  %1868 = vperm.xlu0 %4038, %v5931_v21  }
 0x27f   : > { %v1731_v23 = vpop.xlane.xlu0 %1730 }
 0x280   : > { %v5941_v52 = vmax.f32 %v5933_v53, %v1731_v23  ;;  %v5963_v53 = vld [vmem:[#allocation2 + $0x20] sm:$0xff] }
 0x281   : > { %7739 = vst [vmem:[#allocation161_spill] sm:$0xff] %v5963_v53 }
 0x282   : > { %7734 = vst [vmem:[#allocation156_spill] sm:$0xff] %v5941_v52  ;;  %3372 = vst.msk [vmem:[#allocation2 + $0x8] sm:$0xff] %vm183_vm1, %v5941_v52  ;;  %1873 = vperm.xlu1 %4039, %v5941_v52   ;;  %v5973_v52 = vld [vmem:[#allocation2 + $0x28] sm:$0xff] }
 0x283   : > { %v1748_v38 = vpop.xlane.xlu1 %1747  ;;  %7741 = vst [vmem:[#allocation163_spill] sm:$0xff] %v5973_v52 }
 0x284   : > { %v5951_v35 = vmax.f32 %v5943_v36, %v1748_v38 }
 0x286   : > { %7736 = vst [vmem:[#allocation158_spill] sm:$0xff] %v5951_v35  ;;  %3373 = vst.msk [vmem:[#allocation2 + $0x10] sm:$0xff] %vm183_vm1, %v5951_v35  ;;  %1878 = vperm.xlu1 %4039, %v5951_v35  }
 0x287   : > { %v1765_v63 = vpop.xlane.xlu1 %1764 }
 0x288   : > { %v5961_v33 = vmax.f32 %v5953_v29, %v1765_v63  ;;  %v5983_v29 = vld [vmem:[#allocation2 + $0x30] sm:$0xff] }
 0x289   : > { %7743 = vst [vmem:[#allocation165_spill] sm:$0xff] %v5983_v29 }
 0x28a   : > { %7738 = vst [vmem:[#allocation160_spill] sm:$0xff] %v5961_v33  ;;  %3374 = vst.msk [vmem:[#allocation2 + $0x18] sm:$0xff] %vm183_vm1, %v5961_v33  ;;  %1883 = vperm.xlu1 %4039, %v5961_v33   ;;  %v5993_v33 = vld [vmem:[#allocation2 + $0x38] sm:$0xff] }
 0x28b   : > { %v1782_v23 = vpop.xlane.xlu0 %1781  ;;  %7745 = vst [vmem:[#allocation167_spill] sm:$0xff] %v5993_v33 }
 0x28c   : > { %v5971_v36 = vmax.f32 %v5963_v53, %v1782_v23 }
 0x28e   : > { %7740 = vst [vmem:[#allocation162_spill] sm:$0xff] %v5971_v36  ;;  %3375 = vst.msk [vmem:[#allocation2 + $0x20] sm:$0xff] %vm183_vm1, %v5971_v36  ;;  %1888 = vperm.xlu1 %4039, %v5971_v36  }
 0x28f   : > { %v1799_v38 = vpop.xlane.xlu1 %1798 }
 0x290   : > { %v5981_v35 = vmax.f32 %v5973_v52, %v1799_v38 }
 0x292   : > { %7742 = vst [vmem:[#allocation164_spill] sm:$0xff] %v5981_v35  ;;  %3376 = vst.msk [vmem:[#allocation2 + $0x28] sm:$0xff] %vm183_vm1, %v5981_v35  ;;  %1893 = vperm.xlu1 %4039, %v5981_v35  }
 0x293   : > { %v1816_v63 = vpop.xlane.xlu0 %1815 }
 0x294   : > { %v5991_v53 = vmax.f32 %v5983_v29, %v1816_v63 }
 0x296   : > { %7744 = vst [vmem:[#allocation166_spill] sm:$0xff] %v5991_v53  ;;  %3377 = vst.msk [vmem:[#allocation2 + $0x30] sm:$0xff] %vm183_vm1, %v5991_v53  ;;  %1898 = vperm.xlu1 %4039, %v5991_v53  }
 0x297   : > { %v1833_v23 = vpop.xlane.xlu1 %1832 }
 0x298   : > { %v6001_v36 = vmax.f32 %v5993_v33, %v1833_v23 }
 0x29a   : > { %7746 = vst [vmem:[#allocation168_spill] sm:$0xff] %v6001_v36  ;;  %3378 = vst.msk [vmem:[#allocation2 + $0x38] sm:$0xff] %vm183_vm1, %v6001_v36  ;;  %1903 = vperm.xlu1 %4039, %v6001_v36  }
 0x2fd   : > { %v6008_v63 = vpop.permute.xlu0 %1868 }
 0x2fe   : > { %v1907_v38 = vsub.f32 %v5134_v11, %v6008_v63  ;;  %v1909_v53 = vsub.f32 %v5143_v40, %v6008_v63  ;;  %v1906_v23 = vsub.f32 %v5132_v61, %v6008_v63  ;;  %v1908_v29 = vsub.f32 %v5138_v24, %v6008_v63  ;;  %v6028_v24 = vpop.f32.mrb[112].mxu0 }
 0x2ff   : > { %7747 = vst [vmem:[#allocation169_spill] sm:$0xff] %v6028_v24  ;;  %v7838_v24 = vld [vmem:[#allocation61_spill] sm:$0xff] }
 0x300   : > { %v2036_v35 = vmul.f32 1.442695, %v1907_v38  ;;  %v2040_v33 = vmul.f32 1.442695, %v1909_v53  ;;  %v2034_v52 = vmul.f32 1.442695, %v1906_v23 }
 0x301   : > { %v6018_v21 = vpop.permute.xlu1 %1873  ;;  %v2038_v36 = vmul.f32 1.442695, %v1908_v29 }
 0x302   : > { %4040 = vpow2.f32 %v2036_v35  ;;  %v1923_v31 = vsub.f32 %v5153_v42, %v6018_v21  ;;  %v1925_v11 = vsub.f32 %v5164_v57, %v6018_v21  ;;  %v1922_v40 = vsub.f32 %v5151_v41, %v6018_v21 }
 0x303   : > { %4042 = vpow2.f32 %v2040_v33  ;;  %v1924_v61 = vsub.f32 %v5157_v43, %v6018_v21 }
 0x304   : > { %4044 = vpow2.f32 %v2034_v52  ;;  %v2068_v53 = vmul.f32 1.442695, %v1923_v31  ;;  %v2072_v38 = vmul.f32 1.442695, %v1925_v11  ;;  %v2066_v29 = vmul.f32 1.442695, %v1922_v40 }
 0x305   : > { %v6030_v35 = vpop.permute.xlu1 %1878  ;;  %4046 = vpow2.f32 %v2038_v36  ;;  %v2070_v42 = vmul.f32 1.442695, %v1924_v61 }
 0x306   : > { %4048 = vpow2.f32 %v2068_v53  ;;  %v1939_v57 = vsub.f32 %v5174_v60, %v6030_v35  ;;  %v1941_v41 = vsub.f32 %v5184_v1, %v6030_v35  ;;  %v1938_v43 = vsub.f32 %v5172_v59, %v6030_v35 }
 0x307   : > { %4050 = vpow2.f32 %v2072_v38  ;;  %v1940_v33 = vsub.f32 %v5178_v62, %v6030_v35 }
 0x308   : > { %4052 = vpow2.f32 %v2066_v29  ;;  %v2100_v31 = vmul.f32 1.442695, %v1939_v57  ;;  %v2104_v52 = vmul.f32 1.442695, %v1941_v41  ;;  %v2098_v23 = vmul.f32 1.442695, %v1938_v43 }
 0x309   : > { %v6040_v36 = vpop.permute.xlu1 %1883  ;;  %4054 = vpow2.f32 %v2070_v42  ;;  %v2102_v11 = vmul.f32 1.442695, %v1940_v33  ;;  %v6061_v41 = vpop.f32.mrb[113].mxu0 }
 0x30a   : > { %4056 = vpow2.f32 %v2100_v31  ;;  %v1955_v60 = vsub.f32 %v5195_v4, %v6040_v36  ;;  %v1957_v1 = vsub.f32 %v5205_v7, %v6040_v36  ;;  %v1954_v59 = vsub.f32 %v5193_v3, %v6040_v36  ;;  %7748 = vst [vmem:[#allocation170_spill] sm:$0xff] %v6061_v41  ;;  %v6063_v43 = vpop.f32.mrb[112].mxu1 }
 0x30b   : > { %4058 = vpow2.f32 %v2104_v52  ;;  %v1956_v62 = vsub.f32 %v5197_v5, %v6040_v36  ;;  %7749 = vst [vmem:[#allocation171_spill] sm:$0xff] %v6063_v43  ;;  %v6067_v52 = vpop.f32.mrb[114].mxu0 }
 0x30c   : > { %v4041_v40 = vpop.eup %4040  ;;  %4060 = vpow2.f32 %v2098_v23  ;;  %v2132_v61 = vmul.f32 1.442695, %v1955_v60  ;;  %v2136_v53 = vmul.f32 1.442695, %v1957_v1  ;;  %v2130_v38 = vmul.f32 1.442695, %v1954_v59 }
 0x30d   : > { %v6050_v29 = vpop.eup %4042  ;;  %v6052_v42 = vpop.permute.xlu1 %1888  ;;  %2523 = vmatprep.mubr.f32.mxu0 %v4041_v40  ;;  %4062 = vpow2.f32 %v2102_v11  ;;  %v2134_v4 = vmul.f32 1.442695, %v1956_v62  ;;  %7750 = vst [vmem:[#allocation172_spill] sm:$0xff] %v6067_v52  ;;  %v7754_v59 = vpack.c.bf16 %v5510_v30, %v5498_v34  ;;  %v7837_v52 = vld [vmem:[#allocation65_spill] sm:$0xff] }
 0x30e   : > { %v4045_v7 = vpop.eup %4044  ;;  %2628 = vmatprep.mubr.f32.mxu1 %v6050_v29  ;;  %4064 = vpow2.f32 %v2132_v61  ;;  %v1971_v3 = vsub.f32 %v5216_v10, %v6052_v42  ;;  %v1973_v5 = vsub.f32 %v5226_v14, %v6052_v42  ;;  %v1970_v57 = vsub.f32 %v5214_v9, %v6052_v42  ;;  %v6069_v23 = vpop.f32.mrb[113].mxu1 }
 0x30f   : > { %v4047_v33 = vpop.eup %4046  ;;  %2524 = vmatmul.mubr.f32.vlgmr.msra.gmra.mrb[128].mxu0 %v4045_v7  ;;  %4066 = vpow2.f32 %v2136_v53  ;;  %v1972_v31 = vsub.f32 %v5218_v12, %v6052_v42  ;;  %7751 = vst [vmem:[#allocation173_spill] sm:$0xff] %v6069_v23  ;;  %v7752_v9 = vpack.c.bf16 %v5464_v39, %v5455_v0  ;;  %v7753_v12 = vpack.c.bf16 %v5468_v26, %v5460_v28  ;;  %v6100_v34 = vpop.f32.mrb[115].mxu0 }
 0x310   : > { %v6071_v10 = vpop.eup %4048  ;;  %2629 = vmatmul.mubr.f32.vlgmr.msra.gmra.mrb[128].mxu1 %v4047_v33  ;;  %4068 = vpow2.f32 %v2130_v38  ;;  %v2164_v14 = vmul.f32 1.442695, %v1971_v3  ;;  %v2168_v11 = vmul.f32 1.442695, %v1973_v5  ;;  %v2162_v60 = vmul.f32 1.442695, %v1970_v57 }
 0x311   : > { %3876 = vmatpush1.bf16.xpose.msra.mxu0 %v7752_v9  ;;  %v6076_v1 = vpop.eup %4050  ;;  %3892 = vmatpush1.bf16.xpose.msra.mxu1 %v7753_v12  ;;  %v6084_v62 = vpop.permute.xlu1 %1893  ;;  %4070 = vpow2.f32 %v2134_v4  ;;  %v2166_v61 = vmul.f32 1.442695, %v1972_v31  ;;  %v7755_v53 = vpack.c.bf16 %v5516_v8, %v5502_v56  ;;  %7756 = vst [vmem:[#allocation174_spill] sm:$0xff] %v6100_v34  ;;  %v2306_v56 = vadd.f32 %v4045_v7, %v4041_v40  ;;  %v7759_v9 = vld [vmem:[#allocation19_spill] sm:$0xff]  ;;  %v7761_v12 = vld [vmem:[#allocation14_spill] sm:$0xff] }
 0x312   : > { %3878 = vmatprep.subr.bf16.mxu0 %v7754_v59  ;;  %v6088_v0 = vpop.eup %4052  ;;  %2528 = vmatprep.mubr.f32.mxu0 %v6071_v10  ;;  %4072 = vpow2.f32 %v2164_v14  ;;  %v1987_v30 = vsub.f32 %v5237_v17, %v6084_v62  ;;  %v1989_v26 = vsub.f32 %v5247_v20, %v6084_v62  ;;  %v1986_v28 = vsub.f32 %v5235_v16, %v6084_v62  ;;  %v6102_v38 = vpop.f32.mrb[114].mxu1 }
 0x313   : > { %3894 = vmatprep.subr.bf16.mxu1 %v7755_v53  ;;  %7757 = vst [vmem:[#allocation175_spill] sm:$0xff] %v6102_v38  ;;  %v6104_v4 = vpop.eup %4054  ;;  %2633 = vmatprep.mubr.f32.mxu1 %v6076_v1  ;;  %4074 = vpow2.f32 %v2168_v11  ;;  %v1988_v17 = vsub.f32 %v5239_v18, %v6084_v62  ;;  %v2307_v40 = vadd.f32 %v4047_v33, %v2306_v56  ;;  %v7760_v11 = vld [vmem:[#allocation12_spill] sm:$0xff]  ;;  %v7762_v53 = vld [vmem:[#allocation11_spill] sm:$0xff]  ;;  %v7763_v33 = vld [vmem:[#allocation13_spill] sm:$0xff] }
 0x314   : > { %2529 = vmatmul.mubr.f32.gmra.mrb[130].mxu0 %v6088_v0  ;;  %v6112_v8 = vpop.eup %4056  ;;  %2634 = vmatmul.mubr.f32.gmra.mrb[130].mxu1 %v6104_v4  ;;  %4076 = vpow2.f32 %v2162_v60  ;;  %v2196_v16 = vmul.f32 1.442695, %v1987_v30  ;;  %v2200_v3 = vmul.f32 1.442695, %v1989_v26  ;;  %v2194_v5 = vmul.f32 1.442695, %v1986_v28 }
 0x315   : > { %v6115_v57 = vpop.eup %4058  ;;  %v6117_v31 = vpop.permute.xlu1 %1898  ;;  %2533 = vmatprep.mubr.f32.mxu0 %v6112_v8  ;;  %4078 = vpow2.f32 %v2166_v61  ;;  %v2198_v18 = vmul.f32 1.442695, %v1988_v17  ;;  %v7764_v28 = vld [vmem:[#allocation20_spill] sm:$0xff]  ;;  %v6139_v56 = vadd.f32 %v6050_v29, %v2307_v40  ;;  %v7771_v29 = vld [vmem:[#allocation59_spill] sm:$0xff]  ;;  %v7772_v40 = vld [vmem:[#allocation54_spill] sm:$0xff] }
 0x316   : > { %7758 = vst [vmem:[#allocation176_spill] sm:$0xff] %v6117_v31  ;;  %v6122_v7 = vpop.eup %4060  ;;  %2638 = vmatprep.mubr.f32.mxu1 %v6115_v57  ;;  %4080 = vpow2.f32 %v2196_v16  ;;  %v2003_v60 = vsub.f32 %v7760_v11, %v6117_v31  ;;  %v2005_v59 = vsub.f32 %v7761_v12, %v6117_v31  ;;  %v2002_v30 = vsub.f32 %v7762_v53, %v6117_v31  ;;  %v7765_v11 = vld [vmem:[#allocation51_spill] sm:$0xff]  ;;  %v7766_v12 = vld [vmem:[#allocation49_spill] sm:$0xff] }
 0x317   : > { %v6131_v61 = vpop.eup %4062  ;;  %4082 = vpow2.f32 %v2200_v3  ;;  %v2004_v26 = vsub.f32 %v7763_v33, %v6117_v31  ;;  %v1912_v17 = vsub.f32 %v7764_v28, %v6008_v63  ;;  %v7767_v53 = vpack.c.bf16 %v7765_v11, %v7766_v12  ;;  %v7768_v33 = vld [vmem:[#allocation52_spill] sm:$0xff]  ;;  %v7775_v11 = vld [vmem:[#allocation69_spill] sm:$0xff]  ;;  %v7804_v31 = vld [vmem:[#allocation62_spill] sm:$0xff] }
 0x318   : > { %2534 = vmatmul.mubr.f32.gmra.mrb[132].mxu0 %v6122_v7  ;;  %v6141_v16 = vpop.eup %4064  ;;  %2639 = vmatmul.mubr.f32.gmra.mrb[132].mxu1 %v6131_v61  ;;  %4084 = vpow2.f32 %v2194_v5  ;;  %v2228_v14 = vmul.f32 1.442695, %v2003_v60  ;;  %v2232_v3 = vmul.f32 1.442695, %v2005_v59  ;;  %v2226_v20 = vmul.f32 1.442695, %v2002_v30 }
 0x319   : > { %3880 = vmatpush1.bf16.xpose.msra.mxu0 %v7767_v53  ;;  %v6147_v39 = vpop.eup %4066  ;;  %v7770_v28 = vpack.c.bf16 %v7768_v33, %v7769_v54  ;;  %v7773_v32 = vpack.c.bf16 %v7771_v29, %v7772_v40  ;;  %v6155_v25 = vpop.permute.xlu1 %1903  ;;  %4086 = vpow2.f32 %v2198_v18  ;;  %v2230_v51 = vmul.f32 1.442695, %v2004_v26  ;;  %v7776_v60 = vld [vmem:[#allocation70_spill] sm:$0xff]  ;;  %v7777_v12 = vld [vmem:[#allocation60_spill] sm:$0xff]  ;;  %2538 = vmatprep.mubr.f32.mxu0 %v6141_v16 }
 0x31a   : > { %7774 = vst [vmem:[#allocation19_spill] sm:$0xff] %v6155_v25  ;;  %v1914_v5 = vsub.f32 %v7775_v11, %v6008_v63  ;;  %v1915_v59 = vsub.f32 %v7776_v60, %v6008_v63  ;;  %v6161_v30 = vpop.eup %4068  ;;  %v7778_v53 = vld [vmem:[#allocation56_spill] sm:$0xff]  ;;  %4088 = vpow2.f32 %v2228_v14  ;;  %v7781_v18 = vld [vmem:[#allocation18_spill] sm:$0xff]  ;;  %2643 = vmatprep.mubr.f32.mxu1 %v6147_v39  ;;  %v7783_v11 = vld [vmem:[#allocation17_spill] sm:$0xff] }
 0x31b   : > { %3896 = vmatpush1.bf16.xpose.msra.mxu1 %v7770_v28  ;;  %3882 = vmatprep.subr.bf16.mxu0 %v7773_v32  ;;  %v7779_v54 = vpack.c.bf16 %v7777_v12, %v7778_v53  ;;  %v7780_v32 = vld [vmem:[#allocation16_spill] sm:$0xff]  ;;  %v2021_v26 = vsub.f32 %v7781_v18, %v6155_v25  ;;  %v7782_v28 = vld [vmem:[#allocation15_spill] sm:$0xff]  ;;  %v6173_v40 = vpop.eup %4070  ;;  %4090 = vpow2.f32 %v2232_v3  ;;  %v2020_v60 = vsub.f32 %v7783_v11, %v6155_v25 }
 0x31c   : > { %v2019_v33 = vsub.f32 %v7780_v32, %v6155_v25  ;;  %v2018_v29 = vsub.f32 %v7782_v28, %v6155_v25  ;;  %2539 = vmatmul.mubr.f32.gmra.mrb[134].mxu0 %v6161_v30  ;;  %v7784_v14 = vld [vmem:[#allocation71_spill] sm:$0xff]  ;;  %v1917_v53 = vsub.f32 %v5578_v22, %v6008_v63  ;;  %v6185_v32 = vpop.f32.mrb[116].mxu0  ;;  %v6187_v18 = vpop.eup %4072  ;;  %2644 = vmatmul.mubr.f32.gmra.mrb[134].mxu1 %v6173_v40  ;;  %4092 = vpow2.f32 %v2226_v20 }
 0x31d   : > { %3898 = vmatprep.subr.bf16.mxu1 %v7779_v54  ;;  %v1916_v12 = vsub.f32 %v7784_v14, %v6008_v63  ;;  %v6183_v54 = vpop.f32.mrb[115].mxu1  ;;  %7786 = vst [vmem:[#allocation14_spill] sm:$0xff] %v6185_v32  ;;  %v2264_v3 = vmul.f32 1.442695, %v2021_v26  ;;  %v6190_v6 = vpop.eup %4074  ;;  %2543 = vmatprep.mubr.f32.mxu0 %v6187_v18  ;;  %4094 = vpow2.f32 %v2230_v51  ;;  %v2262_v11 = vmul.f32 1.442695, %v2020_v60 }
 0x31e   : > { %7785 = vst [vmem:[#allocation12_spill] sm:$0xff] %v6183_v54  ;;  %v2260_v28 = vmul.f32 1.442695, %v2019_v33  ;;  %v2258_v48 = vmul.f32 1.442695, %v2018_v29  ;;  %v1918_v22 = vsub.f32 %v5808_v55, %v6008_v63  ;;  %v7787_v14 = vld [vmem:[#allocation132_spill] sm:$0xff]  ;;  %v6201_v20 = vpop.eup %4076  ;;  %2648 = vmatprep.mubr.f32.mxu1 %v6190_v6  ;;  %v7790_v33 = vsub.f32 %v5322_v47, %v6008_v63 }
 0x31f   : > { %v1919_v32 = vsub.f32 %v7787_v14, %v6008_v63  ;;  %v6197_v54 = vpop.f32.mrb[117].mxu0  ;;  %v6199_v23 = vpop.f32.mrb[116].mxu1  ;;  %v1920_v26 = vsub.f32 %v5816_v27, %v6008_v63  ;;  %v1921_v55 = vsub.f32 %v5818_v2, %v6008_v63  ;;  %v7796_v2 = vld [vmem:[#allocation57_spill] sm:$0xff]  ;;  %v6230_v25 = vmul.f32 1.442695, %v1914_v5 }
 0x320   : > { %7788 = vst [vmem:[#allocation11_spill] sm:$0xff] %v6197_v54  ;;  %7789 = vst [vmem:[#allocation13_spill] sm:$0xff] %v6199_v23  ;;  %4096 = vpow2.f32 %v2260_v28  ;;  %v2044_v51 = vmul.f32 1.442695, %v7790_v33  ;;  %v6211_v29 = vpop.f32.mrb[118].mxu0  ;;  %v6213_v60 = vpop.f32.mrb[117].mxu1  ;;  %2544 = vmatmul.mubr.f32.gmra.mrb[136].mxu0 %v6201_v20  ;;  %v7793_v28 = vsub.f32 %v5326_v50, %v6008_v63  ;;  %v7794_v33 = vsub.f32 %v7759_v9, %v6008_v63 }
 0x321   : > { %7791 = vst [vmem:[#allocation20_spill] sm:$0xff] %v6211_v29  ;;  %7792 = vst [vmem:[#allocation51_spill] sm:$0xff] %v6213_v60  ;;  %v6215_v14 = vpop.eup %4078  ;;  %4098 = vpow2.f32 %v2264_v3  ;;  %v2046_v23 = vmul.f32 1.442695, %v1912_v17  ;;  %v7797_v60 = vld [vmem:[#allocation53_spill] sm:$0xff]  ;;  %v7800_v63 = vld [vmem:[#allocation58_spill] sm:$0xff] }
 0x322   : > { %v2048_v47 = vmul.f32 1.442695, %v7793_v28  ;;  %v2042_v27 = vmul.f32 1.442695, %v7794_v33  ;;  %v6224_v54 = vpop.eup %4080  ;;  %2649 = vmatmul.mubr.f32.gmra.mrb[136].mxu1 %v6215_v14  ;;  %v7798_v29 = vpack.c.bf16 %v7796_v2, %v7797_v60  ;;  %4100 = vpow2.f32 %v2258_v48  ;;  %v7801_v9 = vld [vmem:[#allocation55_spill] sm:$0xff] }
 0x323   : > { %7795 = vst [vmem:[#allocation49_spill] sm:$0xff] %v6224_v54  ;;  %v6232_v3 = vmul.f32 1.442695, %v1915_v59  ;;  %v6234_v50 = vmul.f32 1.442695, %v1916_v12  ;;  %v6236_v28 = vpop.eup %4082  ;;  %v7802_v17 = vpack.c.bf16 %v7800_v63, %v7801_v9  ;;  %v7803_v33 = vld [vmem:[#allocation67_spill] sm:$0xff]  ;;  %4102 = vpow2.f32 %v2262_v11  ;;  %2548 = vmatprep.mubr.f32.mxu0 %v6224_v54 }
 0x324   : > { %3884 = vmatpush1.bf16.xpose.msra.mxu0 %v7798_v29  ;;  %7799 = vst [vmem:[#allocation52_spill] sm:$0xff] %v6236_v28  ;;  %v7805_v38 = vpack.c.bf16 %v7803_v33, %v7804_v31  ;;  %v6244_v60 = vmul.f32 1.442695, %v1917_v53  ;;  %v6246_v48 = vmul.f32 1.442695, %v1918_v22  ;;  %v6250_v59 = vpop.eup %4084  ;;  %v7807_v12 = vld [vmem:[#allocation68_spill] sm:$0xff]  ;;  %4104 = vpow2.f32 %v2044_v51  ;;  %2653 = vmatprep.mubr.f32.mxu1 %v6236_v28 }
 0x325   : > { %3900 = vmatpush1.bf16.xpose.msra.mxu1 %v7802_v17  ;;  %v6248_v5 = vmul.f32 1.442695, %v1919_v32  ;;  %7806 = vst [vmem:[#allocation50_spill] sm:$0xff] %v6250_v59  ;;  %v7808_v29 = vld [vmem:[#allocation64_spill] sm:$0xff]  ;;  %v6256_v63 = vmul.f32 1.442695, %v1920_v26  ;;  %v6262_v11 = vpop.eup %4086  ;;  %2549 = vmatmul.mubr.f32.gmra.mrb[138].mxu0 %v6250_v59  ;;  %4106 = vpow2.f32 %v2048_v47  ;;  %v2323_v26 = vadd.f32 %v6088_v0, %v6071_v10 }
 0x326   : > { %3886 = vmatprep.subr.bf16.mxu0 %v7805_v38  ;;  %v7809_v2 = vpack.c.bf16 %v7807_v12, %v7808_v29  ;;  %v6258_v31 = vmul.f32 1.442695, %v1921_v55  ;;  %v7810_v38 = vld [vmem:[#allocation21_spill] sm:$0xff]  ;;  %7811 = vst [vmem:[#allocation59_spill] sm:$0xff] %v6262_v11  ;;  %v7812_v32 = vld [vmem:[#allocation22_spill] sm:$0xff]  ;;  %v7813_v9 = vld [vmem:[#allocation23_spill] sm:$0xff]  ;;  %v6276_v33 = vpop.eup %4088  ;;  %2654 = vmatmul.mubr.f32.gmra.mrb[138].mxu1 %v6262_v11  ;;  %4108 = vpow2.f32 %v2042_v27 }
 0x327   : > { %v1926_v53 = vsub.f32 %v7810_v38, %v6018_v21  ;;  %v1927_v22 = vsub.f32 %v7812_v32, %v6018_v21  ;;  %v1928_v51 = vsub.f32 %v7813_v9, %v6018_v21  ;;  %v6272_v55 = vpop.f32.mrb[119].mxu0  ;;  %v6274_v17 = vpop.f32.mrb[118].mxu1  ;;  %7816 = vst [vmem:[#allocation70_spill] sm:$0xff] %v6276_v33  ;;  %v7817_v47 = vld [vmem:[#allocation24_spill] sm:$0xff]  ;;  %v7819_v38 = vld [vmem:[#allocation73_spill] sm:$0xff]  ;;  %2553 = vmatprep.mubr.f32.mxu0 %v6276_v33  ;;  %4110 = vpow2.f32 %v2046_v23  ;;  %v7823_v27 = vld [vmem:[#allocation74_spill] sm:$0xff] }
 0x328   : > { %3902 = vmatprep.subr.bf16.mxu1 %v7809_v2  ;;  %7814 = vst [vmem:[#allocation54_spill] sm:$0xff] %v6272_v55  ;;  %7815 = vst [vmem:[#allocation69_spill] sm:$0xff] %v6274_v17  ;;  %v1929_v12 = vsub.f32 %v7817_v47, %v6018_v21  ;;  %v7818_v29 = vld [vmem:[#allocation72_spill] sm:$0xff]  ;;  %v1931_v32 = vsub.f32 %v7819_v38, %v6018_v21  ;;  %v6285_v9 = vpop.f32.mrb[119].mxu1  ;;  %v6287_v10 = vpop.f32.mrb[120].mxu0  ;;  %v1932_v17 = vsub.f32 %v7823_v27, %v6018_v21  ;;  %v7824_v47 = vld [vmem:[#allocation75_spill] sm:$0xff] }
 0x329   : > { %v1930_v2 = vsub.f32 %v7818_v29, %v6018_v21  ;;  %7820 = vst [vmem:[#allocation60_spill] sm:$0xff] %v6285_v9  ;;  %7821 = vst [vmem:[#allocation56_spill] sm:$0xff] %v6287_v10  ;;  %v6289_v0 = vpop.eup %4090  ;;  %v1933_v55 = vsub.f32 %v7824_v47, %v6018_v21  ;;  %v2324_v29 = vadd.f32 %v6104_v4, %v2323_v26  ;;  %v6297_v43 = vpop.f32.mrb[121].mxu0  ;;  %v7828_v10 = vld [vmem:[#allocation133_spill] sm:$0xff]  ;;  %v7829_v23 = vld [vmem:[#allocation134_spill] sm:$0xff]  ;;  %4112 = vpow2.f32 %v6230_v25 }
 0x32a   : > { %7822 = vst [vmem:[#allocation16_spill] sm:$0xff] %v6289_v0  ;;  %7825 = vst [vmem:[#allocation18_spill] sm:$0xff] %v6297_v43  ;;  %v6299_v38 = vpop.f32.mrb[120].mxu1  ;;  %v6301_v9 = vpop.eup %4092  ;;  %2658 = vmatprep.mubr.f32.mxu1 %v6289_v0  ;;  %v1934_v34 = vsub.f32 %v7828_v10, %v6018_v21  ;;  %v1935_v41 = vsub.f32 %v7829_v23, %v6018_v21  ;;  %v7833_v43 = vld [vmem:[#allocation135_spill] sm:$0xff]  ;;  %v7841_v33 = vld [vmem:[#allocation66_spill] sm:$0xff]  ;;  %4114 = vpow2.f32 %v6232_v3 }
 0x32b   : > { %7826 = vst [vmem:[#allocation15_spill] sm:$0xff] %v6299_v38  ;;  %7827 = vst [vmem:[#allocation17_spill] sm:$0xff] %v6301_v9  ;;  %v6312_v26 = vpop.f32.mrb[122].mxu0  ;;  %v6314_v47 = vpop.f32.mrb[121].mxu1  ;;  %2554 = vmatmul.mubr.f32.gmra.mrb[140].mxu0 %v6301_v9  ;;  %v1936_v10 = vsub.f32 %v7833_v43, %v6018_v21  ;;  %v6322_v0 = vadd.f32 %v6076_v1, %v2324_v29  ;;  %v7839_v43 = vpack.c.bf16 %v7837_v52, %v7838_v24  ;;  %v7842_v4 = vld [vmem:[#allocation63_spill] sm:$0xff]  ;;  %v7853_v25 = vld [vmem:[#allocation25_spill] sm:$0xff] }
 0x32c   : > { %7830 = vst [vmem:[#allocation71_spill] sm:$0xff] %v6312_v26  ;;  %7831 = vst [vmem:[#allocation132_spill] sm:$0xff] %v6314_v47  ;;  %v6316_v38 = vpop.eup %4094  ;;  %v6328_v27 = vpop.f32.mrb[123].mxu0  ;;  %v2074_v1 = vmul.f32 1.442695, %v1926_v53  ;;  %v7843_v28 = vpack.c.bf16 %v7841_v33, %v7842_v4  ;;  %4116 = vpow2.f32 %v6234_v50 }
 0x32d   : > { %7832 = vst [vmem:[#allocation57_spill] sm:$0xff] %v6316_v38  ;;  %7834 = vst [vmem:[#allocation53_spill] sm:$0xff] %v6328_v27  ;;  %v6330_v26 = vpop.f32.mrb[122].mxu1  ;;  %v6332_v47 = vpop.eup %4096  ;;  %2659 = vmatmul.mubr.f32.gmra.mrb[140].mxu1 %v6316_v38  ;;  %3888 = vmatpush1.bf16.xpose.msra.mxu0 %v7839_v43  ;;  %v2076_v29 = vmul.f32 1.442695, %v1927_v22  ;;  %v7844_v27 = vld [vmem:[#allocation106_spill] sm:$0xff]  ;;  %4118 = vpow2.f32 %v6244_v60 }
 0x32e   : > { %7835 = vst [vmem:[#allocation58_spill] sm:$0xff] %v6330_v26  ;;  %7836 = vst [vmem:[#allocation55_spill] sm:$0xff] %v6332_v47  ;;  %v6338_v9 = vmul.f32 1.442695, %v1928_v51  ;;  %v6340_v23 = vpop.eup %4098  ;;  %3904 = vmatpush1.bf16.xpose.msra.mxu1 %v7843_v28  ;;  %v7845_v26 = vld [vmem:[#allocation101_spill] sm:$0xff]  ;;  %v7847_v38 = vld [vmem:[#allocation136_spill] sm:$0xff]  ;;  %2558 = vmatprep.mubr.f32.mxu0 %v6332_v47  ;;  %4120 = vpow2.f32 %v2074_v1 }
 0x32f   : > { %7840 = vst [vmem:[#allocation67_spill] sm:$0xff] %v6340_v23  ;;  %v7846_v11 = vpack.c.bf16 %v7844_v27, %v7845_v26  ;;  %v1937_v59 = vsub.f32 %v7847_v38, %v6018_v21  ;;  %v2080_v54 = vmul.f32 1.442695, %v1929_v12  ;;  %v6350_v24 = vmul.f32 1.442695, %v1930_v2  ;;  %v6354_v53 = vpop.eup %4100  ;;  %v7849_v22 = vld [vmem:[#allocation107_spill] sm:$0xff]  ;;  %2663 = vmatprep.mubr.f32.mxu1 %v6340_v23 }
 0x330   : > { %v6352_v52 = vmul.f32 1.442695, %v1931_v32  ;;  %7848 = vst [vmem:[#allocation62_spill] sm:$0xff] %v6354_v53  ;;  %v7850_v51 = vld [vmem:[#allocation103_spill] sm:$0xff]  ;;  %v6361_v28 = vmul.f32 1.442695, %v1932_v17  ;;  %v6367_v33 = vpop.eup %4102  ;;  %2559 = vmatmul.mubr.f32.gmra.mrb[142].mxu0 %v6354_v53  ;;  %v1942_v17 = vsub.f32 %v7853_v25, %v6030_v35  ;;  %4122 = vpow2.f32 %v2076_v29 }
 0x331   : > { %3906 = vmatprep.subr.bf16.mxu0 %v7846_v11  ;;  %v7851_v43 = vpack.c.bf16 %v7849_v22, %v7850_v51  ;;  %v6363_v11 = vmul.f32 1.442695, %v1933_v55  ;;  %v6365_v21 = vmul.f32 1.442695, %v1934_v34  ;;  %7852 = vst [vmem:[#allocation68_spill] sm:$0xff] %v6367_v33  ;;  %v4105_v32 = vpop.eup %4104  ;;  %2664 = vmatmul.mubr.f32.gmra.mrb[142].mxu1 %v6367_v33  ;;  %v7854_v34 = vld [vmem:[#allocation26_spill] sm:$0xff]  ;;  %4124 = vpow2.f32 %v6246_v48 }
 0x332   : > { %v6372_v12 = vmul.f32 1.442695, %v1935_v41  ;;  %v6374_v2 = vmul.f32 1.442695, %v1936_v10  ;;  %v1943_v55 = vsub.f32 %v7854_v34, %v6030_v35  ;;  %v7855_v38 = vld [vmem:[#allocation27_spill] sm:$0xff]  ;;  %v2340_v41 = vadd.f32 %v6122_v7, %v6112_v8  ;;  %v6386_v3 = vpop.f32.mrb[123].mxu1  ;;  %v4107_v26 = vpop.eup %4106  ;;  %2733 = vmatprep.mubr.f32.mxu0 %v4105_v32 }
 0x333   : > { %3922 = vmatprep.subr.bf16.mxu1 %v7851_v43  ;;  %v1944_v27 = vsub.f32 %v7855_v38, %v6030_v35  ;;  %7856 = vst [vmem:[#allocation64_spill] sm:$0xff] %v6386_v3  ;;  %v6388_v4 = vpop.f32.mrb[124].mxu0  ;;  %v7858_v10 = vld [vmem:[#allocation28_spill] sm:$0xff]  ;;  %v4109_v8 = vpop.eup %4108  ;;  %2838 = vmatprep.mubr.f32.mxu1 %v4107_v26  ;;  %v7862_v7 = vld [vmem:[#allocation77_spill] sm:$0xff]  ;;  %v7863_v23 = vld [vmem:[#allocation78_spill] sm:$0xff]  ;;  %4126 = vpow2.f32 %v2080_v54 }
 0x334   : > { %7857 = vst [vmem:[#allocation21_spill] sm:$0xff] %v6388_v4  ;;  %v1945_v50 = vsub.f32 %v7858_v10, %v6030_v35  ;;  %v7859_v22 = vld [vmem:[#allocation76_spill] sm:$0xff]  ;;  %v6397_v34 = vpop.f32.mrb[125].mxu0  ;;  %v1947_v38 = vsub.f32 %v7862_v7, %v6030_v35  ;;  %v1948_v60 = vsub.f32 %v7863_v23, %v6030_v35  ;;  %v2341_v33 = vadd.f32 %v6131_v61, %v2340_v41  ;;  %v4111_v10 = vpop.eup %4110  ;;  %v7865_v47 = vld [vmem:[#allocation82_spill] sm:$0xff]  ;;  %v7870_v29 = vld [vmem:[#allocation137_spill] sm:$0xff] }
 0x335   : > { %v1946_v51 = vsub.f32 %v7859_v22, %v6030_v35  ;;  %v7860_v43 = vld [vmem:[#allocation80_spill] sm:$0xff]  ;;  %7861 = vst [vmem:[#allocation22_spill] sm:$0xff] %v6397_v34  ;;  %v2309_v53 = vadd.f32 %v4109_v8, %v6139_v56  ;;  %2734 = vmatmul.mubr.f32.vlgmr.msra.gmra.mrb[144].mxu0 %v4109_v8  ;;  %v7864_v22 = vld [vmem:[#allocation81_spill] sm:$0xff]  ;;  %2839 = vmatmul.mubr.f32.vlgmr.msra.gmra.mrb[144].mxu1 %v4111_v10  ;;  %v7869_v56 = vld [vmem:[#allocation83_spill] sm:$0xff]  ;;  %v6420_v8 = vpop.f32.mrb[126].mxu0  ;;  %v6422_v25 = vpop.f32.mrb[124].mxu1  ;;  %4128 = vpow2.f32 %v6338_v9 }
 0x336   : > { %v7866_v1 = vld [vmem:[#allocation104_spill] sm:$0xff]  ;;  %v6414_v61 = vadd.f32 %v6115_v57, %v2341_v33  ;;  %7871 = vst [vmem:[#allocation23_spill] sm:$0xff] %v6420_v8  ;;  %7872 = vst [vmem:[#allocation24_spill] sm:$0xff] %v6422_v25  ;;  %v7873_v48 = vld [vmem:[#allocation105_spill] sm:$0xff]  ;;  %v6434_v23 = vpop.f32.mrb[127].mxu0  ;;  %v6436_v8 = vpop.f32.mrb[125].mxu1  ;;  %4130 = vpow2.f32 %v6248_v5 }
 0x337   : > { %v7867_v7 = vld [vmem:[#allocation100_spill] sm:$0xff]  ;;  %v2310_v34 = vadd.f32 %v4105_v32, %v2309_v53  ;;  %v7874_v3 = vld [vmem:[#allocation102_spill] sm:$0xff]  ;;  %7880 = vst [vmem:[#allocation72_spill] sm:$0xff] %v6436_v8  ;;  %v6439_v53 = vmul.f32 1.442695, %v1937_v59  ;;  %v7882_v54 = vld [vmem:[#allocation111_spill] sm:$0xff]  ;;  %v6453_v59 = vpop.eup %4112  ;;  %4132 = vpow2.f32 %v6256_v63  ;;  %v2357_v63 = vadd.f32 %v6161_v30, %v6141_v16 }
 0x338   : > { %v7868_v4 = vpack.c.bf16 %v7866_v1, %v7867_v7  ;;  %v7875_v44 = vpack.c.bf16 %v7873_v48, %v7874_v3  ;;  %v7877_v1 = vld [vmem:[#allocation109_spill] sm:$0xff]  ;;  %v7879_v33 = vld [vmem:[#allocation138_spill] sm:$0xff]  ;;  %v7884_v3 = vld [vmem:[#allocation79_spill] sm:$0xff]  ;;  %v2106_v41 = vmul.f32 1.442695, %v1942_v17  ;;  %7887 = vst [vmem:[#allocation75_spill] sm:$0xff] %v6453_v59  ;;  %4134 = vpow2.f32 %v6258_v31 }
 0x339   : > { %v1949_v48 = vsub.f32 %v7884_v3, %v6030_v35  ;;  %v2108_v7 = vmul.f32 1.442695, %v1943_v55  ;;  %v6458_v3 = vpop.eup %4114  ;;  %v6461_v8 = vmul.f32 1.442695, %v1947_v38  ;;  %v6463_v5 = vmul.f32 1.442695, %v1948_v60 }
 0x33a   : > { %3908 = vmatpush1.bf16.xpose.msra.mxu0 %v7868_v4  ;;  %3924 = vmatpush1.bf16.xpose.msra.mxu1 %v7875_v44  ;;  %v7876_v4 = vld [vmem:[#allocation114_spill] sm:$0xff]  ;;  %v7881_v44 = vld [vmem:[#allocation115_spill] sm:$0xff]  ;;  %7888 = vst [vmem:[#allocation133_spill] sm:$0xff] %v6458_v3  ;;  %v6465_v17 = vpop.eup %4116  ;;  %4136 = vpow2.f32 %v6350_v24  ;;  %v7895_v16 = vld [vmem:[#allocation108_spill] sm:$0xff] }
 0x33b   : > { %v7878_v57 = vpack.c.bf16 %v7876_v4, %v7877_v1  ;;  %v7883_v32 = vpack.c.bf16 %v7881_v44, %v7882_v54  ;;  %v6448_v1 = vpop.f32.mrb[126].mxu1  ;;  %v2110_v44 = vmul.f32 1.442695, %v1944_v27  ;;  %v2112_v54 = vmul.f32 1.442695, %v1945_v50  ;;  %7889 = vst [vmem:[#allocation134_spill] sm:$0xff] %v6465_v17 }
 0x33c   : > { %7885 = vst [vmem:[#allocation73_spill] sm:$0xff] %v6448_v1  ;;  %v6451_v9 = vpop.f32.mrb[127].mxu1  ;;  %v6468_v55 = vmul.f32 1.442695, %v1949_v48  ;;  %v7890_v27 = vld [vmem:[#allocation33_spill] sm:$0xff]  ;;  %4138 = vpow2.f32 %v6352_v52  ;;  %v7893_v38 = vld [vmem:[#allocation35_spill] sm:$0xff]  ;;  %v2358_v48 = vadd.f32 %v6173_v40, %v2357_v63 }
 0x33d   : > { %3910 = vmatprep.subr.bf16.mxu0 %v7878_v57  ;;  %3926 = vmatprep.subr.bf16.mxu1 %v7883_v32  ;;  %v2311_v57 = vadd.f32 %v4111_v10, %v2310_v34  ;;  %7886 = vst [vmem:[#allocation74_spill] sm:$0xff] %v6451_v9  ;;  %v6456_v32 = vmul.f32 1.442695, %v1946_v51  ;;  %v6474_v51 = vpop.eup %4118  ;;  %4140 = vpow2.f32 %v6361_v28  ;;  %v7894_v10 = vld [vmem:[#allocation112_spill] sm:$0xff]  ;;  %v7899_v28 = vld [vmem:[#allocation113_spill] sm:$0xff]  ;;  %v7900_v9 = vld [vmem:[#allocation110_spill] sm:$0xff] }
 0x33e   : > { %7891 = vst [vmem:[#allocation135_spill] sm:$0xff] %v6474_v51  ;;  %v4121_v60 = vpop.eup %4120  ;;  %v7896_v30 = vpack.c.bf16 %v7894_v10, %v7895_v16  ;;  %v7898_v52 = vld [vmem:[#allocation84_spill] sm:$0xff]  ;;  %4142 = vpow2.f32 %v6363_v11  ;;  %v7901_v1 = vpack.c.bf16 %v7899_v28, %v7900_v9  ;;  %v7902_v10 = vld [vmem:[#allocation122_spill] sm:$0xff]  ;;  %v7903_v16 = vld [vmem:[#allocation117_spill] sm:$0xff] }
 0x33f   : > { %v2312_v4 = vadd.f32 %v4107_v26, %v2311_v57  ;;  %v7892_v26 = vld [vmem:[#allocation34_spill] sm:$0xff]  ;;  %v7897_v57 = vld [vmem:[#allocation36_spill] sm:$0xff]  ;;  %v2326_v24 = vadd.f32 %v4121_v60, %v6322_v0  ;;  %v7904_v40 = vpack.c.bf16 %v7902_v10, %v7903_v16  ;;  %v7905_v63 = vld [vmem:[#allocation85_spill] sm:$0xff]  ;;  %4144 = vpow2.f32 %v2106_v41 }
 0x340   : > { %v7908_v50 = vld [vmem:[#allocation119_spill] sm:$0xff]  ;;  %v6508_v0 = vadd.f32 %v6147_v39, %v2358_v48  ;;  %4146 = vpow2.f32 %v2108_v7  ;;  %v7913_v39 = vld [vmem:[#allocation140_spill] sm:$0xff] }
 0x341   : > { %v2313_v31 = vadd.f32 %v6453_v59, %v2312_v4  ;;  %v4123_v59 = vpop.eup %4122  ;;  %v7911_v28 = vld [vmem:[#allocation87_spill] sm:$0xff]  ;;  %4148 = vpow2.f32 %v6365_v21  ;;  %v7918_v48 = vld [vmem:[#allocation32_spill] sm:$0xff] }
 0x342   : > { %3912 = vmatpush1.bf16.xpose.msra.mxu0 %v7896_v30  ;;  %3928 = vmatpush1.bf16.xpose.msra.mxu1 %v7901_v1  ;;  %v6502_v4 = vpop.eup %4124  ;;  %v7910_v1 = vld [vmem:[#allocation86_spill] sm:$0xff]  ;;  %v2327_v30 = vadd.f32 %v4123_v59, %v2326_v24  ;;  %v7912_v41 = vld [vmem:[#allocation139_spill] sm:$0xff]  ;;  %4150 = vpow2.f32 %v2112_v54 }
 0x343   : > { %v2314_v34 = vadd.f32 %v6458_v3, %v2313_v31  ;;  %3914 = vmatprep.subr.bf16.mxu0 %v7904_v40  ;;  %7906 = vst [vmem:[#allocation65_spill] sm:$0xff] %v6502_v4  ;;  %2738 = vmatprep.mubr.f32.mxu0 %v4123_v59  ;;  %v7907_v31 = vld [vmem:[#allocation123_spill] sm:$0xff]  ;;  %v4127_v16 = vpop.eup %4126  ;;  %v7916_v24 = vld [vmem:[#allocation30_spill] sm:$0xff]  ;;  %4152 = vpow2.f32 %v2110_v44  ;;  %v1961_v3 = vsub.f32 %v7918_v48, %v6040_v36 }
 0x344   : > { %v7909_v11 = vpack.c.bf16 %v7907_v31, %v7908_v50  ;;  %2739 = vmatmul.mubr.f32.gmra.mrb[146].mxu0 %v4121_v60  ;;  %v4129_v50 = vpop.eup %4128  ;;  %2843 = vmatprep.mubr.f32.mxu1 %v4127_v16  ;;  %v7914_v31 = vld [vmem:[#allocation141_spill] sm:$0xff]  ;;  %v1959_v21 = vsub.f32 %v7916_v24, %v6040_v36  ;;  %v7920_v10 = vld [vmem:[#allocation31_spill] sm:$0xff]  ;;  %4154 = vpow2.f32 %v6372_v12  ;;  %v7923_v48 = vsub.f32 %v5843_v19, %v6030_v35 }
 0x345   : > { %v2315_v40 = vadd.f32 %v6465_v17, %v2314_v34  ;;  %v6524_v34 = vpop.eup %4130  ;;  %v2328_v59 = vadd.f32 %v4129_v50, %v2327_v30  ;;  %2844 = vmatmul.mubr.f32.gmra.mrb[146].mxu1 %v4129_v50  ;;  %v1960_v17 = vsub.f32 %v7920_v10, %v6040_v36  ;;  %4156 = vpow2.f32 %v6374_v2 }
 0x346   : > { %3930 = vmatprep.subr.bf16.mxu1 %v7909_v11  ;;  %7915 = vst [vmem:[#allocation61_spill] sm:$0xff] %v6524_v34  ;;  %v6529_v60 = vpop.eup %4132  ;;  %v7919_v11 = vld [vmem:[#allocation29_spill] sm:$0xff]  ;;  %v7924_v10 = vsub.f32 %v5845_v45, %v6030_v35  ;;  %v7925_v12 = vsub.f32 %v5847_v58, %v6030_v35  ;;  %4158 = vpow2.f32 %v6439_v53  ;;  %v2140_v45 = vmul.f32 1.442695, %v1959_v21  ;;  %v7932_v58 = vld [vmem:[#allocation130_spill] sm:$0xff]  ;;  %v7936_v53 = vld [vmem:[#allocation127_spill] sm:$0xff] }
 0x347   : > { %v2316_v7 = vadd.f32 %v6474_v51, %v2315_v40  ;;  %7917 = vst [vmem:[#allocation66_spill] sm:$0xff] %v6529_v60  ;;  %v1958_v9 = vsub.f32 %v7919_v11, %v6040_v36  ;;  %v6537_v25 = vpop.eup %4134  ;;  %v2329_v54 = vadd.f32 %v4127_v16, %v2328_v59  ;;  %v7922_v40 = vsub.f32 %v5836_v49, %v6030_v35  ;;  %v7926_v49 = vld [vmem:[#allocation120_spill] sm:$0xff]  ;;  %v7933_v35 = vld [vmem:[#allocation125_spill] sm:$0xff] }
 0x348   : > { %7921 = vst [vmem:[#allocation63_spill] sm:$0xff] %v6537_v25  ;;  %v6544_v50 = vpop.eup %4136  ;;  %v6550_v11 = vmul.f32 1.442695, %v7923_v48  ;;  %v6560_v16 = vmul.f32 1.442695, %v7925_v12  ;;  %v7927_v59 = vld [vmem:[#allocation116_spill] sm:$0xff]  ;;  %v7934_v12 = vpack.c.bf16 %v7932_v58, %v7933_v35  ;;  %4160 = vpow2.f32 %v6456_v32 }
 0x349   : > { %v2317_v30 = vadd.f32 %v6502_v4, %v2316_v7  ;;  %v2122_v44 = vmul.f32 1.442695, %v7922_v40  ;;  %v6555_v7 = vmul.f32 1.442695, %v7924_v10  ;;  %v7928_v24 = vpack.c.bf16 %v7926_v49, %v7927_v59  ;;  %v6565_v2 = vpop.eup %4138  ;;  %v7929_v48 = vld [vmem:[#allocation121_spill] sm:$0xff]  ;;  %v7930_v10 = vld [vmem:[#allocation118_spill] sm:$0xff] }
 0x34a   : > { %v2330_v40 = vadd.f32 %v6544_v50, %v2329_v54  ;;  %v7931_v4 = vpack.c.bf16 %v7929_v48, %v7930_v10  ;;  %v6576_v51 = vpop.eup %4140  ;;  %v2144_v49 = vmul.f32 1.442695, %v1961_v3  ;;  %v2138_v59 = vmul.f32 1.442695, %v1958_v9  ;;  %v7938_v32 = vld [vmem:[#allocation38_spill] sm:$0xff] }
 0x34b   : > { %3916 = vmatpush1.bf16.xpose.msra.mxu0 %v7928_v24  ;;  %v2318_v19 = vadd.f32 %v6524_v34, %v2317_v30  ;;  %v2142_v30 = vmul.f32 1.442695, %v1960_v17  ;;  %v7935_v24 = vld [vmem:[#allocation131_spill] sm:$0xff]  ;;  %v6582_v21 = vpop.eup %4142  ;;  %4162 = vpow2.f32 %v6461_v8  ;;  %v2374_v48 = vadd.f32 %v6201_v20, %v6187_v18  ;;  %v7939_v17 = vld [vmem:[#allocation40_spill] sm:$0xff] }
 0x34c   : > { %3932 = vmatpush1.bf16.xpose.msra.mxu1 %v7931_v4  ;;  %3918 = vmatprep.subr.bf16.mxu0 %v7934_v12  ;;  %v7937_v34 = vpack.c.bf16 %v7935_v24, %v7936_v53  ;;  %v2331_v4 = vadd.f32 %v6565_v2, %v2330_v40  ;;  %v4145_v10 = vpop.eup %4144  ;;  %4164 = vpow2.f32 %v6463_v5  ;;  %v1991_v3 = vsub.f32 %v7938_v32, %v6084_v62 }
 0x34d   : > { %v2319_v54 = vadd.f32 %v6529_v60, %v2318_v19  ;;  %v4147_v19 = vpop.eup %4146  ;;  %4166 = vpow2.f32 %v6468_v55  ;;  %v2343_v18 = vadd.f32 %v4145_v10, %v6414_v61  ;;  %v7942_v5 = vsub.f32 %v7860_v43, %v6040_v36  ;;  %v7944_v61 = vld [vmem:[#allocation39_spill] sm:$0xff]  ;;  %v8058_v60 = vld [vmem:[#allocation72_spill] sm:$0xff] }
 0x34e   : > { %3934 = vmatprep.subr.bf16.mxu1 %v7937_v34  ;;  %v7940_v34 = vld [vmem:[#allocation37_spill] sm:$0xff]  ;;  %v2332_v8 = vadd.f32 %v6576_v51, %v2331_v4  ;;  %v6600_v20 = vpop.eup %4148  ;;  %2743 = vmatprep.mubr.f32.mxu0 %v4147_v19  ;;  %4168 = vpow2.f32 %v2140_v45  ;;  %v7943_v12 = vsub.f32 %v7864_v22, %v6040_v36  ;;  %v2375_v53 = vadd.f32 %v6215_v14, %v2374_v48  ;;  %v7945_v22 = vld [vmem:[#allocation88_spill] sm:$0xff] }
 0x34f   : > { %v2320_v40 = vadd.f32 %v6537_v25, %v2319_v54  ;;  %7941 = vst [vmem:[#allocation106_spill] sm:$0xff] %v6600_v20  ;;  %v2146_v35 = vmul.f32 1.442695, %v7942_v5  ;;  %v4151_v54 = vpop.eup %4150  ;;  %v2344_v4 = vadd.f32 %v4147_v19, %v2343_v18  ;;  %2744 = vmatmul.mubr.f32.gmra.mrb[148].mxu0 %v4145_v10  ;;  %4170 = vpow2.f32 %v2144_v49  ;;  %v7946_v14 = vld [vmem:[#allocation89_spill] sm:$0xff]  ;;  %v7954_v5 = vld [vmem:[#allocation142_spill] sm:$0xff]  ;;  %v8051_v25 = vld [vmem:[#allocation132_spill] sm:$0xff] }
 0x350   : > { %v2148_v24 = vmul.f32 1.442695, %v7943_v12  ;;  %v2333_v55 = vadd.f32 %v6582_v21, %v2332_v8  ;;  %v4153_v58 = vpop.eup %4152  ;;  %2848 = vmatprep.mubr.f32.mxu1 %v4151_v54  ;;  %4172 = vpow2.f32 %v2138_v59  ;;  %v6613_v43 = vadd.f32 %v6190_v6, %v2375_v53  ;;  %v7948_v8 = vld [vmem:[#allocation124_spill] sm:$0xff]  ;;  %v7951_v6 = vld [vmem:[#allocation90_spill] sm:$0xff]  ;;  %v7953_v53 = vld [vmem:[#allocation91_spill] sm:$0xff] }
 0x351   : > { %2321 = vadd.xlane.f32.xlu1 %v2320_v40  ;;  %v7947_v40 = vld [vmem:[#allocation128_spill] sm:$0xff]  ;;  %v6622_v49 = vpop.eup %4154  ;;  %v2345_v18 = vadd.f32 %v4153_v58, %v2344_v4  ;;  %2849 = vmatmul.mubr.f32.gmra.mrb[148].mxu1 %v4153_v58  ;;  %4174 = vpow2.f32 %v2142_v30  ;;  %v7956_v45 = vld [vmem:[#allocation129_spill] sm:$0xff] }
 0x352   : > { %v7949_v19 = vpack.c.bf16 %v7947_v40, %v7948_v8  ;;  %7950 = vst [vmem:[#allocation101_spill] sm:$0xff] %v6622_v49  ;;  %v2334_v10 = vadd.f32 %v6600_v20, %v2333_v55  ;;  %v6627_v12 = vpop.eup %4156  ;;  %4176 = vpow2.f32 %v2122_v44  ;;  %v7955_v8 = vld [vmem:[#allocation143_spill] sm:$0xff]  ;;  %v7957_v55 = vld [vmem:[#allocation126_spill] sm:$0xff] }
 0x353   : > { %7952 = vst [vmem:[#allocation136_spill] sm:$0xff] %v6627_v12  ;;  %v7958_v4 = vpack.c.bf16 %v7956_v45, %v7957_v55  ;;  %v6638_v30 = vpop.eup %4158  ;;  %4178 = vpow2.f32 %v6550_v11  ;;  %v2346_v44 = vadd.f32 %v4151_v54, %v2345_v18  ;;  %v7961_v45 = vld [vmem:[#allocation144_spill] sm:$0xff]  ;;  %v7962_v54 = vsub.f32 %v7869_v56, %v6040_v36 }
 0x354   : > { %3920 = vmatpush1.bf16.xpose.msra.mxu0 %v7949_v19  ;;  %7959 = vst [vmem:[#allocation107_spill] sm:$0xff] %v6638_v30  ;;  %v2335_v58 = vadd.f32 %v6622_v49, %v2334_v10  ;;  %v6644_v59 = vpop.eup %4160  ;;  %4180 = vpow2.f32 %v6555_v7  ;;  %v7960_v19 = vsub.f32 %v7865_v47, %v6040_v36  ;;  %v7963_v47 = vsub.f32 %v7890_v27, %v6052_v42 }
 0x355   : > { %3936 = vmatpush1.bf16.xpose.msra.mxu1 %v7958_v4  ;;  %v6652_v4 = vpop.eup %4162  ;;  %4182 = vpow2.f32 %v6560_v16  ;;  %v2347_v11 = vadd.f32 %v6644_v59, %v2346_v44  ;;  %v2152_v18 = vmul.f32 1.442695, %v7962_v54  ;;  %v7964_v16 = vsub.f32 %v7892_v26, %v6052_v42 }
 0x356   : > { %v2150_v40 = vmul.f32 1.442695, %v7960_v19  ;;  %v2336_v10 = vadd.f32 %v6627_v12, %v2335_v58  ;;  %v6660_v7 = vpop.eup %4164  ;;  %4184 = vpow2.f32 %v2146_v35  ;;  %v2170_v19 = vmul.f32 1.442695, %v7963_v47  ;;  %v7968_v47 = vld [vmem:[#allocation50_spill] sm:$0xff] }
 0x357   : > { %v6665_v55 = vpop.eup %4166  ;;  %v2348_v58 = vadd.f32 %v6652_v4, %v2347_v11  ;;  %4186 = vpow2.f32 %v2148_v24  ;;  %v2172_v44 = vmul.f32 1.442695, %v7964_v16  ;;  %v7965_v35 = vsub.f32 %v7870_v29, %v6040_v36  ;;  %v7967_v11 = vld [vmem:[#allocation49_spill] sm:$0xff] }
 0x358   : > { %v2337_v48 = vadd.f32 %v6638_v30, %v2336_v10  ;;  %v4169_v56 = vpop.eup %4168  ;;  %4188 = vpow2.f32 %v2150_v40  ;;  %v7966_v10 = vsub.f32 %v7897_v57, %v6052_v42  ;;  %v2391_v26 = vadd.f32 %v7968_v47, %v7967_v11 }
 0x359   : > { %v2154_v54 = vmul.f32 1.442695, %v7965_v35  ;;  %v4171_v9 = vpop.eup %4170  ;;  %v2349_v27 = vadd.f32 %v6660_v7, %v2348_v58  ;;  %2748 = vmatprep.mubr.f32.mxu0 %v4169_v56  ;;  %4190 = vpow2.f32 %v2152_v18  ;;  %v7969_v40 = vsub.f32 %v7879_v33, %v6040_v36 }
 0x35a   : > { %2338 = vadd.xlane.f32.xlu0 %v2337_v48  ;;  %v2176_v24 = vmul.f32 1.442695, %v7966_v10  ;;  %v4173_v16 = vpop.eup %4172  ;;  %2853 = vmatprep.mubr.f32.mxu1 %v4171_v9  ;;  %4192 = vpow2.f32 %v2170_v19  ;;  %v7970_v48 = vsub.f32 %v7893_v38, %v6052_v42  ;;  %v7971_v10 = vld [vmem:[#allocation59_spill] sm:$0xff]  ;;  %v7973_v33 = vsub.f32 %v5860_v46, %v6040_v36 }
 0x35b   : > { %v2156_v29 = vmul.f32 1.442695, %v7969_v40  ;;  %v4175_v35 = vpop.eup %4174  ;;  %v2350_v18 = vadd.f32 %v6665_v55, %v2349_v27  ;;  %v2360_v57 = vadd.f32 %v4173_v16, %v6508_v0  ;;  %2749 = vmatmul.mubr.f32.gmra.mrb[150].mxu0 %v4173_v16  ;;  %4194 = vpow2.f32 %v2172_v44 }
 0x35c   : > { %v2174_v58 = vmul.f32 1.442695, %v7970_v48  ;;  %v2392_v11 = vadd.f32 %v7971_v10, %v2391_v26  ;;  %v6690_v47 = vpop.eup %4176  ;;  %4196 = vpow2.f32 %v2154_v54  ;;  %v2158_v19 = vmul.f32 1.442695, %v7973_v33  ;;  %2854 = vmatmul.mubr.f32.gmra.mrb[150].mxu1 %v4175_v35  ;;  %v7977_v54 = vld [vmem:[#allocation52_spill] sm:$0xff] }
 0x35d   : > { %7972 = vst [vmem:[#allocation103_spill] sm:$0xff] %v6690_v47  ;;  %v7974_v38 = vsub.f32 %v5862_v37, %v6040_v36  ;;  %v7975_v27 = vsub.f32 %v7898_v52, %v6052_v42  ;;  %v6701_v16 = vpop.eup %4178  ;;  %v2351_v44 = vadd.f32 %v6690_v47, %v2350_v18  ;;  %v2361_v26 = vadd.f32 %v4169_v56, %v2360_v57 }
 0x35e   : > { %7976 = vst [vmem:[#allocation25_spill] sm:$0xff] %v6701_v16  ;;  %4198 = vpow2.f32 %v2176_v24  ;;  %v6705_v48 = vadd.f32 %v7977_v54, %v2392_v11  ;;  %v6707_v46 = vpop.eup %4180  ;;  %v7979_v37 = vsub.f32 %v7905_v63, %v6052_v42  ;;  %v7980_v52 = vsub.f32 %v7910_v1, %v6052_v42 }
 0x35f   : > { %v2160_v40 = vmul.f32 1.442695, %v7974_v38  ;;  %v2178_v0 = vmul.f32 1.442695, %v7975_v27  ;;  %7978 = vst [vmem:[#allocation26_spill] sm:$0xff] %v6707_v46  ;;  %4200 = vpow2.f32 %v2174_v58  ;;  %v7981_v33 = vsub.f32 %v7911_v28, %v6052_v42  ;;  %v6718_v56 = vpop.eup %4182 }
 0x360   : > { %v2180_v36 = vmul.f32 1.442695, %v7979_v37  ;;  %v2182_v10 = vmul.f32 1.442695, %v7980_v52  ;;  %7982 = vst [vmem:[#allocation27_spill] sm:$0xff] %v6718_v56  ;;  %v2352_v24 = vadd.f32 %v6701_v16, %v2351_v44  ;;  %4202 = vpow2.f32 %v2156_v29  ;;  %v6724_v63 = vpop.eup %4184  ;;  %v8038_v16 = vld [vmem:[#allocation54_spill] sm:$0xff] }
 0x361   : > { %v2184_v18 = vmul.f32 1.442695, %v7981_v33  ;;  %v2362_v57 = vadd.f32 %v4175_v35, %v2361_v26  ;;  %v7983_v58 = vsub.f32 %v7912_v41, %v6052_v42  ;;  %4204 = vpow2.f32 %v2158_v19  ;;  %v6739_v44 = vpop.eup %4186 }
 0x362   : > { %v7984_v1 = vsub.f32 %v7913_v39, %v6052_v42  ;;  %v7985_v28 = vsub.f32 %v7914_v31, %v6052_v42  ;;  %v7986_v29 = vsub.f32 %v5877_v15, %v6052_v42  ;;  %v2353_v41 = vadd.f32 %v6707_v46, %v2352_v24  ;;  %v6745_v26 = vpop.eup %4188  ;;  %v8027_v46 = vld [vmem:[#allocation46_spill] sm:$0xff] }
 0x363   : > { %v2186_v11 = vmul.f32 1.442695, %v7983_v58  ;;  %4206 = vpow2.f32 %v2160_v40  ;;  %v2363_v19 = vadd.f32 %v4171_v9, %v2362_v57  ;;  %v2204_v39 = vmul.f32 1.442695, %v1991_v3  ;;  %v6756_v9 = vpop.eup %4190 }
 0x364   : > { %v2188_v38 = vmul.f32 1.442695, %v7984_v1  ;;  %v6732_v27 = vmul.f32 1.442695, %v7985_v28  ;;  %v6737_v35 = vmul.f32 1.442695, %v7986_v29  ;;  %4208 = vpow2.f32 %v2178_v0  ;;  %v4193_v52 = vpop.eup %4192 }
 0x365   : > { %v7987_v31 = vsub.f32 %v7939_v17, %v6084_v62  ;;  %v7988_v15 = vsub.f32 %v7940_v34, %v6084_v62  ;;  %v7989_v37 = vsub.f32 %v7944_v61, %v6084_v62  ;;  %v2354_v32 = vadd.f32 %v6718_v56, %v2353_v41  ;;  %v7997_v29 = vld [vmem:[#allocation70_spill] sm:$0xff]  ;;  %v7998_v41 = vld [vmem:[#allocation17_spill] sm:$0xff] }
 0x366   : > { %v2364_v3 = vadd.f32 %v6724_v63, %v2363_v19  ;;  %4210 = vpow2.f32 %v2180_v36  ;;  %v7990_v0 = vsub.f32 %v7945_v22, %v6084_v62  ;;  %v7991_v34 = vsub.f32 %v7946_v14, %v6084_v62  ;;  %v4195_v36 = vpop.eup %4194 }
 0x367   : > { %v2208_v54 = vmul.f32 1.442695, %v7987_v31  ;;  %v2202_v42 = vmul.f32 1.442695, %v7988_v15  ;;  %v2206_v40 = vmul.f32 1.442695, %v7989_v37  ;;  %4212 = vpow2.f32 %v2182_v10  ;;  %2355 = vadd.xlane.f32.xlu0 %v2354_v32  ;;  %2753 = vmatprep.mubr.f32.mxu0 %v4195_v36 }
 0x368   : > { %v2210_v17 = vmul.f32 1.442695, %v7990_v0  ;;  %v2212_v33 = vmul.f32 1.442695, %v7991_v34  ;;  %v7992_v61 = vsub.f32 %v7951_v6, %v6084_v62  ;;  %v7993_v57 = vsub.f32 %v7953_v53, %v6084_v62  ;;  %v6783_v6 = vpop.eup %4196  ;;  %v8000_v31 = vld [vmem:[#allocation172_spill] sm:$0xff]  ;;  %2754 = vmatmul.mubr.f32.gmra.mrb[152].mxu0 %v4193_v52  ;;  %v8001_v32 = vld [vmem:[#allocation170_spill] sm:$0xff] }
 0x369   : > { %v2365_v22 = vadd.f32 %v6739_v44, %v2364_v3  ;;  %4214 = vpow2.f32 %v2184_v18  ;;  %v2377_v10 = vadd.f32 %v4193_v52, %v6613_v43  ;;  %v7994_v14 = vsub.f32 %v7954_v5, %v6084_v62  ;;  %7995 = vst [vmem:[#allocation28_spill] sm:$0xff] %v6783_v6  ;;  %v7999_v18 = vld [vmem:[#allocation169_spill] sm:$0xff]  ;;  %v4199_v15 = vpop.eup %4198  ;;  %v8002_v3 = vld [vmem:[#allocation174_spill] sm:$0xff] }
 0x36a   : > { %v6769_v24 = vmul.f32 1.442695, %v7992_v61  ;;  %v6774_v58 = vmul.f32 1.442695, %v7993_v57  ;;  %4216 = vpow2.f32 %v2204_v39  ;;  %v7996_v53 = vsub.f32 %v7955_v8, %v6084_v62  ;;  %v4201_v0 = vpop.eup %4200  ;;  %2858 = vmatprep.mubr.f32.mxu1 %v4199_v15  ;;  %v8004_v61 = vld [vmem:[#allocation57_spill] sm:$0xff] }
 0x36b   : > { %v6781_v1 = vmul.f32 1.442695, %v7994_v14  ;;  %v2408_v19 = vadd.f32 %v7998_v41, %v7997_v29  ;;  %v2366_v5 = vadd.f32 %v6745_v26, %v2365_v22  ;;  %v2378_v37 = vadd.f32 %v4195_v36, %v2377_v10  ;;  %v8005_v14 = vld [vmem:[#allocation171_spill] sm:$0xff]  ;;  %v6805_v22 = vpop.eup %4202  ;;  %2859 = vmatmul.mubr.f32.gmra.mrb[152].mxu1 %v4201_v0  ;;  %v8010_v10 = vld [vmem:[#allocation176_spill] sm:$0xff]  ;;  %v8011_v41 = vld [vmem:[#allocation41_spill] sm:$0xff] }
 0x36c   : > { %v6788_v28 = vmul.f32 1.442695, %v7996_v53  ;;  %4218 = vpow2.f32 %v2208_v54  ;;  %v3937_v39 = vpack.c.bf16 %v8002_v3, %v8001_v32  ;;  %v8003_v8 = vsub.f32 %v5890_v13, %v6084_v62  ;;  %v8006_v53 = vld [vmem:[#allocation175_spill] sm:$0xff]  ;;  %8007 = vst [vmem:[#allocation76_spill] sm:$0xff] %v6805_v22  ;;  %v6813_v13 = vpop.eup %4204  ;;  %v8012_v32 = vld [vmem:[#allocation42_spill] sm:$0xff] }
 0x36d   : > { %4220 = vpow2.f32 %v2202_v42  ;;  %v2409_v57 = vadd.f32 %v8004_v61, %v2408_v19  ;;  %v2367_v54 = vadd.f32 %v6756_v9, %v2366_v5  ;;  %v2379_v52 = vadd.f32 %v4201_v0, %v2378_v37  ;;  %8009 = vst [vmem:[#allocation80_spill] sm:$0xff] %v6813_v13  ;;  %v6822_v37 = vpop.eup %4206 }
 0x36e   : > { %v6800_v34 = vmul.f32 1.442695, %v8003_v8  ;;  %4222 = vpow2.f32 %v2206_v40  ;;  %v8008_v42 = vsub.f32 %v7961_v45, %v6084_v62  ;;  %3938 = vmatprep.subr.bf16.mxu0 %v3937_v39  ;;  %v2006_v19 = vsub.f32 %v8011_v41, %v8010_v10  ;;  %v8013_v8 = vld [vmem:[#allocation16_spill] sm:$0xff]  ;;  %8014 = vst [vmem:[#allocation77_spill] sm:$0xff] %v6822_v37  ;;  %v8015_v45 = vld [vmem:[#allocation43_spill] sm:$0xff]  ;;  %v6827_v0 = vpop.eup %4208  ;;  %v8019_v41 = vld [vmem:[#allocation93_spill] sm:$0xff] }
 0x36f   : > { %4224 = vpow2.f32 %v2186_v11  ;;  %v2007_v3 = vsub.f32 %v8012_v32, %v8010_v10  ;;  %v6820_v5 = vadd.f32 %v8013_v8, %v2409_v57  ;;  %v2368_v40 = vadd.f32 %v6783_v6, %v2367_v54  ;;  %8016 = vst [vmem:[#allocation78_spill] sm:$0xff] %v6827_v0  ;;  %v8017_v11 = vld [vmem:[#allocation44_spill] sm:$0xff]  ;;  %v8020_v54 = vld [vmem:[#allocation94_spill] sm:$0xff] }
 0x370   : > { %v6811_v36 = vmul.f32 1.442695, %v8008_v42  ;;  %4226 = vpow2.f32 %v2188_v38  ;;  %v2380_v62 = vadd.f32 %v4199_v15, %v2379_v52  ;;  %v2008_v39 = vsub.f32 %v8015_v45, %v8010_v10  ;;  %v8018_v42 = vld [vmem:[#allocation92_spill] sm:$0xff]  ;;  %v6836_v8 = vpop.eup %4210  ;;  %v8022_v45 = vld [vmem:[#allocation95_spill] sm:$0xff] }
 0x371   : > { %4228 = vpow2.f32 %v6732_v27  ;;  %v2009_v61 = vsub.f32 %v8017_v11, %v8010_v10  ;;  %v2010_v57 = vsub.f32 %v8018_v42, %v8010_v10  ;;  %v2011_v32 = vsub.f32 %v8019_v41, %v8010_v10  ;;  %v6843_v52 = vpop.eup %4212  ;;  %v8023_v42 = vld [vmem:[#allocation145_spill] sm:$0xff] }
 0x372   : > { %v2369_v38 = vadd.f32 %v6805_v22, %v2368_v40  ;;  %4230 = vpow2.f32 %v6737_v35  ;;  %v2381_v15 = vadd.f32 %v6827_v0, %v2380_v62  ;;  %v2012_v27 = vsub.f32 %v8020_v54, %v8010_v10  ;;  %8021 = vst [vmem:[#allocation81_spill] sm:$0xff] %v6843_v52 }
 0x373   : > { %4232 = vpow2.f32 %v2210_v17  ;;  %v2013_v11 = vsub.f32 %v8022_v45, %v8010_v10  ;;  %v2234_v29 = vmul.f32 1.442695, %v2006_v19  ;;  %v6849_v43 = vpop.eup %4214  ;;  %v2236_v62 = vmul.f32 1.442695, %v2007_v3  ;;  %v8025_v17 = vld [vmem:[#allocation146_spill] sm:$0xff]  ;;  %v8026_v45 = vld [vmem:[#allocation19_spill] sm:$0xff] }
 0x374   : > { %8024 = vst [vmem:[#allocation82_spill] sm:$0xff] %v6849_v43  ;;  %v2370_v40 = vadd.f32 %v6813_v13, %v2369_v38  ;;  %v2382_v35 = vadd.f32 %v6836_v8, %v2381_v15  ;;  %4234 = vpow2.f32 %v2212_v33  ;;  %v4217_v6 = vpop.eup %4216  ;;  %v2240_v22 = vmul.f32 1.442695, %v2009_v61  ;;  %v8028_v33 = vld [vmem:[#allocation48_spill] sm:$0xff] }
 0x375   : > { %4236 = vpow2.f32 %v6769_v24  ;;  %v2023_v47 = vsub.f32 %v8027_v46, %v8026_v45  ;;  %2758 = vmatprep.mubr.f32.mxu0 %v4217_v6  ;;  %v2025_v3 = vsub.f32 %v8028_v33, %v8026_v45  ;;  %v2238_v24 = vmul.f32 1.442695, %v2008_v39 }
 0x376   : > { %v4219_v41 = vpop.eup %4218  ;;  %v2371_v19 = vadd.f32 %v6822_v37, %v2370_v40  ;;  %v2383_v56 = vadd.f32 %v6843_v52, %v2382_v35  ;;  %4238 = vpow2.f32 %v6774_v58  ;;  %v2242_v15 = vmul.f32 1.442695, %v2010_v57  ;;  %v8036_v37 = vld [vmem:[#allocation20_spill] sm:$0xff] }
 0x377   : > { %v4221_v38 = vpop.eup %4220  ;;  %2863 = vmatprep.mubr.f32.mxu1 %v4219_v41  ;;  %4240 = vpow2.f32 %v2234_v29  ;;  %v2244_v61 = vmul.f32 1.442695, %v2011_v32  ;;  %v2246_v35 = vmul.f32 1.442695, %v2012_v27  ;;  %v2248_v58 = vmul.f32 1.442695, %v2013_v11 }
 0x378   : > { %v4223_v54 = vpop.eup %4222  ;;  %2372 = vadd.xlane.f32.xlu1 %v2371_v19  ;;  %v2384_v46 = vadd.f32 %v6849_v43, %v2383_v56  ;;  %v2394_v40 = vadd.f32 %v4221_v38, %v6705_v48  ;;  %2759 = vmatmul.mubr.f32.gmra.mrb[154].mxu0 %v4221_v38  ;;  %4242 = vpow2.f32 %v2236_v62  ;;  %v2268_v33 = vmul.f32 1.442695, %v2023_v47  ;;  %v8030_v29 = vld [vmem:[#allocation45_spill] sm:$0xff]  ;;  %v8034_v62 = vld [vmem:[#allocation12_spill] sm:$0xff]  ;;  %v8037_v47 = vld [vmem:[#allocation11_spill] sm:$0xff] }
 0x379   : > { %v6865_v13 = vpop.eup %4224  ;;  %4244 = vpow2.f32 %v6781_v1  ;;  %2864 = vmatmul.mubr.f32.gmra.mrb[154].mxu1 %v4223_v54  ;;  %v2022_v39 = vsub.f32 %v8030_v29, %v8026_v45  ;;  %v2272_v48 = vmul.f32 1.442695, %v2025_v3  ;;  %v8033_v27 = vld [vmem:[#allocation173_spill] sm:$0xff]  ;;  %v8035_v1 = vld [vmem:[#allocation14_spill] sm:$0xff]  ;;  %v8044_v11 = vld [vmem:[#allocation60_spill] sm:$0xff]  ;;  %v8063_v49 = vsub.f32 %v8023_v42, %v8010_v10 }
 0x37a   : > { %8029 = vst [vmem:[#allocation104_spill] sm:$0xff] %v6865_v13  ;;  %v6870_v57 = vpop.eup %4226  ;;  %v2385_v32 = vadd.f32 %v6865_v13, %v2384_v46  ;;  %v2395_v56 = vadd.f32 %v4217_v6, %v2394_v40  ;;  %4246 = vpow2.f32 %v2240_v22  ;;  %v3953_v38 = vpack.c.bf16 %v8034_v62, %v8033_v27  ;;  %v8040_v22 = vld [vmem:[#allocation47_spill] sm:$0xff]  ;;  %v8041_v46 = vld [vmem:[#allocation13_spill] sm:$0xff]  ;;  %v8052_v52 = vld [vmem:[#allocation64_spill] sm:$0xff] }
 0x37b   : > { %8031 = vst [vmem:[#allocation100_spill] sm:$0xff] %v6870_v57  ;;  %v6873_v19 = vpop.eup %4228  ;;  %4248 = vpow2.f32 %v2238_v24  ;;  %v2024_v3 = vsub.f32 %v8040_v22, %v8026_v45  ;;  %v8042_v40 = vld [vmem:[#allocation69_spill] sm:$0xff]  ;;  %v8043_v62 = vld [vmem:[#allocation51_spill] sm:$0xff]  ;;  %v8062_v27 = vld [vmem:[#allocation148_spill] sm:$0xff]  ;;  %v2250_v0 = vmul.f32 1.442695, %v8063_v49 }
 0x37c   : > { %8032 = vst [vmem:[#allocation83_spill] sm:$0xff] %v6873_v19  ;;  %v6881_v29 = vpop.eup %4230  ;;  %v2386_v20 = vadd.f32 %v6870_v57, %v2385_v32  ;;  %4250 = vpow2.f32 %v6788_v28  ;;  %v2396_v6 = vadd.f32 %v4223_v54, %v2395_v56  ;;  %3954 = vmatprep.subr.bf16.mxu1 %v3953_v38  ;;  %v2266_v56 = vmul.f32 1.442695, %v2022_v39  ;;  %v8048_v38 = vld [vmem:[#allocation53_spill] sm:$0xff]  ;;  %v8059_v32 = vld [vmem:[#allocation74_spill] sm:$0xff]  ;;  %v8067_v42 = vld [vmem:[#allocation96_spill] sm:$0xff] }
 0x37d   : > { %8039 = vst [vmem:[#allocation137_spill] sm:$0xff] %v6881_v29  ;;  %v6887_v24 = vpop.eup %4232  ;;  %4252 = vpow2.f32 %v6800_v34  ;;  %v8047_v34 = vld [vmem:[#allocation18_spill] sm:$0xff]  ;;  %v2026_v49 = vsub.f32 %v8067_v42, %v8026_v45 }
 0x37e   : > { %v6896_v57 = vpop.eup %4234  ;;  %v2387_v28 = vadd.f32 %v6873_v19, %v2386_v20  ;;  %4254 = vpow2.f32 %v6811_v36  ;;  %v2397_v54 = vadd.f32 %v4219_v41, %v2396_v6  ;;  %v8055_v19 = vld [vmem:[#allocation22_spill] sm:$0xff]  ;;  %v2017_v41 = vsub.f32 %v8062_v27, %v8010_v10 }
 0x37f   : > { %v6900_v22 = vpop.eup %4236  ;;  %4256 = vpow2.f32 %v2242_v15 }
 0x380   : > { %v6908_v13 = vpop.eup %4238  ;;  %v2388_v20 = vadd.f32 %v6881_v29, %v2387_v28  ;;  %v2398_v36 = vadd.f32 %v6887_v24, %v2397_v54  ;;  %4258 = vpow2.f32 %v2244_v61  ;;  %v2270_v54 = vmul.f32 1.442695, %v2024_v3  ;;  %v8065_v3 = vld [vmem:[#allocation62_spill] sm:$0xff] }
 0x381   : > { %v4241_v15 = vpop.eup %4240  ;;  %4260 = vpow2.f32 %v2246_v35  ;;  %v8061_v35 = vld [vmem:[#allocation147_spill] sm:$0xff] }
 0x382   : > { %v4243_v43 = vpop.eup %4242  ;;  %2389 = vadd.xlane.f32.xlu0 %v2388_v20  ;;  %v2399_v28 = vadd.f32 %v6896_v57, %v2398_v36  ;;  %4262 = vpow2.f32 %v2248_v58  ;;  %v2411_v61 = vadd.f32 %v4241_v15, %v6820_v5  ;;  %v2016_v29 = vsub.f32 %v8061_v35, %v8010_v10  ;;  %v8064_v5 = vld [vmem:[#allocation55_spill] sm:$0xff] }
 0x383   : > { %v6922_v6 = vpop.eup %4244  ;;  %2763 = vmatprep.mubr.f32.mxu0 %v4243_v43  ;;  %4264 = vpow2.f32 %v2268_v33  ;;  %v2425_v30 = vadd.f32 %v8065_v3, %v8064_v5  ;;  %v8066_v35 = vsub.f32 %v8025_v17, %v8010_v10  ;;  %v2256_v3 = vmul.f32 1.442695, %v2017_v41  ;;  %v8074_v41 = vld [vmem:[#allocation99_spill] sm:$0xff] }
 0x384   : > { %8060 = vst [vmem:[#allocation105_spill] sm:$0xff] %v6922_v6  ;;  %v4247_v20 = vpop.eup %4246  ;;  %v2400_v58 = vadd.f32 %v6900_v22, %v2399_v28  ;;  %v2412_v36 = vadd.f32 %v4243_v43, %v2411_v61  ;;  %2764 = vmatmul.mubr.f32.gmra.mrb[156].mxu0 %v4241_v15  ;;  %4266 = vpow2.f32 %v2272_v48  ;;  %v2254_v15 = vmul.f32 1.442695, %v2016_v29  ;;  %v8070_v61 = vld [vmem:[#allocation97_spill] sm:$0xff] }
 0x385   : > { %v4249_v12 = vpop.eup %4248  ;;  %v2252_v27 = vmul.f32 1.442695, %v8066_v35  ;;  %2868 = vmatprep.mubr.f32.mxu1 %v4247_v20  ;;  %4268 = vpow2.f32 %v2266_v56  ;;  %v2027_v10 = vsub.f32 %v8070_v61, %v8026_v45  ;;  %v8072_v35 = vld [vmem:[#allocation68_spill] sm:$0xff] }
 0x386   : > { %v6939_v33 = vpop.eup %4250  ;;  %v2401_v28 = vadd.f32 %v6908_v13, %v2400_v58  ;;  %v2413_v43 = vadd.f32 %v4249_v12, %v2412_v36  ;;  %2869 = vmatmul.mubr.f32.gmra.mrb[156].mxu1 %v4249_v12  ;;  %4270 = vpow2.f32 %v2270_v54  ;;  %v2426_v42 = vadd.f32 %v8072_v35, %v2425_v30  ;;  %v8073_v12 = vld [vmem:[#allocation98_spill] sm:$0xff] }
 0x387   : > { %8068 = vst [vmem:[#allocation102_spill] sm:$0xff] %v6939_v33  ;;  %v6942_v48 = vpop.eup %4252  ;;  %4272 = vpow2.f32 %v2250_v0  ;;  %v2028_v54 = vsub.f32 %v8073_v12, %v8026_v45  ;;  %v2274_v58 = vmul.f32 1.442695, %v2026_v49  ;;  %v2276_v30 = vmul.f32 1.442695, %v2027_v10 }
 0x388   : > { %8069 = vst [vmem:[#allocation114_spill] sm:$0xff] %v6942_v48  ;;  %v6946_v17 = vpop.eup %4254  ;;  %v2402_v5 = vadd.f32 %v6922_v6, %v2401_v28  ;;  %v2414_v56 = vadd.f32 %v4247_v20, %v2413_v43  ;;  %4274 = vpow2.f32 %v2252_v27  ;;  %v2029_v20 = vsub.f32 %v8074_v41, %v8026_v45  ;;  %v8075_v43 = vld [vmem:[#allocation67_spill] sm:$0xff] }
 0x389   : > { %8071 = vst [vmem:[#allocation109_spill] sm:$0xff] %v6946_v17  ;;  %v6950_v39 = vpop.eup %4256  ;;  %4276 = vpow2.f32 %v2254_v15  ;;  %v2427_v35 = vadd.f32 %v8075_v43, %v2426_v42  ;;  %v2278_v6 = vmul.f32 1.442695, %v2028_v54 }
 0x38a   : > { %v6954_v0 = vpop.eup %4258  ;;  %v2403_v29 = vadd.f32 %v6939_v33, %v2402_v5  ;;  %v2415_v36 = vadd.f32 %v6950_v39, %v2414_v56  ;;  %4278 = vpow2.f32 %v2256_v3  ;;  %v8076_v5 = vld [vmem:[#allocation149_spill] sm:$0xff]  ;;  %v8077_v3 = vld [vmem:[#allocation150_spill] sm:$0xff] }
 0x38b   : > { %v6958_v61 = vpop.eup %4260  ;;  %v2030_v56 = vsub.f32 %v8076_v5, %v8026_v45  ;;  %4280 = vpow2.f32 %v2274_v58  ;;  %v8078_v58 = vld [vmem:[#allocation151_spill] sm:$0xff] }
 0x38c   : > { %v6962_v28 = vpop.eup %4262  ;;  %v2404_v27 = vadd.f32 %v6942_v48, %v2403_v29  ;;  %v2416_v49 = vadd.f32 %v6954_v0, %v2415_v36  ;;  %v2031_v29 = vsub.f32 %v8077_v3, %v8026_v45  ;;  %4282 = vpow2.f32 %v2276_v30  ;;  %v8079_v48 = vld [vmem:[#allocation133_spill] sm:$0xff] }
 0x38d   : > { %v4265_v12 = vpop.eup %4264  ;;  %v2280_v36 = vmul.f32 1.442695, %v2029_v20  ;;  %4284 = vpow2.f32 %v2278_v6  ;;  %v8080_v20 = vld [vmem:[#allocation135_spill] sm:$0xff] }
 0x38e   : > { %v4267_v15 = vpop.eup %4266  ;;  %v2405_v33 = vadd.f32 %v6946_v17, %v2404_v27  ;;  %v2417_v10 = vadd.f32 %v6958_v61, %v2416_v49  ;;  %2768 = vmatprep.mubr.f32.mxu0 %v4265_v12  ;;  %v2032_v27 = vsub.f32 %v8078_v58, %v8026_v45  ;;  %v2282_v49 = vmul.f32 1.442695, %v2030_v56  ;;  %v8082_v6 = vld [vmem:[#allocation75_spill] sm:$0xff] }
 0x38f   : > { %v4269_v41 = vpop.eup %4268  ;;  %2873 = vmatprep.mubr.f32.mxu1 %v4267_v15  ;;  %4286 = vpow2.f32 %v2280_v36  ;;  %v8085_v36 = vpack.c.bf16 %v8006_v53, %v8005_v14  ;;  %v8087_v14 = vpack.c.bf16 %v8044_v11, %v8043_v62  ;;  %v8088_v11 = vpack.c.bf16 %v8036_v37, %v8035_v1  ;;  %v8092_v1 = vld [vmem:[#allocation153_spill] sm:$0xff]  ;;  %v8095_v62 = vld [vmem:[#allocation82_spill] sm:$0xff] }
 0x390   : > { %v4271_v42 = vpop.eup %4270  ;;  %2406 = vadd.xlane.f32.xlu1 %v2405_v33  ;;  %v2418_v43 = vadd.f32 %v6962_v28, %v2417_v10  ;;  %v2428_v5 = vadd.f32 %v4269_v41, %v2427_v35  ;;  %2769 = vmatmul.mubr.f32.gmra.mrb[158].mxu0 %v4269_v41  ;;  %v8081_v35 = vld [vmem:[#allocation152_spill] sm:$0xff]  ;;  %v2284_v41 = vmul.f32 1.442695, %v2031_v29  ;;  %4288 = vpow2.f32 %v2282_v49 }
 0x391   : > { %v6974_v54 = vpop.eup %4272  ;;  %2874 = vmatmul.mubr.f32.gmra.mrb[158].mxu1 %v4271_v42  ;;  %2943 = vmatprep.mubr.f32.mxu0 %v8079_v48  ;;  %v2033_v10 = vsub.f32 %v8081_v35, %v8026_v45  ;;  %v2286_v48 = vmul.f32 1.442695, %v2032_v27 }
 0x392   : > { %v2419_v3 = vadd.f32 %v6974_v54, %v2418_v43  ;;  %v2429_v30 = vadd.f32 %v4265_v12, %v2428_v5  ;;  %3048 = vmatprep.mubr.f32.mxu1 %v8080_v20  ;;  %v6981_v33 = vpop.eup %4274  ;;  %v8083_v43 = vld [vmem:[#allocation134_spill] sm:$0xff]  ;;  %v8084_v12 = vpack.c.bf16 %v8000_v31, %v7999_v18  ;;  %4290 = vpow2.f32 %v2284_v41  ;;  %v8105_v41 = vld [vmem:[#allocation15_spill] sm:$0xff] }
 0x393   : > { %v6987_v56 = vpop.eup %4276  ;;  %v2288_v27 = vmul.f32 1.442695, %v2033_v10  ;;  %v8086_v18 = vpack.c.bf16 %v8038_v16, %v8037_v47  ;;  %4292 = vpow2.f32 %v2286_v48  ;;  %v8104_v10 = vld [vmem:[#allocation58_spill] sm:$0xff]  ;;  %v8108_v48 = vld [vmem:[#allocation163_spill] sm:$0xff] }
 0x394   : > { %v2420_v17 = vadd.f32 %v6981_v33, %v2419_v3  ;;  %v2430_v58 = vadd.f32 %v4271_v42, %v2429_v30  ;;  %2944 = vmatmul.mubr.f32.vlgmr.msra.gmra.mrb[160].mxu0 %v8082_v6  ;;  %v6993_v5 = vpop.eup %4278  ;;  %v8102_v30 = vld [vmem:[#allocation56_spill] sm:$0xff]  ;;  %v8107_v6 = vpack.c.bf16 %v6434_v23, %v8055_v19  ;;  %v8114_v23 = vpack.c.bf16 %v8059_v32, %v8058_v60  ;;  %v8115_v19 = vld [vmem:[#allocation167_spill] sm:$0xff]  ;;  %v8124_v60 = vld [vmem:[#allocation73_spill] sm:$0xff] }
 0x395   : > { %3049 = vmatmul.mubr.f32.vlgmr.msra.gmra.mrb[160].mxu1 %v8083_v43  ;;  %3940 = vmatpush1.bf16.xpose.msra.mxu0 %v8084_v12  ;;  %v7000_v42 = vpop.eup %4280  ;;  %4294 = vpow2.f32 %v2288_v27  ;;  %v8109_v43 = vld [vmem:[#allocation164_spill] sm:$0xff] }
 0x396   : > { %v2421_v45 = vadd.f32 %v6987_v56, %v2420_v17  ;;  %v2431_v29 = vadd.f32 %v4267_v15, %v2430_v58  ;;  %3956 = vmatpush1.bf16.xpose.msra.mxu1 %v8085_v36  ;;  %2948 = vmatprep.mubr.f32.mxu0 %v6565_v2  ;;  %v4283_v2 = vpop.eup %4282  ;;  %v8098_v15 = vld [vmem:[#allocation160_spill] sm:$0xff]  ;;  %v8106_v58 = vpack.c.bf16 %v8104_v10, %v8105_v41 }
 0x397   : > { %3053 = vmatprep.mubr.f32.mxu1 %v6582_v21  ;;  %3942 = vmatprep.subr.bf16.mxu0 %v8086_v18  ;;  %v4285_v16 = vpop.eup %4284  ;;  %v8110_v12 = vsub.f32 %v8108_v48, %v8109_v43  ;;  %v8125_v32 = vld [vmem:[#allocation24_spill] sm:$0xff] }
 0x398   : > { %v2422_v31 = vadd.f32 %v6993_v5, %v2421_v45  ;;  %v2432_v17 = vadd.f32 %v7000_v42, %v2431_v29  ;;  %2949 = vmatmul.mubr.f32.gmra.mrb[162].mxu0 %v6544_v50  ;;  %3958 = vmatprep.subr.bf16.mxu1 %v8087_v14  ;;  %v8111_v29 = vld [vmem:[#allocation155_spill] sm:$0xff]  ;;  %v8147_v10 = vld [vmem:[#allocation28_spill] sm:$0xff] }
 0x399   : > { %3054 = vmatmul.mubr.f32.gmra.mrb[162].mxu1 %v6576_v51  ;;  %2953 = vmatprep.mubr.f32.mxu0 %v6652_v4  ;;  %v4287_v50 = vpop.eup %4286  ;;  %v8089_v51 = vpack.c.bf16 %v8042_v40, %v8041_v46  ;;  %v1860_v45 = vmul.f32 1.442695, %v8110_v12  ;;  %v8148_v41 = vld [vmem:[#allocation80_spill] sm:$0xff]  ;;  %v8152_v12 = vld [vmem:[#allocation83_spill] sm:$0xff] }
 0x39a   : > { %2423 = vadd.xlane.f32.xlu0 %v2422_v31  ;;  %v2433_v21 = vadd.f32 %v4283_v2, %v2432_v17  ;;  %3058 = vmatprep.mubr.f32.mxu1 %v6665_v55  ;;  %v7024_v55 = vpop.eup %4288  ;;  %v8121_v17 = vld [vmem:[#allocation157_spill] sm:$0xff]  ;;  %v8151_v43 = vld [vmem:[#allocation104_spill] sm:$0xff] }
 0x39c   : > { %v2434_v53 = vadd.f32 %v4285_v16, %v2433_v21  ;;  %2954 = vmatmul.mubr.f32.gmra.mrb[164].mxu0 %v6644_v59  ;;  %v8090_v59 = vpack.c.bf16 %v8048_v38, %v8047_v34  ;;  %v7035_v37 = vpop.eup %4290  ;;  %v8097_v38 = vld [vmem:[#allocation159_spill] sm:$0xff] }
 0x39d   : > { %3059 = vmatmul.mubr.f32.gmra.mrb[164].mxu1 %v6660_v7  ;;  %3944 = vmatpush1.bf16.xpose.msra.mxu0 %v8088_v11  ;;  %v8091_v7 = vpack.c.bf16 %v8052_v52, %v8051_v25  ;;  %v7044_v34 = vpop.eup %4292  ;;  %v8096_v25 = vld [vmem:[#allocation78_spill] sm:$0xff]  ;;  %v8099_v49 = vsub.f32 %v8097_v38, %v8098_v15  ;;  %v8128_v11 = vld [vmem:[#allocation161_spill] sm:$0xff]  ;;  %v8142_v15 = vld [vmem:[#allocation27_spill] sm:$0xff] }
 0x39e   : > { %v2435_v47 = vadd.f32 %v4287_v50, %v2434_v53  ;;  %3960 = vmatpush1.bf16.xpose.msra.mxu1 %v8089_v51  ;;  %2958 = vmatprep.mubr.f32.mxu0 %v6739_v44  ;;  %v8093_v44 = vld [vmem:[#allocation154_spill] sm:$0xff]  ;;  %v8126_v53 = vpack.c.bf16 %v8124_v60, %v8125_v32  ;;  %v8141_v38 = vld [vmem:[#allocation25_spill] sm:$0xff] }
 0x39f   : > { %3063 = vmatprep.mubr.f32.mxu1 %v6756_v9  ;;  %3946 = vmatprep.subr.bf16.mxu0 %v8090_v59  ;;  %v8094_v46 = vsub.f32 %v8092_v1, %v8093_v44  ;;  %v7048_v52 = vpop.eup %4294  ;;  %v1856_v3 = vmul.f32 1.442695, %v8099_v49  ;;  %v8136_v1 = vld [vmem:[#allocation166_spill] sm:$0xff] }
 0x3a0   : > { %v2436_v4 = vadd.f32 %v7024_v55, %v2435_v47  ;;  %2959 = vmatmul.mubr.f32.gmra.mrb[166].mxu0 %v6724_v63  ;;  %3962 = vmatprep.subr.bf16.mxu1 %v8091_v7  ;;  %v8129_v47 = vld [vmem:[#allocation162_spill] sm:$0xff] }
 0x3a1   : > { %v1850_v40 = vmul.f32 1.442695, %v8094_v46  ;;  %3064 = vmatmul.mubr.f32.gmra.mrb[166].mxu1 %v6745_v26  ;;  %2963 = vmatprep.mubr.f32.mxu0 %v6836_v8  ;;  %v8100_v26 = vld [vmem:[#allocation81_spill] sm:$0xff]  ;;  %v8101_v8 = vld [vmem:[#allocation71_spill] sm:$0xff]  ;;  %v8130_v51 = vsub.f32 %v8128_v11, %v8129_v47 }
 0x3a2   : > { %v2437_v9 = vadd.f32 %v7035_v37, %v2436_v4  ;;  %3068 = vmatprep.mubr.f32.mxu1 %v8095_v62  ;;  %v8103_v20 = vpack.c.bf16 %v8101_v8, %v8102_v30  ;;  %v8131_v4 = vld [vmem:[#allocation63_spill] sm:$0xff]  ;;  %v8144_v8 = vld [vmem:[#allocation26_spill] sm:$0xff]  ;;  %v8145_v30 = vld [vmem:[#allocation76_spill] sm:$0xff] }
 0x3a3   : > { %4296 = vpow2.f32 %v1850_v40  ;;  %v1858_v59 = vmul.f32 1.442695, %v8130_v51  ;;  %v8138_v40 = vld [vmem:[#allocation107_spill] sm:$0xff] }
 0x3a4   : > { %v2438_v63 = vadd.f32 %v7044_v34, %v2437_v9  ;;  %2964 = vmatmul.mubr.f32.gmra.mrb[168].mxu0 %v8096_v25  ;;  %4298 = vpow2.f32 %v1856_v3  ;;  %v8140_v25 = vld [vmem:[#allocation136_spill] sm:$0xff] }
 0x3a5   : > { %3069 = vmatmul.mubr.f32.gmra.mrb[168].mxu1 %v8100_v26  ;;  %3948 = vmatpush1.bf16.xpose.msra.mxu0 %v8103_v20  ;;  %4300 = vpow2.f32 %v1860_v45  ;;  %v8143_v26 = vld [vmem:[#allocation103_spill] sm:$0xff]  ;;  %v8146_v20 = vld [vmem:[#allocation77_spill] sm:$0xff]  ;;  %v8153_v45 = vld [vmem:[#allocation102_spill] sm:$0xff] }
 0x3a6   : > { %v2439_v35 = vadd.f32 %v7048_v52, %v2438_v63  ;;  %3964 = vmatpush1.bf16.xpose.msra.mxu1 %v8106_v58  ;;  %2968 = vmatprep.mubr.f32.mxu0 %v6896_v57  ;;  %v8112_v57 = vld [vmem:[#allocation156_spill] sm:$0xff]  ;;  %v8139_v63 = vld [vmem:[#allocation106_spill] sm:$0xff] }
 0x3a7   : > { %3073 = vmatprep.mubr.f32.mxu1 %v6908_v13  ;;  %3950 = vmatprep.subr.bf16.mxu0 %v8107_v6  ;;  %v8113_v36 = vsub.f32 %v8111_v29, %v8112_v57  ;;  %v8149_v58 = vld [vmem:[#allocation100_spill] sm:$0xff]  ;;  %v8150_v6 = vld [vmem:[#allocation137_spill] sm:$0xff] }
 0x3a8   : > { %2440 = vadd.xlane.f32.xlu1 %v2439_v35  ;;  %2969 = vmatmul.mubr.f32.gmra.mrb[170].mxu0 %v6887_v24  ;;  %v8116_v24 = vld [vmem:[#allocation168_spill] sm:$0xff]  ;;  %v8154_v29 = vld [vmem:[#allocation109_spill] sm:$0xff] }
 0x3a9   : > { %3074 = vmatmul.mubr.f32.gmra.mrb[170].mxu1 %v6900_v22  ;;  %2973 = vmatprep.mubr.f32.mxu0 %v6954_v0  ;;  %v1852_v13 = vmul.f32 1.442695, %v8113_v36  ;;  %v8117_v27 = vsub.f32 %v8115_v19, %v8116_v24  ;;  %v8118_v22 = vld [vmem:[#allocation23_spill] sm:$0xff]  ;;  %v8119_v0 = vld [vmem:[#allocation21_spill] sm:$0xff]  ;;  %v8156_v36 = vld [vmem:[#allocation114_spill] sm:$0xff] }
 0x3aa   : > { %3078 = vmatprep.mubr.f32.mxu1 %v6962_v28  ;;  %3966 = vmatprep.subr.bf16.mxu1 %v8114_v23  ;;  %v8120_v31 = vpack.c.bf16 %v8118_v22, %v8119_v0  ;;  %v8122_v28 = vld [vmem:[#allocation158_spill] sm:$0xff]  ;;  %v8155_v57 = vld [vmem:[#allocation105_spill] sm:$0xff] }
 0x3ab   : > { %v1864_v18 = vmul.f32 1.442695, %v8117_v27  ;;  %4302 = vpow2.f32 %v1852_v13  ;;  %v8123_v14 = vsub.f32 %v8121_v17, %v8122_v28  ;;  %v2290_v13 = vld [vmem:[#allocation3] sm:$0xff]  ;;  %v2292_v22 = vld [vmem:[#allocation3 + $0x10] sm:$0xff] }
 0x3ac   : > { %2974 = vmatmul.mubr.f32.gmra.mrb[172].mxu0 %v6950_v39 }
 0x3ad   : > { %3079 = vmatmul.mubr.f32.gmra.mrb[172].mxu1 %v6958_v61  ;;  %3952 = vmatpush1.bf16.xpose.msra.mxu0 %v8120_v31  ;;  %v1854_v21 = vmul.f32 1.442695, %v8123_v14  ;;  %v4297_v39 = vpop.eup %4296  ;;  %4304 = vpow2.f32 %v1864_v18  ;;  %v8127_v61 = vld [vmem:[#allocation61_spill] sm:$0xff] }
 0x3ae   : > { %3968 = vmatpush1.bf16.xpose.msra.mxu1 %v8126_v53  ;;  %2978 = vmatprep.mubr.f32.mxu0 %v4283_v2  ;;  %v7099_v7 = vpop.eup %4298  ;;  %v8132_v2 = vld [vmem:[#allocation65_spill] sm:$0xff]  ;;  %v2298_v23 = vmul.f32 %v4297_v39, %v2290_v13 }
 0x3af   : > { %3083 = vmatprep.mubr.f32.mxu1 %v4287_v50  ;;  %4306 = vpow2.f32 %v1854_v21  ;;  %v8133_v50 = vld [vmem:[#allocation66_spill] sm:$0xff]  ;;  %v7109_v9 = vpop.eup %4300 }
 0x3b0   : > { %3309 = vperm.xlu0 %4038, %v4297_v39   ;;  %2979 = vmatmul.mubr.f32.gmra.mrb[174].mxu0 %v7000_v42  ;;  %v8134_v42 = vld [vmem:[#allocation101_spill] sm:$0xff]  ;;  %4308 = vpow2.f32 %v1858_v59 }
 0x3b1   : > { %3084 = vmatmul.mubr.f32.gmra.mrb[174].mxu1 %v4285_v16  ;;  %3153 = vmatprep.mubr.f32.mxu0 %v8127_v61  ;;  %v8135_v16 = vld [vmem:[#allocation165_spill] sm:$0xff] }
 0x3b2   : > { %3258 = vmatprep.mubr.f32.mxu1 %v8131_v4  ;;  %v8137_v44 = vsub.f32 %v8135_v16, %v8136_v1 }
 0x3b4   : > { %3324 = vperm.xlu0 %4038, %v7099_v7   ;;  %3154 = vmatmul.mubr.f32.vlgmr.msra.gmra.mrb[176].mxu0 %v8132_v2  ;;  %v1862_v46 = vmul.f32 1.442695, %v8137_v44 }
 0x3b5   : > { %3259 = vmatmul.mubr.f32.vlgmr.msra.gmra.mrb[176].mxu1 %v8133_v50  ;;  %3158 = vmatprep.mubr.f32.mxu0 %v8134_v42  ;;  %v4303_v62 = vpop.eup %4302 }
 0x3b6   : > { %3263 = vmatprep.mubr.f32.mxu1 %v8138_v40  ;;  %4310 = vpow2.f32 %v1862_v46 }
 0x3b7   : > { %v7116_v49 = vpop.eup %4304 }
 0x3b8   : > { %3334 = vperm.xlu0 %4038, %v7109_v9   ;;  %3159 = vmatmul.mubr.f32.gmra.mrb[178].mxu0 %v8139_v63 }
 0x3b9   : > { %3314 = vperm.xlu1 %4039, %v4303_v62   ;;  %3264 = vmatmul.mubr.f32.gmra.mrb[178].mxu1 %v8140_v25  ;;  %v4307_v3 = vpop.eup %4306 }
 0x3ba   : > { %3163 = vmatprep.mubr.f32.mxu0 %v8141_v38  ;;  %3268 = vmatprep.mubr.f32.mxu1 %v8142_v15  ;;  %v7123_v35 = vpop.eup %4308  ;;  %v2300_v32 = vmul.f32 %v4307_v3, %v2292_v22  ;;  %v2295_v22 = vld [vmem:[#allocation3 + $0x28] sm:$0xff] }
 0x3bc   : > { %3344 = vperm.xlu0 %4038, %v7116_v49   ;;  %3164 = vmatmul.mubr.f32.gmra.mrb[180].mxu0 %v8143_v26 }
 0x3bd   : > { %3319 = vperm.xlu1 %4039, %v4307_v3   ;;  %3269 = vmatmul.mubr.f32.gmra.mrb[180].mxu1 %v8144_v8 }
 0x3be   : > { %3168 = vmatprep.mubr.f32.mxu0 %v8145_v30  ;;  %3273 = vmatprep.mubr.f32.mxu1 %v8146_v20 }
 0x3c0   : > { %3169 = vmatmul.mubr.f32.gmra.mrb[182].mxu0 %v8147_v10  ;;  %v7130_v48 = vpop.eup %4310 }
 0x3c1   : > { %3329 = vperm.xlu1 %4039, %v7123_v35   ;;  %3274 = vmatmul.mubr.f32.gmra.mrb[182].mxu1 %v8148_v41 }
 0x3c2   : > { %3173 = vmatprep.mubr.f32.mxu0 %v8149_v58  ;;  %3278 = vmatprep.mubr.f32.mxu1 %v8150_v6 }
 0x3c4   : > { %3174 = vmatmul.mubr.f32.gmra.mrb[184].mxu0 %v8151_v43 }
 0x3c5   : > { %3339 = vperm.xlu1 %4039, %v7130_v48   ;;  %3279 = vmatmul.mubr.f32.gmra.mrb[184].mxu1 %v8152_v12 }
 0x3c6   : > { %3178 = vmatprep.mubr.f32.mxu0 %v8153_v45  ;;  %3283 = vmatprep.mubr.f32.mxu1 %v8154_v29  ;;  %v2294_v29 = vld [vmem:[#allocation3 + $0x20] sm:$0xff] }
 0x3c8   : > { %3179 = vmatmul.mubr.f32.gmra.mrb[186].mxu0 %v8155_v57 }
 0x3c9   : > { %3284 = vmatmul.mubr.f32.gmra.mrb[186].mxu1 %v8156_v36  ;;  %3183 = vmatprep.mubr.f32.mxu0 %v6981_v33  ;;  %v2291_v33 = vld [vmem:[#allocation3 + $0x8] sm:$0xff] }
 0x3ca   : > { %3288 = vmatprep.mubr.f32.mxu1 %v6993_v5  ;;  %v2299_v5 = vmul.f32 %v4303_v62, %v2291_v33  ;;  %v2293_v62 = vld [vmem:[#allocation3 + $0x18] sm:$0xff] }
 0x3cb   : > { %v2301_v3 = vmul.f32 %v7099_v7, %v2293_v62 }
 0x3cc   : > { %3184 = vmatmul.mubr.f32.gmra.mrb[188].mxu0 %v6974_v54 }
 0x3cd   : > { %3289 = vmatmul.mubr.f32.gmra.mrb[188].mxu1 %v6987_v56  ;;  %3188 = vmatprep.mubr.f32.mxu0 %v7035_v37 }
 0x3ce   : > { %3293 = vmatprep.mubr.f32.mxu1 %v7048_v52 }
 0x3d0   : > { %3189 = vmatmul.mubr.f32.gmra.mrb[190].mxu0 %v7024_v55 }
 0x3d1   : > { %3294 = vmatmul.mubr.f32.gmra.mrb[190].mxu1 %v7044_v34 }
 0x3de   : > { %v2322_v19 = vpop.xlane.xlu1 %2321 }
 0x3df   : > { %v2442_v24 = vadd.f32 %v2322_v19, %v2298_v23 }
 0x3e1   : > { %2451 = vst.msk [vmem:[#allocation3] sm:$0xff] %vm183_vm1, %v2442_v24  ;;  %v2302_v24 = vmul.f32 %v7123_v35, %v2294_v29 }
 0x3e2   : > { %v2525_v56 = vpop.f32.mrb[128].mxu0 }
 0x3e3   : > { %v2630_v37 = vpop.f32.mrb[128].mxu1  ;;  %v2527_v52 = vpop.f32.mrb[129].mxu0 }
 0x3e4   : > { %v7149_v55 = vadd.f32 %v2630_v37, %v2525_v56  ;;  %v2632_v34 = vpop.f32.mrb[129].mxu1 }
 0x3e7   : > { %v2339_v27 = vpop.xlane.xlu0 %2338  ;;  %v2530_v0 = vpop.f32.mrb[130].mxu0 }
 0x3e8   : > { %v3390_v54 = vld [vmem:[#allocation3] sm:$0xff]  ;;  %v2443_v18 = vadd.f32 %v2339_v27, %v2299_v5  ;;  %v2635_v31 = vpop.f32.mrb[130].mxu1  ;;  %v2532_v17 = vpop.f32.mrb[131].mxu0 }
 0x3e9   : > { %4312 = vrcp.f32 %v3390_v54  ;;  %v7151_v14 = vadd.f32 %v2635_v31, %v2530_v0  ;;  %v2637_v21 = vpop.f32.mrb[131].mxu1  ;;  %v2303_v17 = vmul.f32 %v7109_v9, %v2295_v22 }
 0x3ea   : > { %2452 = vst.msk [vmem:[#allocation3 + $0x8] sm:$0xff] %vm183_vm1, %v2443_v18 }
 0x3eb   : > { %v2535_v39 = vpop.f32.mrb[132].mxu0  ;;  %v2640_v11 = vpop.f32.mrb[132].mxu1 }
 0x3ec   : > { %v2537_v47 = vpop.f32.mrb[133].mxu0  ;;  %v7153_v51 = vadd.f32 %v2640_v11, %v2535_v39  ;;  %v2642_v59 = vpop.f32.mrb[133].mxu1 }
 0x3ef   : > { %v2540_v4 = vpop.f32.mrb[134].mxu0  ;;  %v2645_v2 = vpop.f32.mrb[134].mxu1 }
 0x3f0   : > { %v2542_v50 = vpop.f32.mrb[135].mxu0  ;;  %v7156_v42 = vadd.f32 %v2645_v2, %v2540_v4  ;;  %v2647_v16 = vpop.f32.mrb[135].mxu1 }
 0x3f1   : > { %v3391_v28 = vld [vmem:[#allocation3 + $0x8] sm:$0xff] }
 0x3f2   : > { %4314 = vrcp.f32 %v3391_v28 }
 0x3f3   : > { %v4313_v60 = vpop.eup %4312  ;;  %v2545_v1 = vpop.f32.mrb[136].mxu0 }
 0x3f4   : > { %v2356_v53 = vpop.xlane.xlu0 %2355  ;;  %3416 = vperm.xlu1 %4039, %v4313_v60   ;;  %v2547_v40 = vpop.f32.mrb[137].mxu0 }
 0x3f5   : > { %v2444_v61 = vadd.f32 %v2356_v53, %v2300_v32  ;;  %v2650_v46 = vpop.f32.mrb[136].mxu1 }
 0x3f6   : > { %v7158_v25 = vadd.f32 %v2650_v46, %v2545_v1  ;;  %v2652_v38 = vpop.f32.mrb[137].mxu1  ;;  %v2297_v46 = vld [vmem:[#allocation3 + $0x38] sm:$0xff] }
 0x3f7   : > { %2453 = vst.msk [vmem:[#allocation3 + $0x10] sm:$0xff] %vm183_vm1, %v2444_v61  ;;  %v2296_v61 = vld [vmem:[#allocation3 + $0x30] sm:$0xff] }
 0x3f8   : > { %v2550_v15 = vpop.f32.mrb[138].mxu0  ;;  %v2304_v47 = vmul.f32 %v7130_v48, %v2296_v61  ;;  %v2305_v48 = vmul.f32 %v7116_v49, %v2297_v46 }
 0x3f9   : > { %v2655_v26 = vpop.f32.mrb[138].mxu1  ;;  %v2552_v8 = vpop.f32.mrb[139].mxu0 }
 0x3fa   : > { %v7161_v20 = vadd.f32 %v2655_v26, %v2550_v15  ;;  %v2657_v10 = vpop.f32.mrb[139].mxu1 }
 0x3fc   : > { %v4315_v44 = vpop.eup %4314 }
 0x3fd   : > { %3421 = vperm.xlu0 %4038, %v4315_v44  }
 0x3fe   : > { %v3392_v63 = vld [vmem:[#allocation3 + $0x10] sm:$0xff]  ;;  %v2555_v58 = vpop.f32.mrb[140].mxu0 }
 0x3ff   : > { %4316 = vrcp.f32 %v3392_v63  ;;  %v2557_v43 = vpop.f32.mrb[141].mxu0 }
 0x400   : > { %v2660_v6 = vpop.f32.mrb[140].mxu1 }
 0x401   : > { %v7164_v12 = vadd.f32 %v2660_v6, %v2555_v58  ;;  %v2662_v45 = vpop.f32.mrb[141].mxu1 }
 0x403   : > { %v2560_v57 = vpop.f32.mrb[142].mxu0 }
 0x404   : > { %v2665_v13 = vpop.f32.mrb[142].mxu1  ;;  %v2562_v7 = vpop.f32.mrb[143].mxu0 }
 0x405   : > { %v2373_v30 = vpop.xlane.xlu1 %2372  ;;  %v7166_v23 = vadd.f32 %v2665_v13, %v2560_v57  ;;  %v2667_v19 = vpop.f32.mrb[143].mxu1 }
 0x406   : > { %v2445_v41 = vadd.f32 %v2373_v30, %v2301_v3 }
 0x408   : > { %2454 = vst.msk [vmem:[#allocation3 + $0x18] sm:$0xff] %vm183_vm1, %v2445_v41  ;;  %v2735_v27 = vpop.f32.mrb[144].mxu0  ;;  %v2840_v56 = vpop.f32.mrb[144].mxu1 }
 0x409   : > { %v4317_v36 = vpop.eup %4316  ;;  %v2736_v18 = vadd.f32 %v2735_v27, %v7149_v55  ;;  %v2737_v37 = vpop.f32.mrb[145].mxu0 }
 0x40a   : > { %3426 = vperm.xlu1 %4039, %v4317_v36   ;;  %v2842_v52 = vpop.f32.mrb[145].mxu1 }
 0x40b   : > { %v7171_v34 = vadd.f32 %v2840_v56, %v2736_v18 }
 0x40f   : > { %v2390_v33 = vpop.xlane.xlu0 %2389  ;;  %v3393_v5 = vld [vmem:[#allocation3 + $0x18] sm:$0xff] }
 0x410   : > { %v2446_v54 = vadd.f32 %v2390_v33, %v2302_v24  ;;  %4318 = vrcp.f32 %v3393_v5 }
 0x412   : > { %2455 = vst.msk [vmem:[#allocation3 + $0x20] sm:$0xff] %vm183_vm1, %v2446_v54 }
 0x417   : > { %v2740_v35 = vpop.f32.mrb[146].mxu0 }
 0x418   : > { %v2741_v28 = vadd.f32 %v2740_v35, %v7151_v14  ;;  %v2742_v21 = vpop.f32.mrb[147].mxu0  ;;  %v2845_v55 = vpop.f32.mrb[146].mxu1 }
 0x419   : > { %v3394_v0 = vld [vmem:[#allocation3 + $0x20] sm:$0xff]  ;;  %v2847_v39 = vpop.f32.mrb[147].mxu1 }
 0x41a   : > { %v4319_v31 = vpop.eup %4318  ;;  %4320 = vrcp.f32 %v3394_v0  ;;  %v7175_v53 = vadd.f32 %v2845_v55, %v2741_v28 }
 0x41b   : > { %3431 = vperm.xlu0 %4038, %v4319_v31  }
 0x41d   : > { %v2407_v60 = vpop.xlane.xlu1 %2406 }
 0x41e   : > { %v2447_v32 = vadd.f32 %v2407_v60, %v2303_v17 }
 0x420   : > { %2456 = vst.msk [vmem:[#allocation3 + $0x28] sm:$0xff] %vm183_vm1, %v2447_v32 }
 0x422   : > { %v2745_v2 = vpop.f32.mrb[148].mxu0 }
 0x423   : > { %v2746_v14 = vadd.f32 %v2745_v2, %v7153_v51  ;;  %v2747_v50 = vpop.f32.mrb[149].mxu0 }
 0x424   : > { %v4321_v11 = vpop.eup %4320  ;;  %v2850_v16 = vpop.f32.mrb[148].mxu1 }
 0x425   : > { %3436 = vperm.xlu1 %4039, %v4321_v11   ;;  %v2851_v1 = vadd.f32 %v2850_v16, %v2746_v14  ;;  %v2852_v44 = vpop.f32.mrb[149].mxu1 }
 0x427   : > { %v2424_v59 = vpop.xlane.xlu0 %2423  ;;  %v3395_v4 = vld [vmem:[#allocation3 + $0x28] sm:$0xff] }
 0x428   : > { %v2448_v9 = vadd.f32 %v2424_v59, %v2304_v47  ;;  %4322 = vrcp.f32 %v3395_v4 }
 0x42a   : > { %2457 = vst.msk [vmem:[#allocation3 + $0x30] sm:$0xff] %vm183_vm1, %v2448_v9 }
 0x42e   : > { %v2750_v63 = vpop.f32.mrb[150].mxu0 }
 0x42f   : > { %v2751_v38 = vadd.f32 %v2750_v63, %v7156_v42  ;;  %v2855_v15 = vpop.f32.mrb[150].mxu1  ;;  %v2752_v3 = vpop.f32.mrb[151].mxu0 }
 0x430   : > { %v2857_v51 = vpop.f32.mrb[151].mxu1 }
 0x431   : > { %v3396_v40 = vld [vmem:[#allocation3 + $0x30] sm:$0xff]  ;;  %v2856_v30 = vadd.f32 %v2855_v15, %v2751_v38 }
 0x432   : > { %v4323_v62 = vpop.eup %4322  ;;  %4324 = vrcp.f32 %v3396_v40 }
 0x433   : > { %3441 = vperm.xlu0 %4038, %v4323_v62  }
 0x435   : > { %v2441_v26 = vpop.xlane.xlu1 %2440 }
 0x436   : > { %v2449_v8 = vadd.f32 %v2441_v26, %v2305_v48 }
 0x438   : > { %2458 = vst.msk [vmem:[#allocation3 + $0x38] sm:$0xff] %vm183_vm1, %v2449_v8 }
 0x43b   : > { %v2755_v58 = vpop.f32.mrb[152].mxu0 }
 0x43c   : > { %v4325_v10 = vpop.eup %4324  ;;  %v2756_v6 = vadd.f32 %v2755_v58, %v7158_v25  ;;  %v2757_v43 = vpop.f32.mrb[153].mxu0 }
 0x43d   : > { %3446 = vperm.xlu1 %4039, %v4325_v10   ;;  %v3310_v43 = vpop.permute.xlu0 %3309 }
 0x43e   : > { %v2860_v45 = vpop.f32.mrb[152].mxu1 }
 0x43f   : > { %v3397_v41 = vld [vmem:[#allocation3 + $0x38] sm:$0xff]  ;;  %v2861_v49 = vadd.f32 %v2860_v45, %v2756_v6  ;;  %v2862_v29 = vpop.f32.mrb[153].mxu1 }
 0x440   : > { %4326 = vrcp.f32 %v3397_v41 }
 0x44a   : > { %v4327_v42 = vpop.eup %4326 }
 0x44b   : > { %3451 = vperm.xlu0 %4038, %v4327_v42   ;;  %v2760_v57 = vpop.f32.mrb[154].mxu0 }
 0x44c   : > { %v2761_v36 = vadd.f32 %v2760_v57, %v7161_v20  ;;  %v2865_v13 = vpop.f32.mrb[154].mxu1  ;;  %v2762_v7 = vpop.f32.mrb[155].mxu0 }
 0x44d   : > { %v2867_v19 = vpop.f32.mrb[155].mxu1 }
 0x44e   : > { %v2866_v24 = vadd.f32 %v2865_v13, %v2761_v36 }
 0x457   : > { %v2765_v33 = vpop.f32.mrb[156].mxu0 }
 0x458   : > { %v2766_v5 = vadd.f32 %v2765_v33, %v7164_v12  ;;  %v2767_v27 = vpop.f32.mrb[157].mxu0  ;;  %v3325_v33 = vpop.permute.xlu0 %3324 }
 0x459   : > { %v2870_v54 = vpop.f32.mrb[156].mxu1 }
 0x45a   : > { %v2871_v18 = vadd.f32 %v2870_v54, %v2766_v5  ;;  %v2872_v25 = vpop.f32.mrb[157].mxu1 }
 0x463   : > { %v2770_v56 = vpop.f32.mrb[158].mxu0 }
 0x464   : > { %v2771_v37 = vadd.f32 %v2770_v56, %v7166_v23  ;;  %v2875_v52 = vpop.f32.mrb[158].mxu1  ;;  %v2772_v22 = vpop.f32.mrb[159].mxu0 }
 0x465   : > { %v2877_v0 = vpop.f32.mrb[159].mxu1 }
 0x466   : > { %v2876_v31 = vadd.f32 %v2875_v52, %v2771_v37  ;;  %v3300_v52 = vld [vmem:[#allocation4 + $0x8] sm:$0xff] }
 0x467   : > { %v2945_v35 = vpop.f32.mrb[160].mxu0 }
 0x468   : > { %v2946_v20 = vadd.f32 %v2945_v35, %v7171_v34  ;;  %v3050_v17 = vpop.f32.mrb[160].mxu1  ;;  %v2947_v28 = vpop.f32.mrb[161].mxu0 }
 0x469   : > { %v3052_v21 = vpop.f32.mrb[161].mxu1  ;;  %v3335_v28 = vpop.permute.xlu0 %3334 }
 0x46a   : > { %v3051_v60 = vadd.f32 %v3050_v17, %v2946_v20 }
 0x46b   : > { %v2950_v55 = vpop.f32.mrb[162].mxu0 }
 0x46c   : > { %v2951_v12 = vadd.f32 %v2950_v55, %v7175_v53  ;;  %v3055_v32 = vpop.f32.mrb[162].mxu1  ;;  %v2952_v39 = vpop.f32.mrb[163].mxu0 }
 0x46d   : > { %v3057_v61 = vpop.f32.mrb[163].mxu1 }
 0x46e   : > { %v3056_v11 = vadd.f32 %v3055_v32, %v2951_v12 }
 0x46f   : > { %v2955_v47 = vpop.f32.mrb[164].mxu0 }
 0x470   : > { %v2956_v23 = vadd.f32 %v2955_v47, %v2851_v1  ;;  %v3060_v59 = vpop.f32.mrb[164].mxu1  ;;  %v2957_v4 = vpop.f32.mrb[165].mxu0 }
 0x471   : > { %v3062_v2 = vpop.f32.mrb[165].mxu1 }
 0x472   : > { %v3061_v9 = vadd.f32 %v3060_v59, %v2956_v23 }
 0x473   : > { %v2960_v14 = vpop.f32.mrb[166].mxu0 }
 0x474   : > { %v2961_v50 = vadd.f32 %v2960_v14, %v2856_v30  ;;  %v3065_v34 = vpop.f32.mrb[166].mxu1  ;;  %v2962_v16 = vpop.f32.mrb[167].mxu0  ;;  %v3302_v14 = vld [vmem:[#allocation4 + $0x18] sm:$0xff] }
 0x475   : > { %v3067_v44 = vpop.f32.mrb[167].mxu1  ;;  %v3315_v30 = vpop.permute.xlu1 %3314 }
 0x476   : > { %v7190_v46 = vadd.f32 %v3065_v34, %v2961_v50  ;;  %v3348_v55 = vmul.f32 %v3315_v30, %v3300_v52  ;;  %v7203_v50 = vpop.permute.xlu0 %3344 }
 0x477   : > { %v2965_v40 = vpop.f32.mrb[168].mxu0 }
 0x478   : > { %v2966_v62 = vadd.f32 %v2965_v40, %v2861_v49  ;;  %v3070_v53 = vpop.f32.mrb[168].mxu1  ;;  %v2967_v63 = vpop.f32.mrb[169].mxu0 }
 0x479   : > { %v3072_v48 = vpop.f32.mrb[169].mxu1  ;;  %v3320_v13 = vpop.permute.xlu1 %3319 }
 0x47a   : > { %v7192_v38 = vadd.f32 %v3070_v53, %v2966_v62  ;;  %v3350_v48 = vmul.f32 %v3325_v33, %v3302_v14 }
 0x47b   : > { %v2970_v15 = vpop.f32.mrb[170].mxu0 }
 0x47c   : > { %v2971_v1 = vadd.f32 %v2970_v15, %v2866_v24  ;;  %v3075_v3 = vpop.f32.mrb[170].mxu1  ;;  %v2972_v26 = vpop.f32.mrb[171].mxu0  ;;  %v3299_v24 = vld [vmem:[#allocation4] sm:$0xff] }
 0x47d   : > { %v3077_v51 = vpop.f32.mrb[171].mxu1  ;;  %v3347_v56 = vmul.f32 %v3310_v43, %v3299_v24  ;;  %v3330_v22 = vpop.permute.xlu1 %3329 }
 0x47e   : > { %v7194_v8 = vadd.f32 %v3075_v3, %v2971_v1  ;;  %v3303_v3 = vld [vmem:[#allocation4 + $0x20] sm:$0xff] }
 0x47f   : > { %v2975_v10 = vpop.f32.mrb[172].mxu0  ;;  %v3351_v43 = vmul.f32 %v3330_v22, %v3303_v3 }
 0x480   : > { %v2976_v41 = vadd.f32 %v2975_v10, %v2871_v18  ;;  %v3080_v58 = vpop.f32.mrb[172].mxu1  ;;  %v2977_v6 = vpop.f32.mrb[173].mxu0 }
 0x481   : > { %v3082_v45 = vpop.f32.mrb[173].mxu1  ;;  %v3340_v59 = vpop.permute.xlu1 %3339 }
 0x482   : > { %v7196_v49 = vadd.f32 %v3080_v58, %v2976_v41  ;;  %v3422_v58 = vpop.permute.xlu0 %3421 }
 0x483   : > { %v2980_v29 = vpop.f32.mrb[174].mxu0 }
 0x484   : > { %v2981_v42 = vadd.f32 %v2980_v29, %v2876_v31  ;;  %v3085_v57 = vpop.f32.mrb[174].mxu1  ;;  %v2982_v36 = vpop.f32.mrb[175].mxu0 }
 0x485   : > { %v3087_v7 = vpop.f32.mrb[175].mxu1 }
 0x486   : > { %v7198_v19 = vadd.f32 %v3085_v57, %v2981_v42  ;;  %v3304_v42 = vld [vmem:[#allocation4 + $0x28] sm:$0xff] }
 0x487   : > { %v3155_v5 = vpop.f32.mrb[176].mxu0 }
 0x488   : > { %v3156_v27 = vadd.f32 %v3155_v5, %v3051_v60  ;;  %v3260_v54 = vpop.f32.mrb[176].mxu1  ;;  %v3157_v18 = vpop.f32.mrb[177].mxu0  ;;  %v3301_v60 = vld [vmem:[#allocation4 + $0x10] sm:$0xff] }
 0x489   : > { %v3262_v25 = vpop.f32.mrb[177].mxu1  ;;  %v3349_v2 = vmul.f32 %v3320_v13, %v3301_v60 }
 0x48a   : > { %v3261_v37 = vadd.f32 %v3260_v54, %v3156_v27  ;;  %v3352_v27 = vmul.f32 %v3335_v28, %v3304_v42  ;;  %v3305_v25 = vld [vmem:[#allocation4 + $0x30] sm:$0xff] }
 0x48b   : > { %v3160_v0 = vpop.f32.mrb[178].mxu0 }
 0x48c   : > { %v3355_v35 = vadd.f32 %v3347_v56, %v3261_v37  ;;  %v3161_v31 = vadd.f32 %v3160_v0, %v3056_v11  ;;  %v3265_v20 = vpop.f32.mrb[178].mxu1  ;;  %v3162_v17 = vpop.f32.mrb[179].mxu0 }
 0x48d   : > { %v3267_v21 = vpop.f32.mrb[179].mxu1 }
 0x48e   : > { %3363 = vst.msk [vmem:[#allocation4] sm:$0xff] %vm200_vm0, %v3355_v35  ;;  %v3266_v12 = vadd.f32 %v3265_v20, %v3161_v31  ;;  %v3353_v20 = vmul.f32 %v3340_v59, %v3305_v25  ;;  %v3306_v21 = vld [vmem:[#allocation4 + $0x38] sm:$0xff] }
 0x48f   : > { %v3165_v32 = vpop.f32.mrb[180].mxu0 }
 0x490   : > { %v3356_v39 = vadd.f32 %v3348_v55, %v3266_v12  ;;  %v3166_v61 = vadd.f32 %v3165_v32, %v3061_v9  ;;  %v3270_v47 = vpop.f32.mrb[180].mxu1  ;;  %v3167_v23 = vpop.f32.mrb[181].mxu0 }
 0x491   : > { %v3272_v4 = vpop.f32.mrb[181].mxu1  ;;  %v3417_v9 = vpop.permute.xlu1 %3416  ;;  %v3354_v23 = vmul.f32 %v7203_v50, %v3306_v21 }
 0x492   : > { %3364 = vst.msk [vmem:[#allocation4 + $0x8] sm:$0xff] %vm200_vm0, %v3356_v39  ;;  %v3271_v11 = vadd.f32 %v3270_v47, %v3166_v61 }
 0x493   : > { %v3170_v34 = vpop.f32.mrb[182].mxu0 }
 0x494   : > { %v3357_v16 = vadd.f32 %v3349_v2, %v3271_v11  ;;  %v3171_v44 = vadd.f32 %v3170_v34, %v7190_v46  ;;  %v3275_v40 = vpop.f32.mrb[182].mxu1  ;;  %v3172_v62 = vpop.f32.mrb[183].mxu0 }
 0x495   : > { %v3382_v53 = vld [vmem:[#allocation4] sm:$0xff]  ;;  %v3277_v63 = vpop.f32.mrb[183].mxu1  ;;  %v3427_v33 = vpop.permute.xlu1 %3426 }
 0x496   : > { %3365 = vst.msk [vmem:[#allocation4 + $0x10] sm:$0xff] %vm200_vm0, %v3357_v16  ;;  %v3276_v15 = vadd.f32 %v3275_v40, %v3171_v44  ;;  %v3454_v1 = vmul.f32 %v3417_v9, %v3382_v53 }
 0x497   : > { %v3175_v26 = vpop.f32.mrb[184].mxu0 }
 0x498   : > { %v3358_v51 = vadd.f32 %v3350_v48, %v3276_v15  ;;  %3462 = vst.msk [vmem:[%s7207_s21] sm:$0xff] %vm200_vm0, %v3454_v1  ;;  %v3176_v46 = vadd.f32 %v3175_v26, %v7192_v38  ;;  %v3280_v30 = vpop.f32.mrb[184].mxu1  ;;  %v3177_v10 = vpop.f32.mrb[185].mxu0 }
 0x499   : > { %v3383_v41 = vld [vmem:[#allocation4 + $0x8] sm:$0xff]  ;;  %v3282_v6 = vpop.f32.mrb[185].mxu1 }
 0x49a   : > { %3366 = vst.msk [vmem:[#allocation4 + $0x18] sm:$0xff] %vm200_vm0, %v3358_v51  ;;  %v3281_v45 = vadd.f32 %v3280_v30, %v3176_v46  ;;  %v3455_v29 = vmul.f32 %v3422_v58, %v3383_v41  ;;  %v3432_v35 = vpop.permute.xlu0 %3431 }
 0x49b   : > { %v3180_v57 = vpop.f32.mrb[186].mxu0 }
 0x49c   : > { %v3359_v36 = vadd.f32 %v3351_v43, %v3281_v45  ;;  %3463 = vst.msk [vmem:[%s7207_s21 + $0x8] sm:$0xff] %vm200_vm0, %v3455_v29  ;;  %v3181_v13 = vadd.f32 %v3180_v57, %v7194_v8  ;;  %v3285_v7 = vpop.f32.mrb[186].mxu1  ;;  %v3182_v38 = vpop.f32.mrb[187].mxu0 }
 0x49d   : > { %v3384_v24 = vld [vmem:[#allocation4 + $0x10] sm:$0xff]  ;;  %v3287_v5 = vpop.f32.mrb[187].mxu1 }
 0x49e   : > { %3367 = vst.msk [vmem:[#allocation4 + $0x20] sm:$0xff] %vm200_vm0, %v3359_v36  ;;  %v3286_v54 = vadd.f32 %v3285_v7, %v3181_v13  ;;  %v3456_v18 = vmul.f32 %v3427_v33, %v3384_v24 }
 0x49f   : > { %v3185_v56 = vpop.f32.mrb[188].mxu0 }
 0x4a0   : > { %v3360_v37 = vadd.f32 %v3352_v27, %v3286_v54  ;;  %3464 = vst.msk [vmem:[%s7207_s21 + $0x10] sm:$0xff] %vm200_vm0, %v3456_v18  ;;  %v3186_v52 = vadd.f32 %v3185_v56, %v7196_v49  ;;  %v3290_v22 = vpop.f32.mrb[188].mxu1  ;;  %v3187_v8 = vpop.f32.mrb[189].mxu0 }
 0x4a1   : > { %v3385_v0 = vld [vmem:[#allocation4 + $0x18] sm:$0xff]  ;;  %v3292_v31 = vpop.f32.mrb[189].mxu1 }
 0x4a2   : > { %3368 = vst.msk [vmem:[#allocation4 + $0x28] sm:$0xff] %vm200_vm0, %v3360_v37  ;;  %v3291_v17 = vadd.f32 %v3290_v22, %v3186_v52  ;;  %v3457_v28 = vmul.f32 %v3432_v35, %v3385_v0 }
 0x4a3   : > { %v3190_v55 = vpop.f32.mrb[190].mxu0 }
 0x4a4   : > { %v3361_v12 = vadd.f32 %v3353_v20, %v3291_v17  ;;  %3465 = vst.msk [vmem:[%s7207_s21 + $0x18] sm:$0xff] %vm200_vm0, %v3457_v28  ;;  %v3191_v60 = vadd.f32 %v3190_v55, %v7198_v19  ;;  %v3295_v49 = vpop.f32.mrb[190].mxu1  ;;  %v3437_v32 = vpop.permute.xlu1 %3436 }
 0x4a5   : > { %v3386_v39 = vld [vmem:[#allocation4 + $0x20] sm:$0xff]  ;;  %v3192_v61 = vpop.f32.mrb[191].mxu0  ;;  %v3297_v47 = vpop.f32.mrb[191].mxu1 }
 0x4a6   : > { %3369 = vst.msk [vmem:[#allocation4 + $0x30] sm:$0xff] %vm200_vm0, %v3361_v12  ;;  %v3296_v59 = vadd.f32 %v3295_v49, %v3191_v60  ;;  %v3458_v4 = vmul.f32 %v3437_v32, %v3386_v39 }
 0x4a8   : > { %v3362_v2 = vadd.f32 %v3354_v23, %v3296_v59  ;;  %3466 = vst.msk [vmem:[%s7207_s21 + $0x20] sm:$0xff] %vm200_vm0, %v3458_v4 }
 0x4a9   : > { %v3387_v19 = vld [vmem:[#allocation4 + $0x28] sm:$0xff] }
 0x4aa   : > { %3370 = vst.msk [vmem:[#allocation4 + $0x38] sm:$0xff] %vm200_vm0, %v3362_v2 }
 0x4ad   : > { %v3388_v34 = vld [vmem:[#allocation4 + $0x30] sm:$0xff] }
 0x4b1   : > { %v3389_v44 = vld [vmem:[#allocation4 + $0x38] sm:$0xff] }
 0x4b2   : > { %v3442_v11 = vpop.permute.xlu0 %3441 }
 0x4b3   : > { %v3459_v14 = vmul.f32 %v3442_v11, %v3387_v19 }
 0x4b5   : > { %3467 = vst.msk [vmem:[%s7207_s21 + $0x28] sm:$0xff] %vm200_vm0, %v3459_v14 }
 0x4bc   : > { %v3447_v50 = vpop.permute.xlu1 %3446 }
 0x4bd   : > { %v3460_v16 = vmul.f32 %v3447_v50, %v3388_v34 }
 0x4bf   : > { %3468 = vst.msk [vmem:[%s7207_s21 + $0x30] sm:$0xff] %vm200_vm0, %v3460_v16 }
 0x4ca   : > { %v3452_v40 = vpop.permute.xlu0 %3451 }
 0x4cb   : > { %v3461_v62 = vmul.f32 %v3452_v40, %v3389_v44 }
 0x4cd   : > { %3469 = vst.msk [vmem:[%s7207_s21 + $0x38] sm:$0xff] %vm200_vm0, %v3461_v62 }
 0x4ce   : > { %4371 = shalt.err (!%p4368_p5)
}
 0x4cf   : > { %s4372_s26 = scalar_lea.hbm %s7238_s16, 1024  ;;  %s4376_s29 = scalar_lea.hbm %s7293_s2, 2048 }
 0x4d0   : > { %p4373_p4 = scmp.ne.s32.totalorder %s7238_s16, %s4372_s26  ;;  %p4377_p12 = scmp.lt.u32.totalorder %s7238_s16, %s7293_s2 }
 0x4d1   : > { %p4378_p1 = scmp.lt.u32.totalorder %s4376_s29, %s4372_s26  ;;  %p4380_p8 = scmp.lt.u32.totalorder %s4372_s26, %s7238_s16 }
 0x4d2   : > { %p4374_p7 = pnand %p4373_p4, %p8157_p9 }
 0x4d3   : > { %p4379_p3 = por %p4378_p1, %p4377_p12 }
 0x4d4   : > { %p4375_p10 = pneg %p4374_p7 }
 0x4d5   : > { %p4381_p11 = por %p4380_p8, %p4379_p3 }
 0x4d7   : > { %p4382_p0 = pnand %p4381_p11, %p4375_p10 }
 0x4d9   : > { %4385 = shalt.err (!%p4382_p0)
}
 0x4da   : > { %s4449_s15 = smov 128   ;;  %s4450_s21 = smov 8  }
 0x4db   : > { %3971 = dma.vmem_to_hbm [thread:$0]  (%p8157_p9), %s7240_s4, 1024, %s7238_s16, %s3471_s18, %s4449_s15, %s4449_s15, %s4450_s21  }
 0x4dc PF: > { %s3499_s30 = sand.u32 1, %s4420_s9   ;;  %p8158_p6 = scmp.ne.s32.totalorder %s7563_s24, 0 }
 0x4dd   : > { %p8159_p13 = scmp.ge.s32.totalorder %s4440_s14, 2  ;;  %s3500_s5 = scalar_lea.sflag [#allocation7], %s3499_s30 }
 0x4df   : > { %p3978_p2 = pnand %p8159_p13, %p8158_p6 }
 0x4e1   : > { %4415 = dma.done.wait (!%p3978_p2), %s3500_s5, 1024  }
 0x4e2   : > { %4417 = vsyncadd (!%p3978_p2), %s3500_s5, 4294966272  ;;  %s18_s14 = sadd.s32 1, %s4440_s14   ;;  %s8160_s9 = smov %s4424_s10 }
 0x4e3   : > { %p15_p5 = scmp.ge.s32.totalorder %s18_s14, 4   ;;  %s8161_s10 = smov %s4428_s11 }
 0x4e4   : > { %s8162_s11 = smov %s4522_s23  ;;  %s8163_s12 = smov %s4436_s13 }
 0x4e5   : > { %s8164_s13 = smov %s8166_s17  ;;  %17 = sbr.rel (!%p15_p5) target bundleno = 6 (0x6), region = 81 }
 0x4ec   :  { %3505 = vsyncpa [#allocation6], 1 }
 0x4ed   :  { %3507 = vsyncpa [#allocation6 + $0x1], 1 }
 0x4ee   :  { %3508 = vsyncpa [#allocation7], 1 }
 0x4ef   :  { %3510 = vsyncpa [#allocation7 + $0x1], 1 }

</bundles_post_ra>
